<compile_context>
chip_gen: v7x
topology: tpu7x:2x2x1
jax: 0.10.0
libtpu: 0.0.40
codegen_flags: <defaults>
</compile_context>

<pallas_src>
import math
from functools import partial

import jax
import jax.numpy as jnp
from jax.experimental import pallas as pl
from jax.experimental.pallas import tpu as pltpu

_PREC = jax.lax.Precision.HIGHEST           # deterministic f32 MXU passes
_NT_DIMS = (((1,), (1,)), ((), ()))         # contract both last dims: A @ B^T


def _sigmoid(h):
    # tanh form: one EUP transcendental + 2 cheap VPU ops (no VALU divide).
    return 0.5 * jnp.tanh(0.5 * h) + 0.5


def _make_kernel(dims, last_reduce, transpose_out):
    d = dims[0]
    num_lc = len(dims) - 2

    def kernel(*refs):
        x_ref = refs[0]                        # [tn, d] batch-major input tile
        w1_ref, b1_ref = refs[1], refs[2]      # fused fc1 (pos - neg)
        lc_refs = refs[3:3 + 2 * num_lc]
        out_ref = refs[3 + 2 * num_lc]

        # fc1: [d*m1, d] x [tn, d]^T -> [d*m1, tn]   (feature-major, batch on lanes)
        h = jax.lax.dot_general(
            w1_ref[...], x_ref[...], _NT_DIMS,
            preferred_element_type=jnp.float32, precision=_PREC) + b1_ref[...]

        for l in range(num_lc):
            w_ref, b_ref = lc_refs[2 * l], lc_refs[2 * l + 1]
            s = _sigmoid(h)                                    # [d*m_in, tn]
            if l < num_lc - 1 or not last_reduce:
                # one block-diagonal MXU matmul covering all d features
                h = jnp.dot(w_ref[...], s,
                            preferred_element_type=jnp.float32,
                            precision=_PREC) + b_ref[...]      # [d*m_out, tn]
            else:
                # last layer (m_out == 1): VPU multiply + XLU sublane reduce
                m_last = dims[-2]
                t = s * w_ref[...]                             # [d*m_last, tn]
                h = jnp.sum(t.reshape(d, m_last, -1), axis=1) + b_ref[...]  # [d, tn]

        if transpose_out:
            # single small [d, tn] -> [tn, d] XLU transpose; HBM write stays a
            # plain contiguous-row DMA into the batch-major [n, d] output.
            out_ref[...] = h.T.astype(out_ref.dtype)
        else:
            out_ref[...] = h.astype(out_ref.dtype)             # feature-major fallback

    return kernel


def prepare_params(params, dims):
    """One-time packing of PyTorch-style parameters into kernel operands."""
    d, m1 = dims[0], dims[1]
    num_lc = len(dims) - 2
    last_reduce = num_lc >= 1 and dims[-2] % 8 == 0

    # Fuse fc1_pos - fc1_neg: the forward only ever needs the difference.
    w1 = (params["fc1_pos_w"] - params["fc1_neg_w"]).astype(jnp.float32)
    b1 = (params["fc1_pos_b"] - params["fc1_neg_b"]).reshape(d * m1, 1).astype(jnp.float32)
    prepped = [w1, b1]

    eye = jnp.eye(d, dtype=jnp.float32)
    for l in range(num_lc):
        w, b = params["fc2"][l]                     # w: [d, m_in, m_out], b: [d, m_out]
        m_in, m_out = dims[l + 1], dims[l + 2]
        if l == num_lc - 1 and last_reduce:
            # last layer (m_out == 1): flat weight for VPU multiply + reduce
            prepped += [w.reshape(d * m_in, 1).astype(jnp.float32),
                        b.reshape(d, 1).astype(jnp.float32)]
        else:
            # block-diagonal weight [d*m_out, d*m_in]: Wbd[j*m_out+o, j*m_in+m] = w[j,m,o]
            wt = jnp.transpose(w, (0, 2, 1)).astype(jnp.float32)        # [d, m_out, m_in]
            wbd = jnp.einsum("jk,jom->jokm", eye, wt).reshape(d * m_out, d * m_in)
            prepped += [wbd, b.reshape(d * m_out, 1).astype(jnp.float32)]
            # TODO(synk): for very large d*m_in, chunk into groups of floor(256/m_in)
            # features per matmul instead of one full block-diagonal weight.
    return tuple(prepped)


@partial(jax.jit, static_argnames=("dims",))
def notears_mlp_forward(x, prepped, dims):
    n, d = x.shape
    assert d == dims[0]
    num_lc = len(dims) - 2
    last_reduce = num_lc >= 1 and dims[-2] % 8 == 0
    transpose_out = (d % 8 == 0)      # in-kernel [d,tn]->[tn,d] transpose is layout-clean

    LANE = 128
    max_rows = max(d * m for m in dims[1:])
    # per batch-lane: double-buffered [tn, d] in/out tiles (lane-padded to 128)
    # + ~3 live f32 feature-major temporaries of the widest layer.
    per_lane_bytes = 2 * 2 * (pl.cdiv(d, LANE) * 512) + 12 * max_rows
    cap = max(LANE, min(2048, ((12 << 20) // per_lane_bytes) // LANE * LANE))

    x_in = x
    if n < LANE:                                   # tiny batches: pad to one lane tile
        x_in = jnp.pad(x, ((0, LANE - n), (0, 0)))
    nb = x_in.shape[0]
    tn = min(cap, (nb // LANE) * LANE)
    if tn >= nb and nb >= 2 * LANE:                # keep >= 2 grid steps for v7x's 2 TCs
        tn = max(LANE, ((nb // 2) // LANE) * LANE)
    grid_n = pl.cdiv(nb, tn)

    weight_bytes = sum(math.prod(p.shape) * 4 for p in prepped)
    vmem_limit = int(min(48 << 20, max(32 << 20, 4 * weight_bytes + per_lane_bytes * tn)))

    in_specs = [pl.BlockSpec((tn, d), lambda i: (i, 0))]       # streamed over batch
    in_specs += [pl.BlockSpec(p.shape, lambda i: (0, 0)) for p in prepped]  # resident
    # TODO(synk): pipeline_mode=pl.Buffered(1) on the constant-index weight specs would
    # halve their VMEM footprint; only matters once d*m1 grows (negligible here).

    if transpose_out:
        out_shape = jax.ShapeDtypeStruct((nb, d), x.dtype)
        out_spec = pl.BlockSpec((tn, d), lambda i: (i, 0))
    else:                                          # fallback: feature-major output
        out_shape = jax.ShapeDtypeStruct((d, nb), x.dtype)
        out_spec = pl.BlockSpec((d, tn), lambda i: (0, i))

    out = pl.pallas_call(
        _make_kernel(dims, last_reduce, transpose_out),
        out_shape=out_shape,
        grid=(grid_n,),
        in_specs=in_specs,
        out_specs=out_spec,
        compiler_params=pltpu.CompilerParams(
            dimension_semantics=("parallel",),
            vmem_limit_bytes=vmem_limit),
    )(x_in, *prepped)

    if not transpose_out:
        out = out.T
    return out[:n]


def init_params(key, dims):
    """Deterministic init mirroring nn.Linear / LocallyConnected shapes."""
    d = dims[0]
    num_lc = len(dims) - 2
    keys = list(jax.random.split(key, 4 + 2 * max(num_lc, 1)))
    it = iter(keys)

    bound1 = 1.0 / math.sqrt(d)
    params = {
        "fc1_pos_w": jax.random.uniform(next(it), (d * dims[1], d), jnp.float32, -bound1, bound1),
        "fc1_pos_b": jax.random.uniform(next(it), (d * dims[1],), jnp.float32, -bound1, bound1),
        "fc1_neg_w": jax.random.uniform(next(it), (d * dims[1], d), jnp.float32, -bound1, bound1),
        "fc1_neg_b": jax.random.uniform(next(it), (d * dims[1],), jnp.float32, -bound1, bound1),
        "fc2": [],
    }
    for l in range(num_lc):
        m_in, m_out = dims[l + 1], dims[l + 2]
        bound = 1.0 / math.sqrt(m_in)
        w = jax.random.uniform(next(it), (d, m_in, m_out), jnp.float32, -bound, bound)
        b = jax.random.uniform(next(it), (d, m_out), jnp.float32, -bound, bound)
        params["fc2"].append((w, b))
    return params


def ref_forward(x, params, dims):
    """Pure-JAX reference mirroring the PyTorch forward exactly (f32, HIGHEST)."""
    h = (jnp.dot(x, params["fc1_pos_w"].T, precision=_PREC) + params["fc1_pos_b"]) \
        - (jnp.dot(x, params["fc1_neg_w"].T, precision=_PREC) + params["fc1_neg_b"])
    h = h.reshape(x.shape[0], dims[0], dims[1])
    for (w, b) in params["fc2"]:
        h = jax.nn.sigmoid(h)
        h = jnp.einsum("njm,jmo->njo", h, w, precision=_PREC) + b[None]
    return h[:, :, 0]   # torch .squeeze(dim=2), since dims[-1] == 1

# TODO(synk): h_func (trace_expm), l2_reg, fc1_l1_reg, fc1_to_adj are weight-only
# training/regularizer utilities, not part of forward(); not implemented here.


if __name__ == "__main__":
    dims = (16, 16, 8, 1)   # (d, m1, m2, 1) -> two LocallyConnected layers
    batch = 256             # >= 256 so the grid has 2 steps (both TCs on v7x)

    key = jax.random.PRNGKey(0)
    kx, kp = jax.random.split(key)
    x = jax.random.normal(kx, (batch, dims[0]), dtype=jnp.float32)
    params = init_params(kp, dims)
    prepped = prepare_params(params, dims)     # hoisted one-time weight prep

    out = notears_mlp_forward(x, prepped, dims)
    out = jax.block_until_ready(out)

    ref = ref_forward(x, params, dims)
    assert out.shape == (batch, dims[0]), out.shape
    max_err = float(jnp.max(jnp.abs(out - ref)))
    assert max_err < 1e-4, f"max abs error {max_err}"

    print("KERNEL_OK")
</pallas_src>

<mosaic_0001>
module attributes {stable_mosaic.version = 11 : i64} {
  func.func @kernel(%arg0: i32, %arg1: memref<128x16xf32, #tpu.memory_space<vmem>>, %arg2: memref<256x16xf32, #tpu.memory_space<vmem>>, %arg3: memref<256x1xf32, #tpu.memory_space<vmem>>, %arg4: memref<128x256xf32, #tpu.memory_space<vmem>>, %arg5: memref<128x1xf32, #tpu.memory_space<vmem>>, %arg6: memref<128x1xf32, #tpu.memory_space<vmem>>, %arg7: memref<16x1xf32, #tpu.memory_space<vmem>>, %arg8: memref<128x16xf32, #tpu.memory_space<vmem>>) attributes {dimension_semantics = [#tpu.dimension_semantics<parallel>], iteration_bounds = array<i64: 2>, scalar_prefetch = 0 : i64, scratch_operands = 0 : i64, tpu.core_type = #tpu.core_type<tc>, window_params = [{transform_indices = @transform_0, window_bounds = array<i64: 128, 16>}, {pipeline_mode = #tpu.pipeline_mode<synchronous>, transform_indices = @transform_1, window_bounds = array<i64: 256, 16>}, {pipeline_mode = #tpu.pipeline_mode<synchronous>, transform_indices = @transform_2, window_bounds = array<i64: 256, 1>}, {pipeline_mode = #tpu.pipeline_mode<synchronous>, transform_indices = @transform_3, window_bounds = array<i64: 128, 256>}, {pipeline_mode = #tpu.pipeline_mode<synchronous>, transform_indices = @transform_4, window_bounds = array<i64: 128, 1>}, {pipeline_mode = #tpu.pipeline_mode<synchronous>, transform_indices = @transform_5, window_bounds = array<i64: 128, 1>}, {pipeline_mode = #tpu.pipeline_mode<synchronous>, transform_indices = @transform_6, window_bounds = array<i64: 16, 1>}, {transform_indices = @transform_7, window_bounds = array<i64: 128, 16>}]} {
    %c0 = arith.constant 0 : index
    %c0_0 = arith.constant 0 : index
    %0 = vector.load %arg2[%c0, %c0_0] : memref<256x16xf32, #tpu.memory_space<vmem>>, vector<256x16xf32>
    %c0_1 = arith.constant 0 : index
    %c0_2 = arith.constant 0 : index
    %1 = vector.load %arg1[%c0_1, %c0_2] : memref<128x16xf32, #tpu.memory_space<vmem>>, vector<128x16xf32>
    %cst = arith.constant dense<0.000000e+00> : vector<256x128xf32>
    %2 = tpu.matmul %0, %1, %cst {dimension_numbers = #tpu.dot_dimension_numbers<[1], [1], [0], [0], [0, 0, 1, 0], [], []>, precision = #tpu.contract_precision<fp32>} : vector<256x16xf32>, vector<128x16xf32>, vector<256x128xf32> -> vector<256x128xf32>
    %c0_3 = arith.constant 0 : index
    %c0_4 = arith.constant 0 : index
    %3 = vector.load %arg3[%c0_3, %c0_4] : memref<256x1xf32, #tpu.memory_space<vmem>>, vector<256x1xf32>
    %4 = vector.broadcast %3 : vector<256x1xf32> to vector<256x128xf32>
    %5 = arith.addf %2, %4 : vector<256x128xf32>
    %cst_5 = arith.constant 5.000000e-01 : f32
    %6 = vector.broadcast %cst_5 : f32 to vector<256x128xf32>
    %7 = arith.mulf %6, %5 : vector<256x128xf32>
    %8 = math.tanh %7 : vector<256x128xf32>
    %cst_6 = arith.constant 5.000000e-01 : f32
    %9 = vector.broadcast %cst_6 : f32 to vector<256x128xf32>
    %10 = arith.mulf %9, %8 : vector<256x128xf32>
    %cst_7 = arith.constant 5.000000e-01 : f32
    %11 = vector.broadcast %cst_7 : f32 to vector<256x128xf32>
    %12 = arith.addf %10, %11 : vector<256x128xf32>
    %c0_8 = arith.constant 0 : index
    %c0_9 = arith.constant 0 : index
    %13 = vector.load %arg4[%c0_8, %c0_9] : memref<128x256xf32, #tpu.memory_space<vmem>>, vector<128x256xf32>
    %cst_10 = arith.constant dense<0.000000e+00> : vector<128x128xf32>
    %14 = tpu.matmul %13, %12, %cst_10 {dimension_numbers = #tpu.dot_dimension_numbers<[1], [0], [0], [1], [0, 0, 1, 1], [], []>, precision = #tpu.contract_precision<fp32>} : vector<128x256xf32>, vector<256x128xf32>, vector<128x128xf32> -> vector<128x128xf32>
    %c0_11 = arith.constant 0 : index
    %c0_12 = arith.constant 0 : index
    %15 = vector.load %arg5[%c0_11, %c0_12] : memref<128x1xf32, #tpu.memory_space<vmem>>, vector<128x1xf32>
    %16 = vector.broadcast %15 : vector<128x1xf32> to vector<128x128xf32>
    %17 = arith.addf %14, %16 : vector<128x128xf32>
    %cst_13 = arith.constant 5.000000e-01 : f32
    %18 = vector.broadcast %cst_13 : f32 to vector<128x128xf32>
    %19 = arith.mulf %18, %17 : vector<128x128xf32>
    %20 = math.tanh %19 : vector<128x128xf32>
    %cst_14 = arith.constant 5.000000e-01 : f32
    %21 = vector.broadcast %cst_14 : f32 to vector<128x128xf32>
    %22 = arith.mulf %21, %20 : vector<128x128xf32>
    %cst_15 = arith.constant 5.000000e-01 : f32
    %23 = vector.broadcast %cst_15 : f32 to vector<128x128xf32>
    %24 = arith.addf %22, %23 : vector<128x128xf32>
    %c0_16 = arith.constant 0 : index
    %c0_17 = arith.constant 0 : index
    %25 = vector.load %arg6[%c0_16, %c0_17] : memref<128x1xf32, #tpu.memory_space<vmem>>, vector<128x1xf32>
    %26 = vector.broadcast %25 : vector<128x1xf32> to vector<128x128xf32>
    %27 = arith.mulf %24, %26 : vector<128x128xf32>
    %28 = vector.shape_cast %27 : vector<128x128xf32> to vector<16x8x128xf32>
    %cst_18 = arith.constant dense<0.000000e+00> : vector<16x128xf32>
    %29 = vector.multi_reduction <add>, %28, %cst_18 [1] : vector<16x8x128xf32> to vector<16x128xf32>
    %c0_19 = arith.constant 0 : index
    %c0_20 = arith.constant 0 : index
    %30 = vector.load %arg7[%c0_19, %c0_20] : memref<16x1xf32, #tpu.memory_space<vmem>>, vector<16x1xf32>
    %31 = vector.broadcast %30 : vector<16x1xf32> to vector<16x128xf32>
    %32 = arith.addf %29, %31 : vector<16x128xf32>
    %33 = tpu.transpose %32, [1, 0] : vector<16x128xf32> -> vector<128x16xf32>
    %c0_21 = arith.constant 0 : index
    %c0_22 = arith.constant 0 : index
    %34 = vector.load %arg8[%c0_21, %c0_22] : memref<128x16xf32, #tpu.memory_space<vmem>>, vector<128x16xf32>
    tpu.vector_store %arg8[%c0_21, %c0_22], %33 {strides = array<i32>} : memref<128x16xf32, #tpu.memory_space<vmem>>, vector<128x16xf32>,
    return
  }
  func.func @transform_0(%arg0: i32) -> (i32, i32) {
    %c0_i32 = arith.constant 0 : i32
    %c0_i32_0 = arith.constant 0 : i32
    return %arg0, %c0_i32 : i32, i32
  }
  func.func @transform_1(%arg0: i32) -> (i32, i32) {
    %c0_i32 = arith.constant 0 : i32
    %c0_i32_0 = arith.constant 0 : i32
    %c0_i32_1 = arith.constant 0 : i32
    return %c0_i32, %c0_i32_0 : i32, i32
  }
  func.func @transform_2(%arg0: i32) -> (i32, i32) {
    %c0_i32 = arith.constant 0 : i32
    %c0_i32_0 = arith.constant 0 : i32
    %c0_i32_1 = arith.constant 0 : i32
    return %c0_i32, %c0_i32_0 : i32, i32
  }
  func.func @transform_3(%arg0: i32) -> (i32, i32) {
    %c0_i32 = arith.constant 0 : i32
    %c0_i32_0 = arith.constant 0 : i32
    %c0_i32_1 = arith.constant 0 : i32
    return %c0_i32, %c0_i32_0 : i32, i32
  }
  func.func @transform_4(%arg0: i32) -> (i32, i32) {
    %c0_i32 = arith.constant 0 : i32
    %c0_i32_0 = arith.constant 0 : i32
    %c0_i32_1 = arith.constant 0 : i32
    return %c0_i32, %c0_i32_0 : i32, i32
  }
  func.func @transform_5(%arg0: i32) -> (i32, i32) {
    %c0_i32 = arith.constant 0 : i32
    %c0_i32_0 = arith.constant 0 : i32
    %c0_i32_1 = arith.constant 0 : i32
    return %c0_i32, %c0_i32_0 : i32, i32
  }
  func.func @transform_6(%arg0: i32) -> (i32, i32) {
    %c0_i32 = arith.constant 0 : i32
    %c0_i32_0 = arith.constant 0 : i32
    %c0_i32_1 = arith.constant 0 : i32
    return %c0_i32, %c0_i32_0 : i32, i32
  }
  func.func @transform_7(%arg0: i32) -> (i32, i32) {
    %c0_i32 = arith.constant 0 : i32
    %c0_i32_0 = arith.constant 0 : i32
    return %arg0, %c0_i32 : i32, i32
  }
}

</mosaic_0001>

<bundles_post_ra>
// kernel: notears_mlp_forward.1
= control target key start
LH: loop header
LB: loop body
LE: loop exit
PB: predicated region body
PF: predicated region fallthrough
CT: control target
= control target key end

     0   :  { %s7076_s24 = smov 0   ;;  %s9898_s0 = inlined_call_operand.vmem [shape: f32[256,16], index: 0, kind: input, shape index: {}]   ;;  %s9899_s1 = inlined_call_operand.vmem [shape: f32[256,16], index: 1, kind: input, shape index: {}]   ;;  %s9900_s2 = inlined_call_operand.vmem [shape: f32[256,1], index: 2, kind: input, shape index: {}]   ;;  %s9901_s3 = inlined_call_operand.vmem [shape: f32[128,256], index: 3, kind: input, shape index: {}]   ;;  %s9902_s4 = inlined_call_operand.vmem [shape: f32[128,1], index: 4, kind: input, shape index: {}]   ;;  %s9903_s5 = inlined_call_operand.vmem [shape: f32[128,1], index: 5, kind: input, shape index: {}]   ;;  %s9904_s6 = inlined_call_operand.vmem [shape: f32[16,1], index: 6, kind: input, shape index: {}]   ;;  %s9905_s7 = inlined_call_operand.vmem [shape: f32[256,16], index: 7, kind: output, shape index: {}]  }
   0x1 LB: > { %s5084_s25 = sadd.s32 4294967295, %s7033_s24   ;;  %p5088_p0 = scmp.ge.s32.totalorder %s7033_s24, 1  ;;  %s7033_s24 = sphi %s7076_s24, %s17_s24  }
   0x2   : > { %p238_p1 = scmp.lt.s32.totalorder %s7033_s24, 3 }
   0x4   : > { %p239_p2 = pnand %p5088_p0, %p238_p1 }
   0x6   : > { %242 = sbr.rel (%p239_p2) target bundleno = 1536 (0x600), region = 48 }
   0xd   : > { %s5089_s26 = sshll.u32 %s5084_s25, 4  ;;  %vm522_vm0 = vcmask 130048   ;;  %v282_v0 = vld [vmem:[%s9899_s1] sm:$0xff]  ;;  %v283_v53 = vld [vmem:[%s9899_s1 + $0x8] sm:$0xff]  ;;  %v284_v56 = vld [vmem:[%s9899_s1 + $0x10] sm:$0xff]  ;;  %vm4944_vm1 = vcmask 1041409  }
   0xe   : > { %p271_p3 = scmp.lt.s32.totalorder %s5089_s26, 31  ;;  %v524_v1 = vsel %vm522_vm0, %v282_v0, 0  ;;  %v285_v57 = vld [vmem:[%s9899_s1 + $0x18] sm:$0xff]  ;;  %v286_v58 = vld [vmem:[%s9899_s1 + $0x20] sm:$0xff]  ;;  %v527_v61 = vsel %vm522_vm0, %v283_v53, 0  ;;  %v530_v0 = vsel %vm522_vm0, %v284_v56, 0 }
   0xf   : > { %v7088_v2 = vand.u32 4294901760, %v524_v1  ;;  %vm4947_vm2 = vcmask 1042434   ;;  %vm4950_vm3 = vcmask 1043459   ;;  %vm4953_vm4 = vcmask 1044484  }
  0x10   : > { %s10803_s26 = smov (!%p271_p3, %s5089_s26), 31  ;;  %vm4956_vm5 = vcmask 1045509   ;;  %vm4959_vm6 = vcmask 1046534   ;;  %vm4962_vm7 = vcmask 1047559  }
  0x11   : > { %v7093_v3 = vsub.f32 %v524_v1, %v7088_v2  ;;  %s5090_s29 = sshll.u32 %s10803_s26, 3  ;;  %v533_v1 = vsel %vm522_vm0, %v285_v57, 0 }
  0x12   : > { %s7101_s9 = scalar_lea.vmem %s9898_s0, %s5090_s29  ;;  %s9861_s10 = scalar_lea.vmem %s9905_s7, %s5090_s29 }
  0x13   : > { %10253 = vst [vmem:[#allocation2_spill] sm:$0xff] %v7093_v3  ;;  %v314_v4 = vld [vmem:[%s7101_s9] sm:$0xff]  ;;  %v315_v5 = vld [vmem:[%s7101_s9 + $0x8] sm:$0xff]  ;;  %v316_v6 = vld [vmem:[%s7101_s9 + $0x10] sm:$0xff]  ;;  %v9906_v11 = vand.u32 4294901760, %v7093_v3 }
  0x14   : > { %v7107_v7 = vsel %vm522_vm0, %v314_v4, 0  ;;  %v7110_v8 = vsel %vm522_vm0, %v315_v5, 0  ;;  %v317_v9 = vld [vmem:[%s7101_s9 + $0x18] sm:$0xff]  ;;  %v7114_v10 = vsel %vm522_vm0, %v316_v6, 0  ;;  %v318_v16 = vld [vmem:[%s7101_s9 + $0x20] sm:$0xff]  ;;  %v319_v17 = vld [vmem:[%s7101_s9 + $0x28] sm:$0xff] }
  0x15   : > { %v668_v12 = vand.u32 4294901760, %v7107_v7  ;;  %v671_v13 = vand.u32 4294901760, %v7110_v8  ;;  %v7120_v14 = vsel %vm522_vm0, %v317_v9, 0  ;;  %v674_v15 = vand.u32 4294901760, %v7114_v10  ;;  %v320_v26 = vld [vmem:[%s7101_s9 + $0x30] sm:$0xff]  ;;  %v321_v27 = vld [vmem:[%s7101_s9 + $0x38] sm:$0xff] }
  0x16   : > { %v677_v18 = vand.u32 4294901760, %v7120_v14  ;;  %v7135_v21 = vsel %vm522_vm0, %v318_v16, 0  ;;  %v7138_v22 = vsel %vm522_vm0, %v319_v17, 0  ;;  %v751_v23 = vsub.f32 %v7093_v3, %v9906_v11  ;;  %v322_v34 = vld [vmem:[%s7101_s9 + $0x40] sm:$0xff]  ;;  %v323_v35 = vld [vmem:[%s7101_s9 + $0x48] sm:$0xff]  ;;  %v324_v41 = vld [vmem:[%s7101_s9 + $0x50] sm:$0xff] }
  0x17   : > { %v7126_v19 = vpack.c.bf16 %v671_v13, %v668_v12  ;;  %v680_v24 = vand.u32 4294901760, %v7135_v21  ;;  %v683_v25 = vand.u32 4294901760, %v7138_v22  ;;  %v7157_v30 = vsel %vm522_vm0, %v320_v26, 0  ;;  %v325_v42 = vld [vmem:[%s7101_s9 + $0x58] sm:$0xff]  ;;  %v326_v48 = vld [vmem:[%s7101_s9 + $0x60] sm:$0xff]  ;;  %v327_v49 = vld [vmem:[%s7101_s9 + $0x68] sm:$0xff] }
  0x18   : > { %v7132_v20 = vpack.c.bf16 %v677_v18, %v674_v15  ;;  %v752_v28 = vand.u32 4294901760, %v751_v23  ;;  %v7160_v31 = vsel %vm522_vm0, %v321_v27, 0  ;;  %v9924_v32 = vand.u32 4294901760, %v7157_v30  ;;  %v328_v59 = vld [vmem:[%s7101_s9 + $0x70] sm:$0xff]  ;;  %v329_v60 = vld [vmem:[%s7101_s9 + $0x78] sm:$0xff]  ;;  %v287_v6 = vld [vmem:[%s9899_s1 + $0x28] sm:$0xff] }
  0x19   : > { %10254 = vst [vmem:[#allocation3_spill] sm:$0xff] %v7126_v19  ;;  %6344 = vmatprep.subr.bf16.mxu0 %v7126_v19  ;;  %v7154_v29 = vpack.c.bf16 %v683_v25, %v680_v24  ;;  %v9923_v33 = vand.u32 4294901760, %v7160_v31  ;;  %v7175_v37 = vsel %vm522_vm0, %v322_v34, 0  ;;  %v7178_v38 = vsel %vm522_vm0, %v323_v35, 0 }
  0x1a   : > { %10255 = vst [vmem:[#allocation4_spill] sm:$0xff] %v7132_v20  ;;  %6346 = vmatpush3.bf16.xpose.msra.mxu0 %v7126_v19  ;;  %5895 = vmatprep.mubr.f32.mxu0 %v752_v28  ;;  %v9922_v39 = vand.u32 4294901760, %v7175_v37  ;;  %v9921_v40 = vand.u32 4294901760, %v7178_v38  ;;  %v7193_v44 = vsel %vm522_vm0, %v324_v41, 0  ;;  %v7196_v45 = vsel %vm522_vm0, %v325_v42, 0  ;;  %v288_v41 = vld [vmem:[%s9899_s1 + $0x30] sm:$0xff] }
  0x1b   : > { %6348 = vmatprep.subr.bf16.mxu0 %v7132_v20  ;;  %10256 = vst [vmem:[#allocation5_spill] sm:$0xff] %v7154_v29  ;;  %v7172_v36 = vpack.c.bf16 %v9923_v33, %v9924_v32  ;;  %v9920_v46 = vand.u32 4294901760, %v7193_v44  ;;  %v9916_v47 = vand.u32 4294901760, %v7196_v45  ;;  %v7211_v51 = vsel %vm522_vm0, %v326_v48, 0  ;;  %v289_v48 = vld [vmem:[%s9899_s1 + $0x38] sm:$0xff] }
  0x1c   : > { %v7190_v43 = vpack.c.bf16 %v9921_v40, %v9922_v39  ;;  %v7214_v52 = vsel %vm522_vm0, %v327_v49, 0  ;;  %v9912_v54 = vand.u32 4294901760, %v7211_v51  ;;  %v7236_v62 = vsub.f32 %v7107_v7, %v668_v12 }
  0x1d   : > { %10257 = vst [vmem:[#allocation6_spill] sm:$0xff] %v7172_v36  ;;  %v7208_v50 = vpack.c.bf16 %v9916_v47, %v9920_v46  ;;  %v9911_v55 = vand.u32 4294901760, %v7214_v52  ;;  %v7239_v63 = vsub.f32 %v7110_v8, %v671_v13  ;;  %v536_v5 = vsel %vm522_vm0, %v286_v58, 0 }
  0x1e   : > { %10258 = vst [vmem:[#allocation7_spill] sm:$0xff] %v7190_v43  ;;  %10260 = vst [vmem:[#allocation9_spill] sm:$0xff] %v7236_v62  ;;  %v7254_v7 = vsel %vm522_vm0, %v328_v59, 0  ;;  %v7257_v8 = vsel %vm522_vm0, %v329_v60, 0  ;;  %v7259_v9 = vand.u32 4294901760, %v527_v61  ;;  %v7261_v12 = vand.u32 4294901760, %v530_v0 }
  0x1f   : > { %10259 = vst [vmem:[#allocation8_spill] sm:$0xff] %v7208_v50  ;;  %10261 = vst [vmem:[#allocation10_spill] sm:$0xff] %v7239_v63  ;;  %v7247_v4 = vpack.c.bf16 %v9911_v55, %v9912_v54  ;;  %v7263_v13 = vand.u32 4294901760, %v533_v1  ;;  %v9908_v16 = vand.u32 4294901760, %v7236_v62  ;;  %v9907_v17 = vand.u32 4294901760, %v7239_v63 }
  0x20   : > { %v7268_v23 = vand.u32 4294901760, %v536_v5  ;;  %v539_v26 = vsel %vm522_vm0, %v287_v6, 0  ;;  %v9910_v27 = vand.u32 4294901760, %v7254_v7  ;;  %v9909_v28 = vand.u32 4294901760, %v7257_v8 }
  0x21   : > { %10262 = vst [vmem:[#allocation11_spill] sm:$0xff] %v7247_v4  ;;  %v7277_v34 = vsub.f32 %v7114_v10, %v674_v15  ;;  %v7282_v35 = vsub.f32 %v7120_v14, %v677_v18  ;;  %v7288_v42 = vsub.f32 %v527_v61, %v7259_v9  ;;  %v7294_v49 = vsub.f32 %v530_v0, %v7261_v12  ;;  %v290_v14 = vld [vmem:[%s9899_s1 + $0x40] sm:$0xff] }
  0x22   : > { %6350 = vmatpush3.bf16.xpose.msra.mxu0 %v7132_v20  ;;  %v7297_v10 = vsub.f32 %v533_v1, %v7263_v13  ;;  %v7299_v15 = vand.u32 4294901760, %v539_v26  ;;  %v1072_v18 = vsub.f32 %v7236_v62, %v9908_v16  ;;  %v1079_v53 = vsub.f32 %v7239_v63, %v9907_v17  ;;  %v291_v17 = vld [vmem:[%s9899_s1 + $0x48] sm:$0xff] }
  0x23   : > { %6352 = vmatprep.subr.bf16.mxu0 %v7154_v29  ;;  %10263 = vst [vmem:[#allocation12_spill] sm:$0xff] %v7277_v34  ;;  %10264 = vst [vmem:[#allocation13_spill] sm:$0xff] %v7282_v35  ;;  %v7311_v56 = vsub.f32 %v536_v5, %v7268_v23  ;;  %v542_v57 = vsel %vm522_vm0, %v288_v41, 0  ;;  %v7318_v58 = vpack.c.bf16 %v9909_v28, %v9910_v27  ;;  %v9913_v59 = vand.u32 4294901760, %v7277_v34 }
  0x24   : > { %10265 = vst [vmem:[#allocation14_spill] sm:$0xff] %v7288_v42  ;;  %10266 = vst [vmem:[#allocation15_spill] sm:$0xff] %v7294_v49  ;;  %v9914_v60 = vand.u32 4294901760, %v7282_v35  ;;  %v545_v61 = vsel %vm522_vm0, %v289_v48, 0  ;;  %v9915_v0 = vand.u32 4294901760, %v7288_v42  ;;  %v548_v1 = vsel %vm522_vm0, %v290_v14, 0 }
  0x25   : > { %10267 = vst [vmem:[#allocation16_spill] sm:$0xff] %v7297_v10  ;;  %10268 = vst [vmem:[#allocation17_spill] sm:$0xff] %v7311_v56  ;;  %v9919_v5 = vand.u32 4294901760, %v7294_v49  ;;  %v9917_v6 = vand.u32 4294901760, %v7297_v10  ;;  %v7328_v41 = vsub.f32 %v539_v26, %v7299_v15  ;;  %v7330_v11 = vand.u32 4294901760, %v542_v57 }
  0x26   : > { %10269 = vst [vmem:[#allocation18_spill] sm:$0xff] %v7318_v58  ;;  %v1073_v48 = vand.u32 4294901760, %v1072_v18  ;;  %v1080_v16 = vand.u32 4294901760, %v1079_v53  ;;  %v9918_v28 = vand.u32 4294901760, %v7311_v56  ;;  %v7337_v14 = vand.u32 4294901760, %v545_v61 }
  0x27   : > { %10270 = vst [vmem:[#allocation19_spill] sm:$0xff] %v7328_v41  ;;  %v1086_v26 = vsub.f32 %v7277_v34, %v9913_v59  ;;  %v1093_v27 = vsub.f32 %v7282_v35, %v9914_v60  ;;  %v7346_v55 = vand.u32 4294901760, %v548_v1  ;;  %v761_v18 = vsub.f32 %v7288_v42, %v9915_v0 }
  0x28   : > { %v551_v53 = vsel %vm522_vm0, %v291_v17, 0  ;;  %v7355_v54 = vsub.f32 %v7135_v21, %v680_v24  ;;  %v7360_v59 = vsub.f32 %v7138_v22, %v683_v25  ;;  %v771_v60 = vsub.f32 %v7294_v49, %v9919_v5  ;;  %v292_v25 = vld [vmem:[%s9899_s1 + $0x50] sm:$0xff] }
  0x29   : > { %v7368_v0 = vsub.f32 %v7297_v10, %v9917_v6  ;;  %v7371_v17 = vsub.f32 %v542_v57, %v7330_v11  ;;  %v6375_v47 = vpack.c.bf16 %v1080_v16, %v1073_v48  ;;  %v7376_v21 = vsub.f32 %v7311_v56, %v9918_v28  ;;  %v293_v57 = vld [vmem:[%s9899_s1 + $0x58] sm:$0xff] }
  0x2a   : > { %6354 = vmatpush3.bf16.xpose.msra.mxu0 %v7154_v29  ;;  %10271 = vst [vmem:[#allocation20_spill] sm:$0xff] %v7355_v54  ;;  %10272 = vst [vmem:[#allocation21_spill] sm:$0xff] %v7360_v59  ;;  %v9925_v22 = vand.u32 4294901760, %v7328_v41  ;;  %v7380_v24 = vsub.f32 %v545_v61, %v7337_v14  ;;  %v1087_v6 = vand.u32 4294901760, %v1086_v26  ;;  %v1094_v16 = vand.u32 4294901760, %v1093_v27  ;;  %v294_v61 = vld [vmem:[%s9899_s1 + $0x60] sm:$0xff] }
  0x2b   : > { %6356 = vmatprep.subr.bf16.mxu0 %v7172_v36  ;;  %10273 = vst [vmem:[#allocation22_spill] sm:$0xff] %v7371_v17  ;;  %v7389_v48 = vsub.f32 %v548_v1, %v7346_v55  ;;  %v7391_v28 = vand.u32 4294901760, %v551_v53  ;;  %v762_v5 = vand.u32 4294901760, %v761_v18  ;;  %v9928_v46 = vand.u32 4294901760, %v7355_v54 }
  0x2c   : > { %10274 = vst [vmem:[#allocation23_spill] sm:$0xff] %v7380_v24  ;;  %v772_v39 = vand.u32 4294901760, %v771_v60  ;;  %v782_v33 = vand.u32 4294901760, %v7368_v0  ;;  %v554_v26 = vsel %vm522_vm0, %v292_v25, 0  ;;  %v557_v27 = vsel %vm522_vm0, %v293_v57, 0 }
  0x2d   : > { %10275 = vst [vmem:[#allocation24_spill] sm:$0xff] %v7389_v48  ;;  %v792_v1 = vand.u32 4294901760, %v7376_v21  ;;  %v7406_v32 = vsub.f32 %v7328_v41, %v9925_v22  ;;  %v560_v40 = vsel %vm522_vm0, %v294_v61, 0  ;;  %v7410_v60 = vpack.c.bf16 %v1094_v16, %v1087_v6 }
  0x2e   : > { %v7415_v57 = vsub.f32 %v551_v53, %v7391_v28  ;;  %v1100_v21 = vsub.f32 %v7355_v54, %v9928_v46  ;;  %v10277_v22 = vand.u32 4294901760, %v7360_v59  ;;  %v7425_v61 = vand.u32 4294901760, %v557_v27 }
  0x2f   : > { %v7427_v6 = vand.u32 4294901760, %v560_v40  ;;  %v10278_v16 = vand.u32 4294901760, %v7157_v30  ;;  %v10280_v53 = vand.u32 4294901760, %v7160_v31  ;;  %v7441_v46 = vpack.c.bf16 %v7239_v63, %v7236_v62 }
  0x30   : > { %10276 = vst [vmem:[#allocation25_spill] sm:$0xff] %v7415_v57  ;;  %v1107_v18 = vsub.f32 %v7360_v59, %v10277_v22  ;;  %v295_v22 = vld [vmem:[%s9899_s1 + $0x68] sm:$0xff]  ;;  %v10288_v63 = vand.u32 4294901760, %v7196_v45  ;;  %v7537_v29 = vsub.f32 %v557_v27, %v7425_v61 }
  0x31   : > { %v7432_v25 = vsub.f32 %v7157_v30, %v10278_v16  ;;  %v7437_v0 = vsub.f32 %v7160_v31, %v10280_v53  ;;  %v10284_v30 = vand.u32 4294901760, %v7178_v38  ;;  %v10286_v31 = vand.u32 4294901760, %v7193_v44 }
  0x32   : > { %6358 = vmatpush3.bf16.xpose.msra.mxu0 %v7172_v36  ;;  %v7464_v62 = vsub.f32 %v7196_v45, %v10288_v63  ;;  %v296_v45 = vld [vmem:[%s9899_s1 + $0x70] sm:$0xff]  ;;  %10300 = vst [vmem:[#allocation36_spill] sm:$0xff] %v7537_v29 }
  0x33   : > { %6360 = vmatprep.subr.bf16.mxu0 %v7190_v43  ;;  %10279 = vst [vmem:[#allocation26_spill] sm:$0xff] %v7432_v25  ;;  %10281 = vst [vmem:[#allocation27_spill] sm:$0xff] %v7437_v0  ;;  %v7454_v16 = vsub.f32 %v7178_v38, %v10284_v30  ;;  %v7459_v53 = vsub.f32 %v7193_v44, %v10286_v31  ;;  %v10294_v30 = vand.u32 4294901760, %v7254_v7  ;;  %v10305_v10 = vand.u32 4294901760, %v7437_v0 }
  0x34   : > { %10289 = vst [vmem:[#allocation31_spill] sm:$0xff] %v7464_v62  ;;  %v7483_v31 = vpack.c.bf16 %v7282_v35, %v7277_v34  ;;  %v7499_v63 = vpack.c.bf16 %v7437_v0, %v7432_v25  ;;  %v566_v34 = vsel %vm522_vm0, %v296_v45, 0 }
  0x35   : > { %10285 = vst [vmem:[#allocation29_spill] sm:$0xff] %v7454_v16  ;;  %10287 = vst [vmem:[#allocation30_spill] sm:$0xff] %v7459_v53  ;;  %v7479_v44 = vsub.f32 %v7254_v7, %v10294_v30  ;;  %v563_v30 = vsel %vm522_vm0, %v295_v22, 0  ;;  %v297_v22 = vld [vmem:[%s9899_s1 + $0x78] sm:$0xff]  ;;  %v7555_v56 = vand.u32 4294901760, %v566_v34 }
  0x36   : > { %v569_v36 = vsel %vm522_vm0, %v297_v22, 0 }
  0x37   : > { %10304 = vst [vmem:[#allocation38_spill] sm:$0xff] %v7555_v56  ;;  %v7582_v22 = vsub.f32 %v566_v34, %v7555_v56  ;;  %v302_v34 = vld [vmem:[%s9899_s1 + $0xa0] sm:$0xff] }
  0x39   : > { %10310 = vst [vmem:[#allocation41_spill] sm:$0xff] %v7582_v22 }
  0x3a   : > { %6362 = vmatpush3.bf16.xpose.msra.mxu0 %v7190_v43  ;;  %v10290_v43 = vand.u32 4294901760, %v7211_v51 }
  0x3b   : > { %6364 = vmatprep.subr.bf16.mxu0 %v7208_v50 }
  0x42   : > { %6366 = vmatpush3.bf16.xpose.msra.mxu0 %v7208_v50 }
  0x43   : > { %6368 = vmatprep.subr.bf16.mxu0 %v7247_v4 }
  0x4a   : > { %6370 = vmatpush3.bf16.xpose.msra.mxu0 %v7247_v4  ;;  %v10282_v4 = vand.u32 4294901760, %v7175_v37 }
  0x4b   : > { %6372 = vmatprep.subr.bf16.mxu0 %v7318_v58 }
  0x4c   : > { %v7449_v50 = vsub.f32 %v7175_v37, %v10282_v4  ;;  %v7469_v37 = vsub.f32 %v7211_v51, %v10290_v43  ;;  %v10292_v4 = vand.u32 4294901760, %v7214_v52  ;;  %v10295_v43 = vand.u32 4294901760, %v7257_v8 }
  0x4e   : > { %10283 = vst [vmem:[#allocation28_spill] sm:$0xff] %v7449_v50  ;;  %10291 = vst [vmem:[#allocation32_spill] sm:$0xff] %v7469_v37  ;;  %v7474_v38 = vsub.f32 %v7214_v52, %v10292_v4  ;;  %v7491_v51 = vsub.f32 %v7257_v8, %v10295_v43  ;;  %v7495_v52 = vpack.c.bf16 %v7360_v59, %v7355_v54  ;;  %v802_v59 = vand.u32 4294901760, %v7406_v32 }
  0x4f   : > { %v7503_v7 = vpack.c.bf16 %v7454_v16, %v7449_v50  ;;  %v7511_v8 = vpack.c.bf16 %v7464_v62, %v7459_v53  ;;  %v10297_v54 = vand.u32 4294901760, %v7371_v17 }
  0x50   : > { %10293 = vst [vmem:[#allocation33_spill] sm:$0xff] %v7474_v38  ;;  %v7515_v43 = vpack.c.bf16 %v7474_v38, %v7469_v37  ;;  %v7527_v35 = vpack.c.bf16 %v7491_v51, %v7479_v44 }
  0x52   : > { %6374 = vmatpush3.bf16.xpose.msra.mxu0 %v7318_v58  ;;  %v7423_v58 = vand.u32 4294901760, %v554_v26  ;;  %10298 = vst [vmem:[#allocation35_spill] sm:$0xff] %v7527_v35 }
  0x53   : > { %6376 = vmatprep.subr.bf16.mxu0 %v6375_v47 }
  0x54   : > { %v7506_v4 = vsub.f32 %v554_v26, %v7423_v58 }
  0x56   : > { %10296 = vst [vmem:[#allocation34_spill] sm:$0xff] %v7506_v4 }
  0x59   : > { %5896 = vmatmul.mubr.f32.vlgmr.msra.gmra.mrb[0].mxu0 %v762_v5  ;;  %v811_v5 = vsub.f32 %v7371_v17, %v10297_v54  ;;  %v10299_v54 = vand.u32 4294901760, %v7380_v24  ;;  %v7539_v17 = vand.u32 4294901760, %v563_v30 }
  0x5a   : > { %6378 = vmatpush3.bf16.xpose.msra.mxu0 %v6375_v47  ;;  %5898 = vmatprep.mubr.f32.mxu0 %v772_v39  ;;  %v1101_v47 = vand.u32 4294901760, %v1100_v21  ;;  %v1108_v39 = vand.u32 4294901760, %v1107_v18  ;;  %v298_v21 = vld [vmem:[%s9899_s1 + $0x80] sm:$0xff]  ;;  %v10301_v18 = vand.u32 4294901760, %v7389_v48 }
  0x5b   : > { %6380 = vmatprep.subr.bf16.mxu0 %v7410_v60  ;;  %v821_v26 = vsub.f32 %v7380_v24, %v10299_v54  ;;  %v7549_v54 = vsub.f32 %v560_v40, %v7427_v6  ;;  %v812_v27 = vand.u32 4294901760, %v811_v5  ;;  %v10303_v24 = vand.u32 4294901760, %v7432_v25  ;;  %v299_v40 = vld [vmem:[%s9899_s1 + $0x88] sm:$0xff] }
  0x5c   : > { %v831_v45 = vsub.f32 %v7389_v48, %v10301_v18  ;;  %v1121_v18 = vsub.f32 %v7437_v0, %v10305_v10  ;;  %v572_v32 = vsel %vm522_vm0, %v298_v21, 0  ;;  %v300_v10 = vld [vmem:[%s9899_s1 + $0x90] sm:$0xff]  ;;  %v10309_v0 = vand.u32 4294901760, %v7506_v4 }
  0x5d   : > { %5899 = vmatmul.mubr.f32.gmra.mrb[2].mxu0 %v782_v33  ;;  %10302 = vst [vmem:[#allocation37_spill] sm:$0xff] %v7549_v54  ;;  %v1114_v41 = vsub.f32 %v7432_v25, %v10303_v24  ;;  %v6383_v33 = vpack.c.bf16 %v1108_v39, %v1101_v47  ;;  %v7569_v24 = vsub.f32 %v563_v30, %v7539_v17  ;;  %v7571_v47 = vand.u32 4294901760, %v569_v36 }
  0x5e   : > { %5901 = vmatprep.mubr.f32.mxu0 %v792_v1  ;;  %v10306_v1 = vand.u32 4294901760, %v7415_v57  ;;  %v822_v39 = vand.u32 4294901760, %v821_v26  ;;  %v832_v21 = vand.u32 4294901760, %v831_v45  ;;  %v851_v25 = vsub.f32 %v7506_v4, %v10309_v0 }
  0x5f   : > { %10307 = vst [vmem:[#allocation39_spill] sm:$0xff] %v7569_v24  ;;  %10308 = vst [vmem:[#allocation40_spill] sm:$0xff] %v7571_v47  ;;  %v1115_v30 = vand.u32 4294901760, %v1114_v41  ;;  %v575_v48 = vsel %vm522_vm0, %v299_v40, 0  ;;  %v1122_v26 = vand.u32 4294901760, %v1121_v18  ;;  %v7601_v4 = vsub.f32 %v569_v36, %v7571_v47 }
  0x60   : > { %v841_v5 = vsub.f32 %v7415_v57, %v10306_v1  ;;  %v7584_v57 = vand.u32 4294901760, %v572_v32  ;;  %v852_v18 = vand.u32 4294901760, %v851_v25  ;;  %v10314_v45 = vand.u32 4294901760, %v7549_v54  ;;  %v303_v25 = vld [vmem:[%s9899_s1 + $0xa8] sm:$0xff] }
  0x61   : > { %5902 = vmatmul.mubr.f32.gmra.mrb[4].mxu0 %v802_v59  ;;  %v301_v59 = vld [vmem:[%s9899_s1 + $0x98] sm:$0xff]  ;;  %10313 = vst [vmem:[#allocation43_spill] sm:$0xff] %v7601_v4  ;;  %v7606_v0 = vand.u32 4294901760, %v575_v48  ;;  %v584_v36 = vsel %vm522_vm0, %v302_v34, 0  ;;  %v10320_v34 = vand.u32 4294901760, %v7569_v24 }
  0x62   : > { %6382 = vmatpush3.bf16.xpose.msra.mxu0 %v7410_v60  ;;  %5904 = vmatprep.mubr.f32.mxu0 %v812_v27  ;;  %10311 = vst [vmem:[#allocation42_spill] sm:$0xff] %v7584_v57  ;;  %v578_v60 = vsel %vm522_vm0, %v300_v10, 0  ;;  %v842_v41 = vand.u32 4294901760, %v841_v5  ;;  %v10312_v27 = vand.u32 4294901760, %v7537_v29  ;;  %v871_v10 = vsub.f32 %v7549_v54, %v10314_v45 }
  0x63   : > { %6384 = vmatprep.subr.bf16.mxu0 %v6383_v33  ;;  %10315 = vst [vmem:[#allocation44_spill] sm:$0xff] %v7606_v0  ;;  %v581_v20 = vsel %vm522_vm0, %v301_v59, 0  ;;  %v7613_v1 = vand.u32 4294901760, %v578_v60  ;;  %v6387_v45 = vpack.c.bf16 %v1122_v26, %v1115_v30  ;;  %v7635_v30 = vsub.f32 %v575_v48, %v7606_v0  ;;  %v305_v48 = vld [vmem:[%s9899_s1 + $0xb8] sm:$0xff] }
  0x64   : > { %v861_v40 = vsub.f32 %v7537_v29, %v10312_v27  ;;  %v7611_v27 = vsub.f32 %v572_v32, %v7584_v57  ;;  %v10319_v32 = vand.u32 4294901760, %v7454_v16  ;;  %v881_v29 = vsub.f32 %v7569_v24, %v10320_v34 }
  0x65   : > { %5905 = vmatmul.mubr.f32.gmra.mrb[6].mxu0 %v822_v39  ;;  %10317 = vst [vmem:[#allocation46_spill] sm:$0xff] %v7613_v1  ;;  %v304_v39 = vld [vmem:[%s9899_s1 + $0xb0] sm:$0xff]  ;;  %v7632_v42 = vand.u32 4294901760, %v581_v20  ;;  %10322 = vst [vmem:[#allocation48_spill] sm:$0xff] %v7635_v30  ;;  %v7637_v26 = vand.u32 4294901760, %v584_v36 }
  0x66   : > { %5907 = vmatprep.mubr.f32.mxu0 %v832_v21  ;;  %10316 = vst [vmem:[#allocation45_spill] sm:$0xff] %v7611_v27  ;;  %v10318_v21 = vand.u32 4294901760, %v7449_v50  ;;  %v1135_v5 = vsub.f32 %v7454_v16, %v10319_v32  ;;  %v862_v54 = vand.u32 4294901760, %v861_v40  ;;  %v872_v40 = vand.u32 4294901760, %v871_v10  ;;  %v306_v10 = vld [vmem:[%s9899_s1 + $0xc0] sm:$0xff] }
  0x67   : > { %10321 = vst [vmem:[#allocation47_spill] sm:$0xff] %v7632_v42  ;;  %10323 = vst [vmem:[#allocation49_spill] sm:$0xff] %v7637_v26  ;;  %v10324_v32 = vand.u32 4294901760, %v7582_v22 }
  0x68   : > { %v1128_v59 = vsub.f32 %v7449_v50, %v10318_v21  ;;  %v587_v21 = vsel %vm522_vm0, %v303_v25, 0  ;;  %v590_v50 = vsel %vm522_vm0, %v304_v39, 0  ;;  %v1136_v16 = vand.u32 4294901760, %v1135_v5 }
  0x69   : > { %5908 = vmatmul.mubr.f32.gmra.mrb[8].mxu0 %v842_v41  ;;  %v891_v34 = vsub.f32 %v7582_v22, %v10324_v32  ;;  %v7646_v41 = vsub.f32 %v578_v60, %v7613_v1  ;;  %v882_v39 = vand.u32 4294901760, %v881_v29  ;;  %v7657_v32 = vsub.f32 %v581_v20, %v7632_v42 }
  0x6a   : > { %6386 = vmatpush3.bf16.xpose.msra.mxu0 %v6383_v33  ;;  %5910 = vmatprep.mubr.f32.mxu0 %v852_v18  ;;  %v1129_v25 = vand.u32 4294901760, %v1128_v59  ;;  %v7659_v60 = vand.u32 4294901760, %v587_v21  ;;  %v7661_v49 = vand.u32 4294901760, %v590_v50  ;;  %v10329_v59 = vand.u32 4294901760, %v7601_v4 }
  0x6b   : > { %10325 = vst [vmem:[#allocation50_spill] sm:$0xff] %v7646_v41  ;;  %6388 = vmatprep.subr.bf16.mxu0 %v6387_v45  ;;  %10326 = vst [vmem:[#allocation51_spill] sm:$0xff] %v7657_v32  ;;  %v7668_v18 = vsub.f32 %v584_v36, %v7637_v26  ;;  %v593_v22 = vsel %vm522_vm0, %v305_v48, 0  ;;  %v892_v29 = vand.u32 4294901760, %v891_v34  ;;  %v10331_v20 = vand.u32 4294901760, %v7611_v27 }
  0x6c   : > { %10327 = vst [vmem:[#allocation52_spill] sm:$0xff] %v7659_v60  ;;  %10328 = vst [vmem:[#allocation53_spill] sm:$0xff] %v7661_v49  ;;  %v901_v5 = vsub.f32 %v7601_v4, %v10329_v59  ;;  %v6391_v19 = vpack.c.bf16 %v1136_v16, %v1129_v25  ;;  %v10332_v59 = vand.u32 4294901760, %v7459_v53  ;;  %v10333_v36 = vand.u32 4294901760, %v7464_v62  ;;  %v308_v25 = vld [vmem:[%s9899_s1 + $0xd0] sm:$0xff] }
  0x6d   : > { %5911 = vmatmul.mubr.f32.gmra.mrb[10].mxu0 %v862_v54  ;;  %10330 = vst [vmem:[#allocation54_spill] sm:$0xff] %v7668_v18  ;;  %v911_v24 = vsub.f32 %v7611_v27, %v10331_v20  ;;  %v596_v54 = vsel %vm522_vm0, %v306_v10, 0  ;;  %v7687_v48 = vsub.f32 %v587_v21, %v7659_v60  ;;  %v7690_v10 = vsub.f32 %v590_v50, %v7661_v49 }
  0x6e   : > { %5913 = vmatprep.mubr.f32.mxu0 %v872_v40  ;;  %v1142_v33 = vsub.f32 %v7459_v53, %v10332_v59  ;;  %v1149_v4 = vsub.f32 %v7464_v62, %v10333_v36  ;;  %v307_v40 = vld [vmem:[%s9899_s1 + $0xc8] sm:$0xff]  ;;  %v7692_v16 = vand.u32 4294901760, %v593_v22  ;;  %v902_v20 = vand.u32 4294901760, %v901_v5 }
  0x6f   : > { %10334 = vst [vmem:[#allocation55_spill] sm:$0xff] %v7687_v48  ;;  %10335 = vst [vmem:[#allocation56_spill] sm:$0xff] %v7690_v10  ;;  %v10337_v59 = vand.u32 4294901760, %v7635_v30  ;;  %v7701_v3 = vand.u32 4294901760, %v596_v54  ;;  %v912_v50 = vand.u32 4294901760, %v911_v24  ;;  %v10339_v21 = vand.u32 4294901760, %v7646_v41 }
  0x70   : > { %10336 = vst [vmem:[#allocation57_spill] sm:$0xff] %v7692_v16  ;;  %v599_v53 = vsel %vm522_vm0, %v307_v40, 0  ;;  %v1143_v5 = vand.u32 4294901760, %v1142_v33  ;;  %v1150_v27 = vand.u32 4294901760, %v1149_v4  ;;  %v602_v34 = vsel %vm522_vm0, %v308_v25, 0  ;;  %v310_v4 = vld [vmem:[%s9899_s1 + $0xe0] sm:$0xff] }
  0x71   : > { %5914 = vmatmul.mubr.f32.gmra.mrb[12].mxu0 %v882_v39  ;;  %v921_v36 = vsub.f32 %v7635_v30, %v10337_v59  ;;  %10338 = vst [vmem:[#allocation58_spill] sm:$0xff] %v7701_v3  ;;  %v931_v62 = vsub.f32 %v7646_v41, %v10339_v21  ;;  %v10340_v24 = vand.u32 4294901760, %v7657_v32  ;;  %v7719_v39 = vsub.f32 %v593_v22, %v7692_v16 }
  0x72   : > { %6390 = vmatpush3.bf16.xpose.msra.mxu0 %v6387_v45  ;;  %5916 = vmatprep.mubr.f32.mxu0 %v892_v29  ;;  %v309_v45 = vld [vmem:[%s9899_s1 + $0xd8] sm:$0xff]  ;;  %v10342_v25 = vand.u32 4294901760, %v7668_v18  ;;  %v7728_v41 = vsub.f32 %v596_v54, %v7701_v3  ;;  %v10345_v22 = vand.u32 4294901760, %v7469_v37  ;;  %v10347_v30 = vand.u32 4294901760, %v7474_v38 }
  0x73   : > { %6392 = vmatprep.subr.bf16.mxu0 %v6391_v19  ;;  %v941_v29 = vsub.f32 %v7657_v32, %v10340_v24  ;;  %10341 = vst [vmem:[#allocation59_spill] sm:$0xff] %v7719_v39  ;;  %v922_v33 = vand.u32 4294901760, %v921_v36  ;;  %v7730_v24 = vand.u32 4294901760, %v599_v53  ;;  %v932_v40 = vand.u32 4294901760, %v931_v62 }
  0x74   : > { %v951_v59 = vsub.f32 %v7668_v18, %v10342_v25  ;;  %10343 = vst [vmem:[#allocation60_spill] sm:$0xff] %v7728_v41  ;;  %v1156_v21 = vsub.f32 %v7469_v37, %v10345_v22  ;;  %v7735_v32 = vand.u32 4294901760, %v602_v34  ;;  %v6395_v36 = vpack.c.bf16 %v1150_v27, %v1143_v5 }
  0x75   : > { %5917 = vmatmul.mubr.f32.gmra.mrb[14].mxu0 %v902_v20  ;;  %10344 = vst [vmem:[#allocation61_spill] sm:$0xff] %v7730_v24  ;;  %v605_v20 = vsel %vm522_vm0, %v309_v45, 0  ;;  %v1163_v25 = vsub.f32 %v7474_v38, %v10347_v30  ;;  %v608_v54 = vsel %vm522_vm0, %v310_v4, 0  ;;  %v942_v62 = vand.u32 4294901760, %v941_v29  ;;  %v312_v30 = vld [vmem:[%s9899_s1 + $0xf0] sm:$0xff] }
  0x76   : > { %5919 = vmatprep.mubr.f32.mxu0 %v912_v50  ;;  %10346 = vst [vmem:[#allocation62_spill] sm:$0xff] %v7735_v32  ;;  %v311_v50 = vld [vmem:[%s9899_s1 + $0xe8] sm:$0xff]  ;;  %v10348_v18 = vand.u32 4294901760, %v7687_v48  ;;  %v10349_v37 = vand.u32 4294901760, %v7690_v10  ;;  %v952_v5 = vand.u32 4294901760, %v951_v59  ;;  %v7757_v29 = vsub.f32 %v599_v53, %v7730_v24 }
  0x77   : > { %v7759_v38 = vand.u32 4294901760, %v605_v20  ;;  %v7764_v27 = vand.u32 4294901760, %v608_v54  ;;  %v614_v53 = vsel %vm522_vm0, %v312_v30, 0 }
  0x78   : > { %v961_v22 = vsub.f32 %v7687_v48, %v10348_v18  ;;  %v971_v45 = vsub.f32 %v7690_v10, %v10349_v37  ;;  %v1157_v18 = vand.u32 4294901760, %v1156_v21  ;;  %v7762_v37 = vsub.f32 %v602_v34, %v7735_v32 }
  0x79   : > { %5920 = vmatmul.mubr.f32.gmra.mrb[16].mxu0 %v922_v33  ;;  %10350 = vst [vmem:[#allocation63_spill] sm:$0xff] %v7759_v38  ;;  %10351 = vst [vmem:[#allocation64_spill] sm:$0xff] %v7764_v27  ;;  %v611_v10 = vsel %vm522_vm0, %v311_v50, 0  ;;  %v1164_v33 = vand.u32 4294901760, %v1163_v25  ;;  %v10352_v34 = vand.u32 4294901760, %v7719_v39  ;;  %v10353_v50 = vand.u32 4294901760, %v7728_v41 }
  0x7a   : > { %6394 = vmatpush3.bf16.xpose.msra.mxu0 %v6391_v19  ;;  %5922 = vmatprep.mubr.f32.mxu0 %v932_v40  ;;  %v313_v19 = vld [vmem:[%s9899_s1 + $0xf8] sm:$0xff]  ;;  %v962_v21 = vand.u32 4294901760, %v961_v22  ;;  %v972_v40 = vand.u32 4294901760, %v971_v45  ;;  %v7781_v4 = vsub.f32 %v605_v20, %v7759_v38  ;;  %v7783_v30 = vand.u32 4294901760, %v611_v10 }
  0x7b   : > { %6396 = vmatprep.subr.bf16.mxu0 %v6395_v36  ;;  %v981_v48 = vsub.f32 %v7719_v39, %v10352_v34  ;;  %v991_v25 = vsub.f32 %v7728_v41, %v10353_v50  ;;  %v7787_v45 = vsub.f32 %v608_v54, %v7764_v27  ;;  %v7789_v35 = vand.u32 4294901760, %v614_v53 }
  0x7c   : > { %10354 = vst [vmem:[#allocation65_spill] sm:$0xff] %v7783_v30  ;;  %v6399_v34 = vpack.c.bf16 %v1164_v33, %v1157_v18  ;;  %v10356_v50 = vand.u32 4294901760, %v7479_v44  ;;  %v10357_v20 = vand.u32 4294901760, %v7491_v51  ;;  %v10010_v22 = vand.u32 4294901760, %v7781_v4 }
  0x7d   : > { %5923 = vmatmul.mubr.f32.gmra.mrb[18].mxu0 %v942_v62  ;;  %10355 = vst [vmem:[#allocation66_spill] sm:$0xff] %v7789_v35  ;;  %v617_v62 = vsel %vm522_vm0, %v313_v19, 0  ;;  %v982_v39 = vand.u32 4294901760, %v981_v48  ;;  %v7803_v27 = vsub.f32 %v611_v10, %v7783_v30  ;;  %v992_v33 = vand.u32 4294901760, %v991_v25 }
  0x7e   : > { %5925 = vmatprep.mubr.f32.mxu0 %v952_v5  ;;  %v1170_v59 = vsub.f32 %v7479_v44, %v10356_v50  ;;  %v1177_v41 = vsub.f32 %v7491_v51, %v10357_v20  ;;  %v10358_v5 = vand.u32 4294901760, %v7757_v29  ;;  %v7805_v18 = vand.u32 4294901760, %v617_v62 }
  0x7f   : > { %v10360_v19 = vand.u32 4294901760, %v7762_v37  ;;  %v10014_v48 = vand.u32 4294901760, %v7787_v45 }
  0x80   : > { %v1001_v54 = vsub.f32 %v7757_v29, %v10358_v5  ;;  %10359 = vst [vmem:[#allocation67_spill] sm:$0xff] %v7805_v18  ;;  %v1171_v20 = vand.u32 4294901760, %v1170_v59  ;;  %v1178_v5 = vand.u32 4294901760, %v1177_v41  ;;  %v7819_v25 = vsub.f32 %v617_v62, %v7805_v18 }
  0x81   : > { %5926 = vmatmul.mubr.f32.gmra.mrb[20].mxu0 %v962_v21  ;;  %v1011_v50 = vsub.f32 %v7762_v37, %v10360_v19  ;;  %v7812_v21 = vsub.f32 %v614_v53, %v7789_v35  ;;  %v1031_v53 = vsub.f32 %v7787_v45, %v10014_v48  ;;  %v347_v48 = vld [vmem:[%s9900_s2 + $0x88] sm:$0xff] }
  0x82   : > { %6398 = vmatpush3.bf16.xpose.msra.mxu0 %v6395_v36  ;;  %5928 = vmatprep.mubr.f32.mxu0 %v972_v40  ;;  %v1002_v10 = vand.u32 4294901760, %v1001_v54  ;;  %v1021_v36 = vsub.f32 %v7781_v4, %v10010_v22  ;;  %v10013_v40 = vand.u32 4294901760, %v7803_v27  ;;  %v6403_v41 = vpack.c.bf16 %v1178_v5, %v1171_v20 }
  0x83   : > { %6400 = vmatprep.subr.bf16.mxu0 %v6399_v34  ;;  %v1012_v19 = vand.u32 4294901760, %v1011_v50  ;;  %v10012_v59 = vand.u32 4294901760, %v7812_v21  ;;  %v10011_v22 = vand.u32 4294901760, %v7819_v25  ;;  %v1032_v62 = vand.u32 4294901760, %v1031_v53  ;;  %v10371_v53 = vld [vmem:[#allocation22_spill] sm:$0xff] }
  0x84   : > { %v1041_v54 = vsub.f32 %v7803_v27, %v10013_v40  ;;  %v10381_v40 = vld [vmem:[#allocation41_spill] sm:$0xff] }
  0x85   : > { %5929 = vmatmul.mubr.f32.gmra.mrb[22].mxu0 %v982_v39  ;;  %v1022_v39 = vand.u32 4294901760, %v1021_v36  ;;  %v1061_v20 = vsub.f32 %v7819_v25, %v10011_v22  ;;  %v10369_v36 = vld [vmem:[#allocation17_spill] sm:$0xff]  ;;  %v7035_v22 = vmov 0  }
  0x86   : > { %5931 = vmatprep.mubr.f32.mxu0 %v992_v33  ;;  %v1051_v33 = vsub.f32 %v7812_v21, %v10012_v59  ;;  %v1042_v50 = vand.u32 4294901760, %v1041_v54  ;;  %v10374_v54 = vld [vmem:[#allocation24_spill] sm:$0xff]  ;;  %6930 = vset.pattern.permute.xlu1 %v7035_v22  ;;  %v10380_v59 = vld [vmem:[#allocation39_spill] sm:$0xff] }
  0x87   : > { %6929 = vset.pattern.permute.xlu0 %v7035_v22  ;;  %v10383_v22 = vld [vmem:[#allocation43_spill] sm:$0xff] }
  0x88   : > { %v1052_v5 = vand.u32 4294901760, %v1051_v33  ;;  %v10376_v33 = vld [vmem:[#allocation34_spill] sm:$0xff] }
  0x89   : > { %5932 = vmatmul.mubr.f32.gmra.mrb[24].mxu0 %v1002_v10  ;;  %v1062_v10 = vand.u32 4294901760, %v1061_v20  ;;  %v10378_v20 = vld [vmem:[#allocation36_spill] sm:$0xff] }
  0x8a   : > { %6402 = vmatpush3.bf16.xpose.msra.mxu0 %v6399_v34  ;;  %5934 = vmatprep.mubr.f32.mxu0 %v1012_v19  ;;  %v10368_v34 = vld [vmem:[#allocation16_spill] sm:$0xff]  ;;  %v10370_v19 = vld [vmem:[#allocation19_spill] sm:$0xff] }
  0x8b   : > { %6404 = vmatprep.subr.bf16.mxu0 %v6403_v41 }
  0x8d   : > { %5935 = vmatmul.mubr.f32.gmra.mrb[26].mxu0 %v1022_v39  ;;  %v10373_v39 = vld [vmem:[#allocation23_spill] sm:$0xff] }
  0x8e   : > { %5937 = vmatprep.mubr.f32.mxu0 %v1032_v62  ;;  %v10375_v62 = vld [vmem:[#allocation25_spill] sm:$0xff] }
  0x91   : > { %5938 = vmatmul.mubr.f32.gmra.mrb[28].mxu0 %v1042_v50  ;;  %v10377_v50 = vld [vmem:[#allocation6_spill] sm:$0xff] }
  0x92   : > { %6406 = vmatpush3.bf16.xpose.msra.mxu0 %v6403_v41  ;;  %5940 = vmatprep.mubr.f32.mxu0 %v1052_v5  ;;  %v10372_v41 = vld [vmem:[#allocation5_spill] sm:$0xff]  ;;  %v346_v5 = vld [vmem:[%s9900_s2 + $0x80] sm:$0xff] }
  0x93   : > { %6408 = vmatprep.subr.bf16.mxu0 %v7441_v46  ;;  %444 = vperm.xlu0 %6929, %v346_v5   ;;  %v348_v5 = vld [vmem:[%s9900_s2 + $0x90] sm:$0xff] }
  0x95   : > { %5941 = vmatmul.mubr.f32.gmra.mrb[30].mxu0 %v1062_v10  ;;  %v330_v10 = vld [vmem:[%s9900_s2] sm:$0xff] }
  0x96   : > { %5975 = vmatprep.mubr.f32.mxu0 %v7088_v2  ;;  %364 = vperm.xlu1 %6930, %v330_v10   ;;  %v349_v10 = vld [vmem:[%s9900_s2 + $0x98] sm:$0xff] }
  0x97   : > { %449 = vperm.xlu0 %6929, %v347_v48   ;;  %v332_v48 = vld [vmem:[%s9900_s2 + $0x10] sm:$0xff] }
  0x99   : > { %5976 = vmatmul.mubr.f32.vlgmr.msra.gmra.mrb[0].mxu0 %v7259_v9 }
  0x9a   : > { %6410 = vmatpush3.bf16.xpose.msra.mxu0 %v7441_v46  ;;  %5978 = vmatprep.mubr.f32.mxu0 %v7261_v12  ;;  %v10361_v46 = vld [vmem:[#allocation35_spill] sm:$0xff] }
  0x9b   : > { %6412 = vmatprep.subr.bf16.mxu0 %v7483_v31  ;;  %454 = vperm.xlu0 %6929, %v348_v5   ;;  %v350_v5 = vld [vmem:[%s9900_s2 + $0xa0] sm:$0xff] }
  0x9d   : > { %5979 = vmatmul.mubr.f32.gmra.mrb[2].mxu0 %v7263_v13 }
  0x9e   : > { %5981 = vmatprep.mubr.f32.mxu0 %v7268_v23 }
  0x9f   : > { %374 = vperm.xlu0 %6929, %v332_v48   ;;  %v334_v48 = vld [vmem:[%s9900_s2 + $0x20] sm:$0xff] }
  0xa1   : > { %5982 = vmatmul.mubr.f32.gmra.mrb[4].mxu0 %v7299_v15 }
  0xa2   : > { %6414 = vmatpush3.bf16.xpose.msra.mxu0 %v7483_v31  ;;  %5984 = vmatprep.mubr.f32.mxu0 %v7330_v11  ;;  %v10362_v31 = vld [vmem:[#allocation64_spill] sm:$0xff] }
  0xa3   : > { %6416 = vmatprep.subr.bf16.mxu0 %v7495_v52  ;;  %464 = vperm.xlu0 %6929, %v350_v5   ;;  %v352_v5 = vld [vmem:[%s9900_s2 + $0xb0] sm:$0xff] }
  0xa5   : > { %5985 = vmatmul.mubr.f32.gmra.mrb[6].mxu0 %v7337_v14 }
  0xa6   : > { %5987 = vmatprep.mubr.f32.mxu0 %v7346_v55 }
  0xa7   : > { %384 = vperm.xlu0 %6929, %v334_v48   ;;  %v337_v48 = vld [vmem:[%s9900_s2 + $0x38] sm:$0xff] }
  0xa9   : > { %5988 = vmatmul.mubr.f32.gmra.mrb[8].mxu0 %v7391_v28 }
  0xaa   : > { %6418 = vmatpush3.bf16.xpose.msra.mxu0 %v7495_v52  ;;  %5990 = vmatprep.mubr.f32.mxu0 %v7423_v58  ;;  %v10363_v52 = vld [vmem:[#allocation3_spill] sm:$0xff] }
  0xab   : > { %6420 = vmatprep.subr.bf16.mxu0 %v7499_v63  ;;  %474 = vperm.xlu0 %6929, %v352_v5   ;;  %v355_v5 = vld [vmem:[%s9900_s2 + $0xc8] sm:$0xff] }
  0xad   : > { %5991 = vmatmul.mubr.f32.gmra.mrb[10].mxu0 %v7425_v61 }
  0xae   : > { %5993 = vmatprep.mubr.f32.mxu0 %v7427_v6 }
  0xb1   : > { %5994 = vmatmul.mubr.f32.gmra.mrb[12].mxu0 %v7539_v17 }
  0xb2   : > { %6422 = vmatpush3.bf16.xpose.msra.mxu0 %v7499_v63  ;;  %5996 = vmatprep.mubr.f32.mxu0 %v7555_v56  ;;  %v10364_v63 = vld [vmem:[#allocation2_spill] sm:$0xff]  ;;  %v341_v56 = vld [vmem:[%s9900_s2 + $0x58] sm:$0xff] }
  0xb3   : > { %6424 = vmatprep.subr.bf16.mxu0 %v7503_v7 }
  0xb5   : > { %5997 = vmatmul.mubr.f32.gmra.mrb[14].mxu0 %v7571_v47 }
  0xb6   : > { %5999 = vmatprep.mubr.f32.mxu0 %v7584_v57 }
  0xb9   : > { %6000 = vmatmul.mubr.f32.gmra.mrb[16].mxu0 %v7606_v0  ;;  %v10398_v0 = vld [vmem:[#allocation10_spill] sm:$0xff] }
  0xba   : > { %6426 = vmatpush3.bf16.xpose.msra.mxu0 %v7503_v7  ;;  %6002 = vmatprep.mubr.f32.mxu0 %v7613_v1  ;;  %v10365_v7 = vld [vmem:[#allocation14_spill] sm:$0xff]  ;;  %v10399_v57 = vand.u32 4294901760, %v10398_v0  ;;  %v10400_v0 = vand.u32 4294901760, %v10364_v63 }
  0xbb   : > { %6428 = vmatprep.subr.bf16.mxu0 %v7511_v8 }
  0xbd   : > { %6003 = vmatmul.mubr.f32.gmra.mrb[18].mxu0 %v7632_v42  ;;  %v10394_v42 = vld [vmem:[#allocation60_spill] sm:$0xff] }
  0xbe   : > { %6005 = vmatprep.mubr.f32.mxu0 %v7637_v26  ;;  %v353_v26 = vld [vmem:[%s9900_s2 + $0xb8] sm:$0xff] }
  0xc1   : > { %6006 = vmatmul.mubr.f32.gmra.mrb[20].mxu0 %v7659_v60  ;;  %v10392_v60 = vld [vmem:[#allocation11_spill] sm:$0xff] }
  0xc2   : > { %6430 = vmatpush3.bf16.xpose.msra.mxu0 %v7511_v8  ;;  %6008 = vmatprep.mubr.f32.mxu0 %v7661_v49  ;;  %v10366_v8 = vld [vmem:[#allocation15_spill] sm:$0xff] }
  0xc3   : > { %6432 = vmatprep.subr.bf16.mxu0 %v7515_v43  ;;  %v335_v49 = vld [vmem:[%s9900_s2 + $0x28] sm:$0xff] }
  0xc5   : > { %6009 = vmatmul.mubr.f32.gmra.mrb[22].mxu0 %v7692_v16  ;;  %v10390_v16 = vld [vmem:[#allocation55_spill] sm:$0xff] }
  0xc6   : > { %6011 = vmatprep.mubr.f32.mxu0 %v7701_v3  ;;  %v10389_v3 = vld [vmem:[#allocation54_spill] sm:$0xff] }
  0xc9   : > { %6012 = vmatmul.mubr.f32.gmra.mrb[24].mxu0 %v7730_v24  ;;  %v351_v24 = vld [vmem:[%s9900_s2 + $0xa8] sm:$0xff] }
  0xca   : > { %6434 = vmatpush3.bf16.xpose.msra.mxu0 %v7515_v43  ;;  %6014 = vmatprep.mubr.f32.mxu0 %v7735_v32  ;;  %v10367_v43 = vld [vmem:[#allocation4_spill] sm:$0xff] }
  0xcb   : > { %6436 = vmatprep.subr.bf16.mxu0 %v10361_v46  ;;  %v10387_v32 = vld [vmem:[#allocation8_spill] sm:$0xff] }
  0xcd   : > { %6015 = vmatmul.mubr.f32.gmra.mrb[26].mxu0 %v7759_v38  ;;  %v333_v38 = vld [vmem:[%s9900_s2 + $0x18] sm:$0xff] }
  0xce   : > { %6017 = vmatprep.mubr.f32.mxu0 %v10362_v31  ;;  %v10385_v31 = vld [vmem:[#allocation48_spill] sm:$0xff] }
  0xd1   : > { %6018 = vmatmul.mubr.f32.gmra.mrb[28].mxu0 %v7783_v30  ;;  %v10384_v30 = vld [vmem:[#allocation45_spill] sm:$0xff] }
  0xd2   : > { %6438 = vmatpush3.bf16.xpose.msra.mxu0 %v10361_v46  ;;  %6020 = vmatprep.mubr.f32.mxu0 %v7789_v35  ;;  %v10379_v46 = vld [vmem:[#allocation37_spill] sm:$0xff]  ;;  %v10382_v35 = vld [vmem:[#allocation7_spill] sm:$0xff] }
  0xd3   : > { %6440 = vmatprep.subr.bf16.mxu0 %v10363_v52 }
  0xd5   : > { %6021 = vmatmul.mubr.f32.gmra.mrb[30].mxu0 %v7805_v18  ;;  %v331_v18 = vld [vmem:[%s9900_s2 + $0x8] sm:$0xff] }
  0xd6   : > { %6055 = vmatprep.mubr.f32.mxu0 %v10364_v63  ;;  %369 = vperm.xlu1 %6930, %v331_v18   ;;  %v10386_v18 = vld [vmem:[#allocation50_spill] sm:$0xff]  ;;  %v10406_v63 = vand.u32 4294901760, %v10366_v8 }
  0xd9   : > { %6056 = vmatmul.mubr.f32.vlgmr.msra.gmra.mrb[0].mxu0 %v10365_v7 }
  0xda   : > { %6442 = vmatpush3.bf16.xpose.msra.mxu0 %v10363_v52  ;;  %6058 = vmatprep.mubr.f32.mxu0 %v10366_v8 }
  0xdb   : > { %6444 = vmatprep.subr.bf16.mxu0 %v10367_v43  ;;  %459 = vperm.xlu1 %6930, %v349_v10   ;;  %v10388_v10 = vld [vmem:[#allocation51_spill] sm:$0xff] }
  0xdd   : > { %6059 = vmatmul.mubr.f32.gmra.mrb[2].mxu0 %v10368_v34 }
  0xde   : > { %6061 = vmatprep.mubr.f32.mxu0 %v10369_v36 }
  0xdf   : > { %379 = vperm.xlu1 %6930, %v333_v38   ;;  %v10391_v38 = vld [vmem:[#allocation56_spill] sm:$0xff] }
  0xe1   : > { %6062 = vmatmul.mubr.f32.gmra.mrb[4].mxu0 %v10370_v19 }
  0xe2   : > { %6446 = vmatpush3.bf16.xpose.msra.mxu0 %v10367_v43  ;;  %6064 = vmatprep.mubr.f32.mxu0 %v10371_v53 }
  0xe3   : > { %6448 = vmatprep.subr.bf16.mxu0 %v10372_v41  ;;  %469 = vperm.xlu1 %6930, %v351_v24   ;;  %v10393_v24 = vld [vmem:[#allocation59_spill] sm:$0xff] }
  0xe5   : > { %6065 = vmatmul.mubr.f32.gmra.mrb[6].mxu0 %v10373_v39 }
  0xe6   : > { %6067 = vmatprep.mubr.f32.mxu0 %v10374_v54 }
  0xe7   : > { %389 = vperm.xlu1 %6930, %v335_v49   ;;  %v336_v49 = vld [vmem:[%s9900_s2 + $0x30] sm:$0xff] }
  0xe8   : > { %394 = vperm.xlu0 %6929, %v336_v49   ;;  %v338_v49 = vld [vmem:[%s9900_s2 + $0x40] sm:$0xff] }
  0xe9   : > { %6068 = vmatmul.mubr.f32.gmra.mrb[8].mxu0 %v10375_v62 }
  0xea   : > { %6450 = vmatpush3.bf16.xpose.msra.mxu0 %v10372_v41  ;;  %6070 = vmatprep.mubr.f32.mxu0 %v10376_v33 }
  0xeb   : > { %6452 = vmatprep.subr.bf16.mxu0 %v10377_v50  ;;  %479 = vperm.xlu1 %6930, %v353_v26   ;;  %v354_v26 = vld [vmem:[%s9900_s2 + $0xc0] sm:$0xff] }
  0xec   : > { %484 = vperm.xlu0 %6929, %v354_v26  }
  0xed   : > { %6071 = vmatmul.mubr.f32.gmra.mrb[10].mxu0 %v10378_v20 }
  0xee   : > { %6073 = vmatprep.mubr.f32.mxu0 %v10379_v46 }
  0xef   : > { %399 = vperm.xlu1 %6930, %v337_v48   ;;  %v339_v48 = vld [vmem:[%s9900_s2 + $0x48] sm:$0xff] }
  0xf0   : > { %404 = vperm.xlu0 %6929, %v338_v49   ;;  %v10405_v49 = vand.u32 4294901760, %v10365_v7  ;;  %v358_v7 = vld [vmem:[%s9900_s2 + $0xe0] sm:$0xff] }
  0xf1   : > { %6074 = vmatmul.mubr.f32.gmra.mrb[12].mxu0 %v10380_v59 }
  0xf2   : > { %6454 = vmatpush3.bf16.xpose.msra.mxu0 %v10377_v50  ;;  %6076 = vmatprep.mubr.f32.mxu0 %v10381_v40 }
  0xf3   : > { %6456 = vmatprep.subr.bf16.mxu0 %v10382_v35  ;;  %489 = vperm.xlu1 %6930, %v355_v5   ;;  %v10403_v5 = vld [vmem:[#allocation13_spill] sm:$0xff] }
  0xf5   : > { %6077 = vmatmul.mubr.f32.gmra.mrb[14].mxu0 %v10383_v22 }
  0xf6   : > { %6079 = vmatprep.mubr.f32.mxu0 %v10384_v30 }
  0xf7   : > { %409 = vperm.xlu1 %6930, %v339_v48   ;;  %v340_v48 = vld [vmem:[%s9900_s2 + $0x50] sm:$0xff] }
  0xf9   : > { %6080 = vmatmul.mubr.f32.gmra.mrb[16].mxu0 %v10385_v31 }
  0xfa   : > { %6458 = vmatpush3.bf16.xpose.msra.mxu0 %v10382_v35  ;;  %6082 = vmatprep.mubr.f32.mxu0 %v10386_v18 }
  0xfb   : > { %6460 = vmatprep.subr.bf16.mxu0 %v10387_v32 }
  0xfd   : > { %6083 = vmatmul.mubr.f32.gmra.mrb[18].mxu0 %v10388_v10 }
  0xfe   : > { %6085 = vmatprep.mubr.f32.mxu0 %v10389_v3 }
 0x101   : > { %6086 = vmatmul.mubr.f32.gmra.mrb[20].mxu0 %v10390_v16 }
 0x102   : > { %6462 = vmatpush3.bf16.xpose.msra.mxu0 %v10387_v32  ;;  %6088 = vmatprep.mubr.f32.mxu0 %v10391_v38  ;;  %v10395_v32 = vld [vmem:[#allocation18_spill] sm:$0xff] }
 0x103   : > { %6464 = vmatprep.subr.bf16.mxu0 %v10392_v60 }
 0x105   : > { %6089 = vmatmul.mubr.f32.gmra.mrb[22].mxu0 %v10393_v24 }
 0x106   : > { %6091 = vmatprep.mubr.f32.mxu0 %v10394_v42 }
 0x109   : > { %6092 = vmatmul.mubr.f32.gmra.mrb[24].mxu0 %v7757_v29 }
 0x10a   : > { %6466 = vmatpush3.bf16.xpose.msra.mxu0 %v10392_v60  ;;  %6094 = vmatprep.mubr.f32.mxu0 %v7762_v37  ;;  %v10396_v60 = vld [vmem:[#allocation9_spill] sm:$0xff] }
 0x10b   : > { %6468 = vmatprep.subr.bf16.mxu0 %v10395_v32  ;;  %v10397_v1 = vand.u32 4294901760, %v10396_v60  ;;  %v10401_v60 = vld [vmem:[#allocation12_spill] sm:$0xff] }
 0x10c   : > { %v10402_v26 = vand.u32 4294901760, %v10401_v60 }
 0x10d   : > { %6095 = vmatmul.mubr.f32.gmra.mrb[26].mxu0 %v7781_v4  ;;  %v6471_v47 = vpack.c.bf16 %v10399_v57, %v10397_v1  ;;  %v356_v57 = vld [vmem:[%s9900_s2 + $0xd0] sm:$0xff]  ;;  %v357_v1 = vld [vmem:[%s9900_s2 + $0xd8] sm:$0xff] }
 0x10e   : > { %6097 = vmatprep.mubr.f32.mxu0 %v7787_v45  ;;  %499 = vperm.xlu1 %6930, %v357_v1   ;;  %v10408_v1 = vand.u32 4294901760, %v10369_v36  ;;  %v10414_v36 = vand.u32 4294901760, %v10371_v53 }
 0x10f   : > { %494 = vperm.xlu0 %6929, %v356_v57   ;;  %v359_v57 = vld [vmem:[%s9900_s2 + $0xe8] sm:$0xff] }
 0x111   : > { %6098 = vmatmul.mubr.f32.gmra.mrb[28].mxu0 %v7803_v27 }
 0x112   : > { %6470 = vmatpush3.bf16.xpose.msra.mxu0 %v10395_v32  ;;  %6100 = vmatprep.mubr.f32.mxu0 %v7812_v21  ;;  %v10404_v32 = vand.u32 4294901760, %v10403_v5  ;;  %v343_v5 = vld [vmem:[%s9900_s2 + $0x68] sm:$0xff] }
 0x113   : > { %6472 = vmatprep.subr.bf16.mxu0 %v6471_v47  ;;  %419 = vperm.xlu1 %6930, %v341_v56  }
 0x114   : > { %v6475_v35 = vpack.c.bf16 %v10404_v32, %v10402_v26  ;;  %414 = vperm.xlu0 %6929, %v340_v48   ;;  %v10407_v32 = vand.u32 4294901760, %v10368_v34  ;;  %v10413_v34 = vand.u32 4294901760, %v10370_v19  ;;  %v342_v26 = vld [vmem:[%s9900_s2 + $0x60] sm:$0xff]  ;;  %v360_v19 = vld [vmem:[%s9900_s2 + $0xf0] sm:$0xff]  ;;  %v361_v48 = vld [vmem:[%s9900_s2 + $0xf8] sm:$0xff] }
 0x115   : > { %6101 = vmatmul.mubr.f32.gmra.mrb[30].mxu0 %v7819_v25 }
 0x116   : > { %6135 = vmatprep.mubr.f32.mxu0 %v10400_v0  ;;  %v10411_v0 = vld [vmem:[#allocation21_spill] sm:$0xff] }
 0x117   : > { %v10412_v60 = vand.u32 4294901760, %v10411_v0  ;;  %509 = vperm.xlu1 %6930, %v359_v57   ;;  %v2803_v0 = vld [vmem:[%s9902_s4 + $0x10] sm:$0xff] }
 0x118   : > { %504 = vperm.xlu0 %6929, %v358_v7  }
 0x119   : > { %6136 = vmatmul.mubr.f32.vlgmr.msra.gmra.mrb[0].mxu0 %v10405_v49  ;;  %v10415_v49 = vand.u32 4294901760, %v10373_v39  ;;  %v10421_v39 = vand.u32 4294901760, %v10375_v62  ;;  %v2802_v62 = vld [vmem:[%s9902_s4 + $0x8] sm:$0xff] }
 0x11a   : > { %6474 = vmatpush3.bf16.xpose.msra.mxu0 %v6471_v47  ;;  %6138 = vmatprep.mubr.f32.mxu0 %v10406_v63  ;;  %v10409_v47 = vld [vmem:[#allocation20_spill] sm:$0xff]  ;;  %v10416_v63 = vand.u32 4294901760, %v10374_v54  ;;  %v10422_v54 = vand.u32 4294901760, %v10376_v33 }
 0x11b   : > { %6476 = vmatprep.subr.bf16.mxu0 %v6475_v35  ;;  %v10410_v8 = vand.u32 4294901760, %v10409_v47  ;;  %429 = vperm.xlu1 %6930, %v343_v5   ;;  %v345_v47 = vld [vmem:[%s9900_s2 + $0x78] sm:$0xff] }
 0x11c   : > { %424 = vperm.xlu0 %6929, %v342_v26  }
 0x11d   : > { %6139 = vmatmul.mubr.f32.gmra.mrb[2].mxu0 %v10407_v32  ;;  %v6479_v56 = vpack.c.bf16 %v10412_v60, %v10410_v8  ;;  %v10419_v32 = vld [vmem:[#allocation27_spill] sm:$0xff]  ;;  %v10423_v8 = vand.u32 4294901760, %v10378_v20  ;;  %v10424_v60 = vand.u32 4294901760, %v10379_v46  ;;  %v10429_v20 = vand.u32 4294901760, %v10380_v59 }
 0x11e   : > { %6141 = vmatprep.mubr.f32.mxu0 %v10408_v1  ;;  %v10420_v7 = vand.u32 4294901760, %v10419_v32  ;;  %v344_v1 = vld [vmem:[%s9900_s2 + $0x70] sm:$0xff]  ;;  %v10430_v46 = vand.u32 4294901760, %v10381_v40  ;;  %v2810_v59 = vld [vmem:[%s9902_s4 + $0x48] sm:$0xff] }
 0x11f   : > { %519 = vperm.xlu1 %6930, %v361_v48   ;;  %v2805_v48 = vld [vmem:[%s9902_s4 + $0x20] sm:$0xff] }
 0x120   : > { %514 = vperm.xlu0 %6929, %v360_v19   ;;  %v10431_v19 = vand.u32 4294901760, %v10383_v22  ;;  %v10437_v22 = vand.u32 4294901760, %v10385_v31  ;;  %v2809_v31 = vld [vmem:[%s9902_s4 + $0x40] sm:$0xff] }
 0x121   : > { %6142 = vmatmul.mubr.f32.gmra.mrb[4].mxu0 %v10413_v34  ;;  %v10427_v34 = vld [vmem:[#allocation29_spill] sm:$0xff] }
 0x122   : > { %6478 = vmatpush3.bf16.xpose.msra.mxu0 %v6475_v35  ;;  %6144 = vmatprep.mubr.f32.mxu0 %v10414_v36  ;;  %v10417_v35 = vld [vmem:[#allocation26_spill] sm:$0xff]  ;;  %v10428_v26 = vand.u32 4294901760, %v10427_v34  ;;  %v10447_v34 = vand.u32 4294901760, %v10393_v24  ;;  %v10451_v24 = vand.u32 4294901760, %v7757_v29  ;;  %v4665_v29 = vld [vmem:[%s9903_s5 + $0x10] sm:$0xff] }
 0x123   : > { %6480 = vmatprep.subr.bf16.mxu0 %v6479_v56  ;;  %v10418_v53 = vand.u32 4294901760, %v10417_v35  ;;  %439 = vperm.xlu1 %6930, %v345_v47   ;;  %v2801_v36 = vld [vmem:[%s9902_s4] sm:$0xff]  ;;  %v2812_v47 = vld [vmem:[%s9902_s4 + $0x58] sm:$0xff] }
 0x124   : > { %434 = vperm.xlu0 %6929, %v344_v1   ;;  %v10433_v35 = vld [vmem:[#allocation30_spill] sm:$0xff]  ;;  %v10439_v1 = vand.u32 4294901760, %v10388_v10  ;;  %v10445_v10 = vand.u32 4294901760, %v10390_v16  ;;  %v2808_v16 = vld [vmem:[%s9902_s4 + $0x38] sm:$0xff] }
 0x125   : > { %6145 = vmatmul.mubr.f32.gmra.mrb[6].mxu0 %v10415_v49  ;;  %v6483_v57 = vpack.c.bf16 %v10420_v7, %v10418_v53  ;;  %v2804_v49 = vld [vmem:[%s9902_s4 + $0x18] sm:$0xff]  ;;  %v10434_v40 = vand.u32 4294901760, %v10433_v35  ;;  %v10435_v53 = vld [vmem:[#allocation31_spill] sm:$0xff] }
 0x126   : > { %6147 = vmatprep.mubr.f32.mxu0 %v10416_v63  ;;  %v10432_v63 = vand.u32 4294901760, %v10384_v30  ;;  %v10436_v32 = vand.u32 4294901760, %v10435_v53  ;;  %v10438_v30 = vand.u32 4294901760, %v10386_v18  ;;  %v4674_v35 = vld [vmem:[%s9903_s5 + $0x58] sm:$0xff]  ;;  %v4669_v53 = vld [vmem:[%s9903_s5 + $0x30] sm:$0xff] }
 0x127   : > { %2829 = vperm.xlu1 %6930, %v2803_v0  }
 0x128   : > { %2824 = vperm.xlu0 %6929, %v2802_v62   ;;  %v6491_v7 = vpack.c.bf16 %v10436_v32, %v10434_v40  ;;  %v10443_v62 = vld [vmem:[#allocation33_spill] sm:$0xff]  ;;  %v4671_v40 = vld [vmem:[%s9903_s5 + $0x40] sm:$0xff]  ;;  %v4676_v32 = vld [vmem:[%s9903_s5 + $0x68] sm:$0xff] }
 0x129   : > { %6148 = vmatmul.mubr.f32.gmra.mrb[8].mxu0 %v10421_v39  ;;  %v2806_v39 = vld [vmem:[%s9902_s4 + $0x28] sm:$0xff]  ;;  %v10444_v0 = vand.u32 4294901760, %v10443_v62  ;;  %v10466_v62 = vld [vmem:[#allocation49_spill] sm:$0xff] }
 0x12a   : > { %6482 = vmatpush3.bf16.xpose.msra.mxu0 %v6479_v56  ;;  %6150 = vmatprep.mubr.f32.mxu0 %v10422_v54  ;;  %v10425_v56 = vld [vmem:[#allocation28_spill] sm:$0xff]  ;;  %v10440_v54 = vand.u32 4294901760, %v10389_v3  ;;  %v10446_v3 = vand.u32 4294901760, %v10391_v38  ;;  %v10449_v38 = vand.u32 4294901760, %v7479_v44  ;;  %v10453_v44 = vand.u32 4294901760, %v7781_v4  ;;  %v4663_v4 = vld [vmem:[%s9903_s5] sm:$0xff] }
 0x12b   : > { %6484 = vmatprep.subr.bf16.mxu0 %v6483_v57  ;;  %v10426_v33 = vand.u32 4294901760, %v10425_v56  ;;  %2834 = vperm.xlu1 %6930, %v2804_v49   ;;  %v2807_v56 = vld [vmem:[%s9902_s4 + $0x30] sm:$0xff] }
 0x12c   : > { %2819 = vperm.xlu0 %6929, %v2801_v36   ;;  %v2815_v49 = vld [vmem:[%s9902_s4 + $0x70] sm:$0xff] }
 0x12d   : > { %6151 = vmatmul.mubr.f32.gmra.mrb[10].mxu0 %v10423_v8  ;;  %v6487_v5 = vpack.c.bf16 %v10428_v26, %v10426_v33  ;;  %v10441_v8 = vld [vmem:[#allocation32_spill] sm:$0xff]  ;;  %v2813_v33 = vld [vmem:[%s9902_s4 + $0x60] sm:$0xff]  ;;  %v2814_v26 = vld [vmem:[%s9902_s4 + $0x68] sm:$0xff] }
 0x12e   : > { %6153 = vmatprep.mubr.f32.mxu0 %v10424_v60  ;;  %v10442_v18 = vand.u32 4294901760, %v10441_v8  ;;  %v10464_v8 = vld [vmem:[#allocation8_spill] sm:$0xff] }
 0x12f   : > { %2839 = vperm.xlu1 %6930, %v2805_v48   ;;  %v10456_v48 = vand.u32 4294901760, %v7812_v21  ;;  %v4668_v21 = vld [vmem:[%s9903_s5 + $0x28] sm:$0xff] }
 0x130   : > { %2864 = vperm.xlu0 %6929, %v2810_v59   ;;  %v6495_v60 = vpack.c.bf16 %v10444_v0, %v10442_v18  ;;  %v4666_v59 = vld [vmem:[%s9903_s5 + $0x18] sm:$0xff]  ;;  %v10465_v18 = vld [vmem:[#allocation47_spill] sm:$0xff] }
 0x131   : > { %6154 = vmatmul.mubr.f32.gmra.mrb[12].mxu0 %v10429_v20  ;;  %v10450_v20 = vand.u32 4294901760, %v7491_v51  ;;  %v4664_v51 = vld [vmem:[%s9903_s5 + $0x8] sm:$0xff]  ;;  %v10468_v0 = vld [vmem:[#allocation53_spill] sm:$0xff] }
 0x132   : > { %6486 = vmatpush3.bf16.xpose.msra.mxu0 %v6483_v57  ;;  %6156 = vmatprep.mubr.f32.mxu0 %v10430_v46  ;;  %v2811_v57 = vld [vmem:[%s9902_s4 + $0x50] sm:$0xff]  ;;  %v2816_v46 = vld [vmem:[%s9902_s4 + $0x78] sm:$0xff] }
 0x133   : > { %6488 = vmatprep.subr.bf16.mxu0 %v6487_v5  ;;  %2844 = vperm.xlu1 %6930, %v2806_v39   ;;  %v6499_v36 = vpack.c.bf16 %v10450_v20, %v10449_v38  ;;  %v4871_v39 = vld [vmem:[%s9904_s6] sm:$0xff]  ;;  %v10479_v20 = vld [vmem:[#allocation67_spill] sm:$0xff] }
 0x134   : > { %2869 = vperm.xlu0 %6929, %v2811_v57   ;;  %v4872_v57 = vld [vmem:[%s9904_s6 + $0x8] sm:$0xff]  ;;  %v10478_v38 = vld [vmem:[#allocation66_spill] sm:$0xff] }
 0x135   : > { %6157 = vmatmul.mubr.f32.gmra.mrb[14].mxu0 %v10431_v19  ;;  %v10454_v19 = vand.u32 4294901760, %v7787_v45  ;;  %v10457_v45 = vand.u32 4294901760, %v7819_v25  ;;  %v4673_v25 = vld [vmem:[%s9903_s5 + $0x50] sm:$0xff] }
 0x136   : > { %6159 = vmatprep.mubr.f32.mxu0 %v10432_v63  ;;  %v4667_v63 = vld [vmem:[%s9903_s5 + $0x20] sm:$0xff] }
 0x137   : > { %2874 = vperm.xlu1 %6930, %v2812_v47   ;;  %v10462_v47 = vld [vmem:[#allocation44_spill] sm:$0xff] }
 0x138   : > { %2859 = vperm.xlu0 %6929, %v2809_v31   ;;  %v10461_v31 = vld [vmem:[#allocation42_spill] sm:$0xff] }
 0x139   : > { %6160 = vmatmul.mubr.f32.gmra.mrb[16].mxu0 %v10437_v22  ;;  %v4677_v22 = vld [vmem:[%s9903_s5 + $0x70] sm:$0xff] }
 0x13a   : > { %6490 = vmatpush3.bf16.xpose.msra.mxu0 %v6487_v5  ;;  %6162 = vmatprep.mubr.f32.mxu0 %v10438_v30  ;;  %v10448_v5 = vand.u32 4294901760, %v10394_v42  ;;  %v10452_v42 = vand.u32 4294901760, %v7762_v37  ;;  %v10455_v37 = vand.u32 4294901760, %v7803_v27  ;;  %v4672_v27 = vld [vmem:[%s9903_s5 + $0x48] sm:$0xff] }
 0x13b   : > { %6492 = vmatprep.subr.bf16.mxu0 %v6491_v7  ;;  %2879 = vperm.xlu1 %6930, %v2813_v33   ;;  %v10459_v30 = vld [vmem:[#allocation7_spill] sm:$0xff]  ;;  %v10472_v33 = vld [vmem:[#allocation61_spill] sm:$0xff] }
 0x13c   : > { %2849 = vperm.xlu0 %6929, %v2807_v56   ;;  %v10471_v56 = vld [vmem:[#allocation58_spill] sm:$0xff] }
 0x13d   : > { %6163 = vmatmul.mubr.f32.gmra.mrb[18].mxu0 %v10439_v1  ;;  %v10460_v1 = vld [vmem:[#allocation40_spill] sm:$0xff] }
 0x13e   : > { %6165 = vmatprep.mubr.f32.mxu0 %v10440_v54  ;;  %v10463_v54 = vld [vmem:[#allocation46_spill] sm:$0xff] }
 0x13f   : > { %2884 = vperm.xlu1 %6930, %v2814_v26   ;;  %v10476_v26 = vld [vmem:[#allocation64_spill] sm:$0xff] }
 0x140   : > { %2854 = vperm.xlu0 %6929, %v2808_v16   ;;  %v10475_v16 = vld [vmem:[#allocation63_spill] sm:$0xff] }
 0x141   : > { %6166 = vmatmul.mubr.f32.gmra.mrb[20].mxu0 %v10445_v10  ;;  %v10470_v10 = vld [vmem:[#allocation57_spill] sm:$0xff] }
 0x142   : > { %6494 = vmatpush3.bf16.xpose.msra.mxu0 %v6491_v7  ;;  %6168 = vmatprep.mubr.f32.mxu0 %v10446_v3  ;;  %v4670_v7 = vld [vmem:[%s9903_s5 + $0x38] sm:$0xff]  ;;  %v10473_v3 = vld [vmem:[#allocation62_spill] sm:$0xff] }
 0x143   : > { %6496 = vmatprep.subr.bf16.mxu0 %v6495_v60  ;;  %2894 = vperm.xlu1 %6930, %v2816_v46  }
 0x144   : > { %2889 = vperm.xlu0 %6929, %v2815_v49  }
 0x145   : > { %6169 = vmatmul.mubr.f32.gmra.mrb[22].mxu0 %v10447_v34  ;;  %v10474_v34 = vld [vmem:[#allocation18_spill] sm:$0xff] }
 0x146   : > { %6171 = vmatprep.mubr.f32.mxu0 %v10448_v5  ;;  %v10477_v5 = vld [vmem:[#allocation65_spill] sm:$0xff] }
 0x147   : > { %4691 = vperm.xlu1 %6930, %v4665_v29  }
 0x148   : > { %4686 = vperm.xlu0 %6929, %v4664_v51  }
 0x149   : > { %6172 = vmatmul.mubr.f32.gmra.mrb[24].mxu0 %v10451_v24 }
 0x14a   : > { %6498 = vmatpush3.bf16.xpose.msra.mxu0 %v6495_v60  ;;  %6174 = vmatprep.mubr.f32.mxu0 %v10452_v42  ;;  %v10469_v60 = vld [vmem:[#allocation11_spill] sm:$0xff] }
 0x14b   : > { %6500 = vmatprep.subr.bf16.mxu0 %v6499_v36  ;;  %4696 = vperm.xlu1 %6930, %v4666_v59   ;;  %v2774_v59 = vld [vmem:[%s9901_s3 + $0x28] sm:$0xff] }
 0x14c   : > { %4681 = vperm.xlu0 %6929, %v4663_v4   ;;  %v2771_v4 = vld [vmem:[%s9901_s3 + $0x10] sm:$0xff] }
 0x14d   : > { %6175 = vmatmul.mubr.f32.gmra.mrb[26].mxu0 %v10453_v44 }
 0x14e   : > { %6177 = vmatprep.mubr.f32.mxu0 %v10454_v19  ;;  %v2769_v19 = vld [vmem:[%s9901_s3] sm:$0xff] }
 0x14f   : > { %4701 = vperm.xlu1 %6930, %v4667_v63   ;;  %v8368_v63 = vand.u32 4294901760, %v2771_v4 }
 0x150   : > { %4726 = vperm.xlu0 %6929, %v4672_v27  }
 0x151   : > { %6178 = vmatmul.mubr.f32.gmra.mrb[28].mxu0 %v10455_v37  ;;  %v2772_v37 = vld [vmem:[%s9901_s3 + $0x18] sm:$0xff]  ;;  %10484 = vst [vmem:[#allocation15_spill] sm:$0xff] %v8368_v63 }
 0x152   : > { %6502 = vmatpush3.bf16.xpose.msra.mxu0 %v6499_v36  ;;  %6180 = vmatprep.mubr.f32.mxu0 %v10456_v48  ;;  %v8361_v48 = vand.u32 4294901760, %v2769_v19  ;;  %v8366_v27 = vand.u32 4294901760, %v2772_v37 }
 0x153   : > { %6504 = vmatprep.subr.bf16.mxu0 %v10363_v52  ;;  %4706 = vperm.xlu1 %6930, %v4668_v21  }
 0x154   : > { %4731 = vperm.xlu0 %6929, %v4673_v25   ;;  %10482 = vst [vmem:[#allocation2_spill] sm:$0xff] %v8361_v48  ;;  %10483 = vst [vmem:[#allocation14_spill] sm:$0xff] %v8366_v27  ;;  %v8372_v25 = vand.u32 4294901760, %v2774_v59 }
 0x155   : > { %6181 = vmatmul.mubr.f32.gmra.mrb[30].mxu0 %v10457_v45  ;;  %v2773_v45 = vld [vmem:[%s9901_s3 + $0x20] sm:$0xff] }
 0x156   : > { %6215 = vmatprep.mubr.f32.mxu0 %v7088_v2  ;;  %10485 = vst [vmem:[#allocation4_spill] sm:$0xff] %v8372_v25 }
 0x157   : > { %4736 = vperm.xlu1 %6930, %v4674_v35  }
 0x158   : > { %4721 = vperm.xlu0 %6929, %v4671_v40   ;;  %v8376_v40 = vand.u32 4294901760, %v2773_v45 }
 0x159   : > { %6216 = vmatmul.mubr.f32.vlgmr.msra.gmra.mrb[0].mxu0 %v7259_v9 }
 0x15a   : > { %6506 = vmatpush3.bf16.xpose.msra.mxu0 %v10363_v52  ;;  %6218 = vmatprep.mubr.f32.mxu0 %v7261_v12  ;;  %v4675_v52 = vld [vmem:[%s9903_s5 + $0x60] sm:$0xff]  ;;  %10486 = vst [vmem:[#allocation16_spill] sm:$0xff] %v8376_v40 }
 0x15b   : > { %6508 = vmatprep.subr.bf16.mxu0 %v10367_v43  ;;  %4741 = vperm.xlu1 %6930, %v4675_v52   ;;  %v8379_v52 = vsub.f32 %v2769_v19, %v8361_v48 }
 0x15c   : > { %4711 = vperm.xlu0 %6929, %v4669_v53   ;;  %v8382_v53 = vsub.f32 %v2772_v37, %v8366_v27 }
 0x15d   : > { %6219 = vmatmul.mubr.f32.gmra.mrb[2].mxu0 %v7263_v13  ;;  %10487 = vst [vmem:[#allocation17_spill] sm:$0xff] %v8379_v52 }
 0x15e   : > { %6221 = vmatprep.mubr.f32.mxu0 %v7268_v23  ;;  %10488 = vst [vmem:[#allocation19_spill] sm:$0xff] %v8382_v53 }
 0x15f   : > { %4746 = vperm.xlu1 %6930, %v4676_v32   ;;  %v8385_v32 = vsub.f32 %v2771_v4, %v8368_v63 }
 0x160   : > { %4716 = vperm.xlu0 %6929, %v4670_v7   ;;  %v8388_v7 = vsub.f32 %v2774_v59, %v8372_v25  ;;  %v2784_v59 = vld [vmem:[%s9901_s3 + $0x78] sm:$0xff] }
 0x161   : > { %6222 = vmatmul.mubr.f32.gmra.mrb[4].mxu0 %v7299_v15  ;;  %10489 = vst [vmem:[#allocation22_spill] sm:$0xff] %v8385_v32 }
 0x162   : > { %6510 = vmatpush3.bf16.xpose.msra.mxu0 %v10367_v43  ;;  %6224 = vmatprep.mubr.f32.mxu0 %v7330_v11  ;;  %v4678_v43 = vld [vmem:[%s9903_s5 + $0x78] sm:$0xff]  ;;  %10490 = vst [vmem:[#allocation5_spill] sm:$0xff] %v8388_v7 }
 0x163   : > { %6512 = vmatprep.subr.bf16.mxu0 %v10372_v41  ;;  %4756 = vperm.xlu1 %6930, %v4678_v43   ;;  %v8391_v43 = vsub.f32 %v2773_v45, %v8376_v40 }
 0x164   : > { %4751 = vperm.xlu0 %6929, %v4677_v22  }
 0x165   : > { %6225 = vmatmul.mubr.f32.gmra.mrb[6].mxu0 %v7337_v14  ;;  %10491 = vst [vmem:[#allocation23_spill] sm:$0xff] %v8391_v43 }
 0x166   : > { %6227 = vmatprep.mubr.f32.mxu0 %v7346_v55 }
 0x167   : > { %4879 = vperm.xlu1 %6930, %v4872_v57   ;;  %v10057_v57 = vand.u32 4294901760, %v8379_v52 }
 0x168   : > { %4875 = vperm.xlu0 %6929, %v4871_v39   ;;  %v2776_v39 = vld [vmem:[%s9901_s3 + $0x38] sm:$0xff] }
 0x169   : > { %6228 = vmatmul.mubr.f32.gmra.mrb[8].mxu0 %v7391_v28 }
 0x16a   : > { %6514 = vmatpush3.bf16.xpose.msra.mxu0 %v10372_v41  ;;  %6230 = vmatprep.mubr.f32.mxu0 %v7423_v58  ;;  %v10458_v41 = vld [vmem:[#allocation38_spill] sm:$0xff] }
 0x16b   : > { %6516 = vmatprep.subr.bf16.mxu0 %v10377_v50 }
 0x16d   : > { %6231 = vmatmul.mubr.f32.gmra.mrb[10].mxu0 %v7425_v61 }
 0x16e   : > { %6233 = vmatprep.mubr.f32.mxu0 %v7427_v6 }
 0x171   : > { %6234 = vmatmul.mubr.f32.gmra.mrb[12].mxu0 %v7539_v17 }
 0x172   : > { %6518 = vmatpush3.bf16.xpose.msra.mxu0 %v10377_v50  ;;  %6236 = vmatprep.mubr.f32.mxu0 %v10458_v41  ;;  %v10467_v50 = vld [vmem:[#allocation52_spill] sm:$0xff] }
 0x173   : > { %6520 = vmatprep.subr.bf16.mxu0 %v10459_v30 }
 0x175   : > { %6237 = vmatmul.mubr.f32.gmra.mrb[14].mxu0 %v10460_v1 }
 0x176   : > { %6239 = vmatprep.mubr.f32.mxu0 %v10461_v31 }
 0x179   : > { %6240 = vmatmul.mubr.f32.gmra.mrb[16].mxu0 %v10462_v47 }
 0x17a   : > { %6522 = vmatpush3.bf16.xpose.msra.mxu0 %v10459_v30  ;;  %6242 = vmatprep.mubr.f32.mxu0 %v10463_v54  ;;  %v10056_v30 = vand.u32 4294901760, %v8382_v53 }
 0x17b   : > { %6524 = vmatprep.subr.bf16.mxu0 %v10464_v8 }
 0x17d   : > { %6243 = vmatmul.mubr.f32.gmra.mrb[18].mxu0 %v10465_v18 }
 0x17e   : > { %6245 = vmatprep.mubr.f32.mxu0 %v10466_v62 }
 0x181   : > { %6246 = vmatmul.mubr.f32.gmra.mrb[20].mxu0 %v10467_v50 }
 0x182   : > { %6526 = vmatpush3.bf16.xpose.msra.mxu0 %v10464_v8  ;;  %6248 = vmatprep.mubr.f32.mxu0 %v10468_v0  ;;  %v10053_v8 = vand.u32 4294901760, %v8391_v43 }
 0x183   : > { %6528 = vmatprep.subr.bf16.mxu0 %v10469_v60 }
 0x185   : > { %6249 = vmatmul.mubr.f32.gmra.mrb[22].mxu0 %v10470_v10 }
 0x186   : > { %6251 = vmatprep.mubr.f32.mxu0 %v10471_v56 }
 0x189   : > { %6252 = vmatmul.mubr.f32.gmra.mrb[24].mxu0 %v10472_v33 }
 0x18a   : > { %6530 = vmatpush3.bf16.xpose.msra.mxu0 %v10469_v60  ;;  %6254 = vmatprep.mubr.f32.mxu0 %v10473_v3  ;;  %v8426_v60 = vsub.f32 %v8382_v53, %v10056_v30 }
 0x18b   : > { %6532 = vmatprep.subr.bf16.mxu0 %v10474_v34 }
 0x18d   : > { %6255 = vmatmul.mubr.f32.gmra.mrb[26].mxu0 %v10475_v16 }
 0x18e   : > { %6257 = vmatprep.mubr.f32.mxu0 %v10476_v26 }
 0x191   : > { %6258 = vmatmul.mubr.f32.gmra.mrb[28].mxu0 %v10477_v5 }
 0x192   : > { %6534 = vmatpush3.bf16.xpose.msra.mxu0 %v10474_v34  ;;  %6260 = vmatprep.mubr.f32.mxu0 %v10478_v38 }
 0x195   : > { %6261 = vmatmul.mubr.f32.gmra.mrb[30].mxu0 %v10479_v20 }
 0x196   : > { %6295 = vmatprep.mubr.f32.mxu0 %v7088_v2  ;;  %v8305_v2 = vpop.permute.xlu1 %364 }
 0x199   : > { %6296 = vmatmul.mubr.f32.vlgmr.msra.gmra.mrb[0].mxu0 %v7259_v9 }
 0x19a   : > { %6298 = vmatprep.mubr.f32.mxu0 %v7261_v12 }
 0x19d   : > { %6299 = vmatmul.mubr.f32.gmra.mrb[2].mxu0 %v7263_v13 }
 0x19e   : > { %6301 = vmatprep.mubr.f32.mxu0 %v7268_v23 }
 0x1a1   : > { %6302 = vmatmul.mubr.f32.gmra.mrb[4].mxu0 %v7299_v15 }
 0x1a2   : > { %6304 = vmatprep.mubr.f32.mxu0 %v7330_v11  ;;  %v8307_v11 = vpop.permute.xlu0 %444 }
 0x1a5   : > { %6305 = vmatmul.mubr.f32.gmra.mrb[6].mxu0 %v7337_v14 }
 0x1a6   : > { %6307 = vmatprep.mubr.f32.mxu0 %v7346_v55  ;;  %v8309_v55 = vpop.permute.xlu1 %369  ;;  %v8311_v9 = vpop.permute.xlu0 %449 }
 0x1a9   : > { %6308 = vmatmul.mubr.f32.gmra.mrb[8].mxu0 %v7391_v28  ;;  %v2770_v28 = vld [vmem:[%s9901_s3 + $0x8] sm:$0xff] }
 0x1aa   : > { %6310 = vmatprep.mubr.f32.mxu0 %v7423_v58  ;;  %v8313_v12 = vpop.permute.xlu1 %459  ;;  %v8315_v13 = vpop.permute.xlu0 %454  ;;  %v8324_v58 = vand.u32 4294901760, %v2770_v28 }
 0x1ac   : > { %10480 = vst [vmem:[#allocation35_spill] sm:$0xff] %v8324_v58  ;;  %v8327_v14 = vsub.f32 %v2770_v28, %v8324_v58 }
 0x1ad   : > { %6311 = vmatmul.mubr.f32.gmra.mrb[10].mxu0 %v7425_v61 }
 0x1ae   : > { %6313 = vmatprep.mubr.f32.mxu0 %v7427_v6  ;;  %v8317_v23 = vpop.permute.xlu1 %379  ;;  %v8322_v15 = vpop.permute.xlu0 %374  ;;  %10481 = vst [vmem:[#allocation3_spill] sm:$0xff] %v8327_v14 }
 0x1b1   : > { %6314 = vmatmul.mubr.f32.gmra.mrb[12].mxu0 %v7539_v17  ;;  %v10058_v17 = vand.u32 4294901760, %v8327_v14 }
 0x1b2   : > { %6316 = vmatprep.mubr.f32.mxu0 %v10458_v41  ;;  %v8330_v61 = vpop.permute.xlu1 %469  ;;  %v8332_v6 = vpop.permute.xlu0 %464 }
 0x1b3   : > { %v2996_v36 = vsub.f32 %v8327_v14, %v10058_v17 }
 0x1b5   : > { %6317 = vmatmul.mubr.f32.gmra.mrb[14].mxu0 %v10460_v1  ;;  %v2997_v24 = vand.u32 4294901760, %v2996_v36  ;;  %v10055_v1 = vand.u32 4294901760, %v8385_v32 }
 0x1b6   : > { %6319 = vmatprep.mubr.f32.mxu0 %v10461_v31  ;;  %v8337_v49 = vpop.permute.xlu1 %389  ;;  %v8339_v46 = vpop.permute.xlu0 %384  ;;  %v2775_v31 = vld [vmem:[%s9901_s3 + $0x30] sm:$0xff] }
 0x1b7   : > { %2998 = vmatprep.mubr.f32.mxu1 %v2997_v24  ;;  %v2779_v24 = vld [vmem:[%s9901_s3 + $0x50] sm:$0xff] }
 0x1b9   : > { %6320 = vmatmul.mubr.f32.gmra.mrb[16].mxu0 %v10462_v47  ;;  %v10054_v47 = vand.u32 4294901760, %v8388_v7 }
 0x1ba   : > { %6322 = vmatprep.mubr.f32.mxu0 %v10463_v54  ;;  %v8341_v42 = vpop.permute.xlu1 %479  ;;  %v8343_v44 = vpop.permute.xlu0 %474  ;;  %v2778_v54 = vld [vmem:[%s9901_s3 + $0x48] sm:$0xff] }
 0x1bd   : > { %6323 = vmatmul.mubr.f32.gmra.mrb[18].mxu0 %v10465_v18  ;;  %v8411_v18 = vand.u32 4294901760, %v2776_v39 }
 0x1be   : > { %6325 = vmatprep.mubr.f32.mxu0 %v10466_v62  ;;  %v8345_v51 = vpop.permute.xlu1 %399  ;;  %v8347_v29 = vpop.permute.xlu0 %394  ;;  %v2777_v62 = vld [vmem:[%s9901_s3 + $0x40] sm:$0xff] }
 0x1bf   : > { %10492 = vst [vmem:[#allocation24_spill] sm:$0xff] %v8411_v18  ;;  %v8442_v34 = vand.u32 4294901760, %v2777_v62 }
 0x1c1   : > { %6326 = vmatmul.mubr.f32.gmra.mrb[20].mxu0 %v10467_v50  ;;  %v8419_v50 = vsub.f32 %v8379_v52, %v10057_v57  ;;  %10495 = vst [vmem:[#allocation6_spill] sm:$0xff] %v8442_v34  ;;  %v8485_v57 = vand.u32 4294901760, %v2779_v24 }
 0x1c2   : > { %6328 = vmatprep.mubr.f32.mxu0 %v10468_v0  ;;  %v8370_v21 = vpop.permute.xlu1 %489  ;;  %v8374_v35 = vpop.permute.xlu0 %484  ;;  %v8421_v0 = vand.u32 4294901760, %v2775_v31 }
 0x1c3   : > { %10501 = vst [vmem:[#allocation45_spill] sm:$0xff] %v8485_v57  ;;  %v8510_v53 = vsub.f32 %v2779_v24, %v8485_v57 }
 0x1c4   : > { %10493 = vst [vmem:[#allocation25_spill] sm:$0xff] %v8421_v0  ;;  %v8459_v36 = vsub.f32 %v2775_v31, %v8421_v0 }
 0x1c5   : > { %6329 = vmatmul.mubr.f32.gmra.mrb[22].mxu0 %v10470_v10  ;;  %v8431_v10 = vsub.f32 %v8385_v32, %v10055_v1  ;;  %10505 = vst [vmem:[#allocation54_spill] sm:$0xff] %v8510_v53 }
 0x1c6   : > { %6331 = vmatprep.mubr.f32.mxu0 %v10471_v56  ;;  %v8393_v22 = vpop.permute.xlu1 %409  ;;  %v8399_v41 = vpop.permute.xlu0 %404  ;;  %v8433_v56 = vand.u32 4294901760, %v2778_v54  ;;  %10497 = vst [vmem:[#allocation37_spill] sm:$0xff] %v8459_v36 }
 0x1c8   : > { %10494 = vst [vmem:[#allocation34_spill] sm:$0xff] %v8433_v56  ;;  %v8468_v45 = vsub.f32 %v2778_v54, %v8433_v56 }
 0x1c9   : > { %6332 = vmatmul.mubr.f32.gmra.mrb[24].mxu0 %v10472_v33 }
 0x1ca   : > { %6334 = vmatprep.mubr.f32.mxu0 %v10473_v3  ;;  %v8435_v33 = vpop.permute.xlu1 %499  ;;  %v8440_v3 = vsub.f32 %v8388_v7, %v10054_v47  ;;  %10498 = vst [vmem:[#allocation39_spill] sm:$0xff] %v8468_v45  ;;  %v8476_v47 = vsub.f32 %v2777_v62, %v8442_v34 }
 0x1cc   : > { %10499 = vst [vmem:[#allocation41_spill] sm:$0xff] %v8476_v47 }
 0x1cd   : > { %6335 = vmatmul.mubr.f32.gmra.mrb[26].mxu0 %v10475_v16  ;;  %v8444_v16 = vpop.permute.xlu0 %494 }
 0x1ce   : > { %6337 = vmatprep.mubr.f32.mxu0 %v10476_v26  ;;  %v8449_v26 = vsub.f32 %v8391_v43, %v10053_v8  ;;  %v8487_v17 = vpop.permute.xlu1 %419 }
 0x1d1   : > { %6338 = vmatmul.mubr.f32.gmra.mrb[28].mxu0 %v10477_v5  ;;  %v8452_v5 = vsub.f32 %v2776_v39, %v8411_v18  ;;  %v2782_v39 = vld [vmem:[%s9901_s3 + $0x68] sm:$0xff]  ;;  %v8498_v54 = vpop.permute.xlu0 %414 }
 0x1d2   : > { %6340 = vmatprep.mubr.f32.mxu0 %v10478_v38  ;;  %v2780_v38 = vld [vmem:[%s9901_s3 + $0x58] sm:$0xff]  ;;  %v8490_v8 = vand.u32 4294901760, %v2782_v39 }
 0x1d3   : > { %10496 = vst [vmem:[#allocation36_spill] sm:$0xff] %v8452_v5  ;;  %v10508_v52 = vand.u32 4294901760, %v8452_v5 }
 0x1d4   : > { %10502 = vst [vmem:[#allocation48_spill] sm:$0xff] %v8490_v8 }
 0x1d5   : > { %6341 = vmatmul.mubr.f32.gmra.mrb[30].mxu0 %v10479_v20 }
 0x26c   : > { %v6297_v20 = vpop.f32.mrb[0].mxu0 }
 0x26d   : > { %v6727_v19 = vadd.f32 %v6297_v20, %v8309_v55  ;;  %v2451_v37 = vpop.f32.mrb[1].mxu0  ;;  %v8478_v55 = vand.u32 4294901760, %v2780_v38  ;;  %v2781_v20 = vld [vmem:[%s9901_s3 + $0x60] sm:$0xff] }
 0x26e   : > { %v6728_v31 = vadd.f32 %v2451_v37, %v8305_v2  ;;  %v8502_v30 = vand.u32 4294901760, %v2781_v20 }
 0x26f   : > { %10500 = vst [vmem:[#allocation43_spill] sm:$0xff] %v8478_v55  ;;  %v2642_v1 = vmul.f32 0.5, %v6727_v19  ;;  %v2783_v19 = vld [vmem:[%s9901_s3 + $0x70] sm:$0xff]  ;;  %v8507_v7 = vsub.f32 %v2780_v38, %v8478_v55 }
 0x270   : > { %v2641_v2 = vmul.f32 0.5, %v6728_v31  ;;  %v6300_v37 = vpop.f32.mrb[2].mxu0  ;;  %10503 = vst [vmem:[#allocation50_spill] sm:$0xff] %v8502_v30 }
 0x271   : > { %6931 = vtanh.f32 %v2642_v1  ;;  %v6729_v4 = vadd.f32 %v6300_v37, %v8317_v23  ;;  %v2463_v28 = vpop.f32.mrb[3].mxu0  ;;  %10504 = vst [vmem:[#allocation51_spill] sm:$0xff] %v8507_v7  ;;  %v8512_v1 = vand.u32 4294901760, %v2784_v59  ;;  %v8514_v23 = vand.u32 4294901760, %v2783_v19 }
 0x272   : > { %6933 = vtanh.f32 %v2641_v2  ;;  %v6730_v62 = vadd.f32 %v2463_v28, %v8322_v15  ;;  %v8519_v2 = vsub.f32 %v8452_v5, %v10508_v52  ;;  %v10509_v15 = vand.u32 4294901760, %v8459_v36  ;;  %v8538_v5 = vpop.permute.xlu1 %509 }
 0x273   : > { %v2644_v32 = vmul.f32 0.5, %v6729_v4  ;;  %10506 = vst [vmem:[#allocation55_spill] sm:$0xff] %v8512_v1  ;;  %10507 = vst [vmem:[#allocation56_spill] sm:$0xff] %v8514_v23  ;;  %v8527_v28 = vsub.f32 %v2782_v39, %v8490_v8  ;;  %v8536_v52 = vsub.f32 %v2781_v20, %v8502_v30  ;;  %v10513_v39 = vand.u32 4294901760, %v8476_v47 }
 0x274   : > { %v2643_v37 = vmul.f32 0.5, %v6730_v62  ;;  %v6303_v31 = vpop.f32.mrb[4].mxu0  ;;  %v8524_v38 = vsub.f32 %v8459_v36, %v10509_v15  ;;  %v10511_v62 = vand.u32 4294901760, %v8468_v45  ;;  %v8551_v20 = vsub.f32 %v2784_v59, %v8512_v1 }
 0x275   : > { %10510 = vst [vmem:[#allocation59_spill] sm:$0xff] %v8527_v28  ;;  %6935 = vtanh.f32 %v2644_v32  ;;  %v6731_v24 = vadd.f32 %v6303_v31, %v8337_v49  ;;  %v2475_v4 = vpop.f32.mrb[5].mxu0  ;;  %10512 = vst [vmem:[#allocation60_spill] sm:$0xff] %v8536_v52  ;;  %v8544_v32 = vsub.f32 %v8476_v47, %v10513_v39  ;;  %v8547_v31 = vpop.permute.xlu0 %504  ;;  %v10517_v39 = vand.u32 4294901760, %v8507_v7 }
 0x276   : > { %v8533_v43 = vsub.f32 %v8468_v45, %v10511_v62  ;;  %6937 = vtanh.f32 %v2643_v37  ;;  %v6732_v15 = vadd.f32 %v2475_v4, %v8339_v46  ;;  %10515 = vst [vmem:[#allocation10_spill] sm:$0xff] %v8551_v20  ;;  %v8554_v45 = vsub.f32 %v2783_v19, %v8514_v23  ;;  %v2786_v19 = vld [vmem:[%s9901_s3 + $0x88] sm:$0xff]  ;;  %v430_v4 = vpop.permute.xlu1 %429 }
 0x277   : > { %10514 = vst [vmem:[#allocation9_spill] sm:$0xff] %v8544_v32  ;;  %v2646_v36 = vmul.f32 0.5, %v6731_v24  ;;  %v10518_v62 = vand.u32 4294901760, %v8510_v53  ;;  %v10521_v30 = vand.u32 4294901760, %v8536_v52 }
 0x278   : > { %10516 = vst [vmem:[#allocation12_spill] sm:$0xff] %v8554_v45  ;;  %v2645_v37 = vmul.f32 0.5, %v6732_v15  ;;  %v6306_v46 = vpop.f32.mrb[6].mxu0 }
 0x279   : > { %6939 = vtanh.f32 %v2646_v36  ;;  %v6733_v49 = vadd.f32 %v6306_v46, %v8345_v51  ;;  %v2487_v24 = vpop.f32.mrb[7].mxu0  ;;  %v8570_v36 = vsub.f32 %v8507_v7, %v10517_v39  ;;  %v8575_v59 = vsub.f32 %v8510_v53, %v10518_v62  ;;  %v425_v47 = vpop.permute.xlu0 %424 }
 0x27a   : > { %6941 = vtanh.f32 %v2645_v37  ;;  %v6734_v15 = vadd.f32 %v2487_v24, %v8347_v29  ;;  %v8582_v29 = vld [vmem:[%s9901_s3 + $0x80] sm:$0xff]  ;;  %v8589_v62 = vand.u32 4294901760, %v2786_v19  ;;  %v8595_v8 = vsub.f32 %v8536_v52, %v10521_v30 }
 0x27b   : > { %v6932_v51 = vpop.eup %6931  ;;  %v2648_v46 = vmul.f32 0.5, %v6733_v49  ;;  %v10519_v49 = vand.u32 4294901760, %v8527_v28 }
 0x27c   : > { %v6934_v24 = vpop.eup %6933  ;;  %v2706_v39 = vmul.f32 0.5, %v6932_v51  ;;  %v2647_v7 = vmul.f32 0.5, %v6734_v15  ;;  %v6309_v14 = vpop.f32.mrb[8].mxu0  ;;  %10520 = vst [vmem:[#allocation13_spill] sm:$0xff] %v8589_v62  ;;  %10522 = vst [vmem:[#allocation20_spill] sm:$0xff] %v8595_v8  ;;  %v8612_v52 = vsub.f32 %v2786_v19, %v8589_v62 }
 0x27d   : > { %v8587_v23 = vsub.f32 %v8527_v28, %v10519_v49  ;;  %v2705_v53 = vmul.f32 0.5, %v6934_v24  ;;  %6943 = vtanh.f32 %v2648_v46  ;;  %v6735_v37 = vadd.f32 %v6309_v14, %v8393_v22  ;;  %v2499_v1 = vpop.f32.mrb[9].mxu0 }
 0x27e   : > { %v2738_v15 = vadd.f32 0.5, %v2706_v39  ;;  %6945 = vtanh.f32 %v2647_v7  ;;  %v6736_v51 = vadd.f32 %v2499_v1, %v8399_v41  ;;  %v8599_v49 = vand.u32 4294901760, %v8582_v29  ;;  %10528 = vst [vmem:[#allocation28_spill] sm:$0xff] %v8612_v52 }
 0x27f   : > { %v6936_v28 = vpop.eup %6935  ;;  %v2737_v57 = vadd.f32 0.5, %v2705_v53  ;;  %v2650_v55 = vmul.f32 0.5, %v6735_v37  ;;  %v10524_v46 = vand.u32 4294901760, %v8551_v20  ;;  %v10526_v22 = vand.u32 4294901760, %v8554_v45 }
 0x280   : > { %10523 = vst [vmem:[#allocation21_spill] sm:$0xff] %v8599_v49  ;;  %v6938_v24 = vpop.eup %6937  ;;  %v2708_v7 = vmul.f32 0.5, %v6936_v28  ;;  %v2649_v39 = vmul.f32 0.5, %v6736_v51  ;;  %v6312_v41 = vpop.f32.mrb[10].mxu0  ;;  %v2901_v1 = vand.u32 4294901760, %v2738_v15 }
 0x281   : > { %v8604_v14 = vsub.f32 %v8551_v20, %v10524_v46  ;;  %v8609_v30 = vsub.f32 %v8554_v45, %v10526_v22  ;;  %v2707_v53 = vmul.f32 0.5, %v6938_v24  ;;  %6947 = vtanh.f32 %v2650_v55  ;;  %v2511_v34 = vpop.f32.mrb[11].mxu0  ;;  %v8615_v20 = vpop.permute.xlu1 %519 }
 0x282   : > { %v6737_v37 = vadd.f32 %v6312_v41, %v8487_v17  ;;  %v2898_v46 = vand.u32 4294901760, %v2737_v57  ;;  %v2740_v56 = vadd.f32 0.5, %v2708_v7  ;;  %6949 = vtanh.f32 %v2649_v39  ;;  %v8620_v51 = vpop.permute.xlu0 %514 }
 0x283   : > { %10525 = vst [vmem:[#allocation26_spill] sm:$0xff] %v8604_v14  ;;  %10527 = vst [vmem:[#allocation27_spill] sm:$0xff] %v8609_v30  ;;  %v6738_v22 = vadd.f32 %v2511_v34, %v8498_v54  ;;  %v8618_v45 = vsub.f32 %v2738_v15, %v2901_v1  ;;  %v6940_v28 = vpop.eup %6939  ;;  %v2739_v0 = vadd.f32 0.5, %v2707_v53 }
 0x284   : > { %v2652_v19 = vmul.f32 0.5, %v6737_v37  ;;  %v8622_v62 = vpack.c.bf16 %v2901_v1, %v2898_v46  ;;  %v8624_v55 = vsub.f32 %v2737_v57, %v2898_v46  ;;  %v6942_v17 = vpop.eup %6941  ;;  %v2710_v24 = vmul.f32 0.5, %v6940_v28  ;;  %v6315_v18 = vpop.f32.mrb[12].mxu0 }
 0x285   : > { %10529 = vst [vmem:[#allocation29_spill] sm:$0xff] %v8618_v45  ;;  %v2651_v41 = vmul.f32 0.5, %v6738_v22  ;;  %v2907_v40 = vand.u32 4294901760, %v2740_v56  ;;  %v2709_v39 = vmul.f32 0.5, %v6942_v17  ;;  %v6739_v34 = vadd.f32 %v6315_v18, %v430_v4  ;;  %v2523_v54 = vpop.f32.mrb[13].mxu0  ;;  %v440_v27 = vpop.permute.xlu1 %439 }
 0x286   : > { %10530 = vst [vmem:[#allocation30_spill] sm:$0xff] %v8622_v62  ;;  %10531 = vst [vmem:[#allocation31_spill] sm:$0xff] %v8624_v55  ;;  %6951 = vtanh.f32 %v2652_v19  ;;  %v2904_v15 = vand.u32 4294901760, %v2739_v0  ;;  %v2742_v25 = vadd.f32 0.5, %v2710_v24  ;;  %v6740_v53 = vadd.f32 %v2523_v54, %v425_v47  ;;  %v435_v24 = vpop.permute.xlu0 %434 }
 0x287   : > { %6953 = vtanh.f32 %v2651_v41  ;;  %v8627_v37 = vsub.f32 %v2740_v56, %v2907_v40  ;;  %v6944_v1 = vpop.eup %6943  ;;  %v2741_v57 = vadd.f32 0.5, %v2709_v39  ;;  %v2654_v46 = vmul.f32 0.5, %v6739_v34 }
 0x288   : > { %v8629_v63 = vpack.c.bf16 %v2907_v40, %v2904_v15  ;;  %v8631_v22 = vsub.f32 %v2739_v0, %v2904_v15  ;;  %v6946_v28 = vpop.eup %6945  ;;  %v2712_v7 = vmul.f32 0.5, %v6944_v1  ;;  %v2653_v17 = vmul.f32 0.5, %v6740_v53  ;;  %v6318_v19 = vpop.f32.mrb[14].mxu0 }
 0x289   : > { %10532 = vst [vmem:[#allocation32_spill] sm:$0xff] %v8627_v37  ;;  %v2913_v18 = vand.u32 4294901760, %v2742_v25  ;;  %v2711_v41 = vmul.f32 0.5, %v6946_v28  ;;  %6955 = vtanh.f32 %v2654_v46  ;;  %v6741_v47 = vadd.f32 %v6318_v19, %v440_v27  ;;  %v2535_v56 = vpop.f32.mrb[15].mxu0 }
 0x28a   : > { %10533 = vst [vmem:[#allocation33_spill] sm:$0xff] %v8629_v63  ;;  %10534 = vst [vmem:[#allocation38_spill] sm:$0xff] %v8631_v22  ;;  %v2910_v54 = vand.u32 4294901760, %v2741_v57  ;;  %v2744_v39 = vadd.f32 0.5, %v2712_v7  ;;  %6957 = vtanh.f32 %v2653_v17  ;;  %v6742_v40 = vadd.f32 %v2535_v56, %v435_v24 }
 0x28b   : > { %v8634_v34 = vsub.f32 %v2742_v25, %v2913_v18  ;;  %v6948_v0 = vpop.eup %6947  ;;  %v2743_v15 = vadd.f32 0.5, %v2711_v41  ;;  %v2656_v48 = vmul.f32 0.5, %v6741_v47  ;;  %v10536_v27 = vand.u32 4294901760, %v8624_v55 }
 0x28c   : > { %v8636_v1 = vpack.c.bf16 %v2913_v18, %v2910_v54  ;;  %v8638_v53 = vsub.f32 %v2741_v57, %v2910_v54  ;;  %v6950_v58 = vpop.eup %6949  ;;  %v2714_v4 = vmul.f32 0.5, %v6948_v0  ;;  %v2655_v32 = vmul.f32 0.5, %v6742_v40  ;;  %v6321_v28 = vpop.f32.mrb[16].mxu0 }
 0x28d   : > { %v2919_v46 = vand.u32 4294901760, %v2744_v39  ;;  %v8643_v7 = vsub.f32 %v8624_v55, %v10536_v27  ;;  %v2713_v17 = vmul.f32 0.5, %v6950_v58  ;;  %6959 = vtanh.f32 %v2656_v48  ;;  %v2547_v19 = vpop.f32.mrb[17].mxu0 }
 0x28e   : > { %10535 = vst [vmem:[#allocation7_spill] sm:$0xff] %v8636_v1  ;;  %v6743_v25 = vadd.f32 %v6321_v28, %v8311_v9  ;;  %v2916_v24 = vand.u32 4294901760, %v2743_v15  ;;  %v2746_v18 = vadd.f32 0.5, %v2714_v4  ;;  %6961 = vtanh.f32 %v2655_v32 }
 0x28f   : > { %v6744_v57 = vadd.f32 %v2547_v19, %v8307_v11  ;;  %v8647_v41 = vsub.f32 %v2744_v39, %v2919_v46  ;;  %v2745_v56 = vadd.f32 0.5, %v2713_v17  ;;  %v3239_v28 = vand.u32 4294901760, %v8643_v7 }
 0x290   : > { %v6952_v47 = vpop.eup %6951  ;;  %v2658_v54 = vmul.f32 0.5, %v6743_v25  ;;  %v8649_v40 = vpack.c.bf16 %v2919_v46, %v2916_v24  ;;  %v8651_v0 = vsub.f32 %v2743_v15, %v2916_v24  ;;  %v6324_v55 = vpop.f32.mrb[18].mxu0  ;;  %v2925_v9 = vand.u32 4294901760, %v2746_v18 }
 0x291   : > { %v6954_v27 = vpop.eup %6953  ;;  %v2716_v58 = vmul.f32 0.5, %v6952_v47  ;;  %v2657_v48 = vmul.f32 0.5, %v6744_v57  ;;  %v6745_v11 = vadd.f32 %v6324_v55, %v8313_v12  ;;  %v2559_v32 = vpop.f32.mrb[19].mxu0  ;;  %v2922_v39 = vand.u32 4294901760, %v2745_v56 }
 0x292   : > { %10537 = vst [vmem:[#allocation40_spill] sm:$0xff] %v8649_v40  ;;  %v2715_v4 = vmul.f32 0.5, %v6954_v27  ;;  %6963 = vtanh.f32 %v2658_v54  ;;  %v6746_v46 = vadd.f32 %v2559_v32, %v8315_v13  ;;  %v8656_v17 = vsub.f32 %v2746_v18, %v2925_v9 }
 0x293   : > { %v2748_v19 = vadd.f32 0.5, %v2716_v58  ;;  %6965 = vtanh.f32 %v2657_v48  ;;  %v6956_v15 = vpop.eup %6955  ;;  %v2660_v24 = vmul.f32 0.5, %v6745_v11  ;;  %v8658_v57 = vpack.c.bf16 %v2925_v9, %v2922_v39 }
 0x294   : > { %v2747_v25 = vadd.f32 0.5, %v2715_v4  ;;  %v8660_v47 = vsub.f32 %v2745_v56, %v2922_v39  ;;  %v6958_v7 = vpop.eup %6957  ;;  %v2718_v27 = vmul.f32 0.5, %v6956_v15  ;;  %v2659_v54 = vmul.f32 0.5, %v6746_v46  ;;  %v6327_v30 = vpop.f32.mrb[20].mxu0 }
 0x295   : > { %10538 = vst [vmem:[#allocation42_spill] sm:$0xff] %v8658_v57  ;;  %v2931_v12 = vand.u32 4294901760, %v2748_v19  ;;  %v10539_v55 = vand.u32 4294901760, %v8618_v45  ;;  %v2717_v48 = vmul.f32 0.5, %v6958_v7  ;;  %6967 = vtanh.f32 %v2660_v24  ;;  %v2571_v18 = vpop.f32.mrb[21].mxu0 }
 0x296   : > { %v6747_v13 = vadd.f32 %v6327_v30, %v8330_v61  ;;  %v2928_v4 = vand.u32 4294901760, %v2747_v25  ;;  %v2750_v11 = vadd.f32 0.5, %v2718_v27  ;;  %6969 = vtanh.f32 %v2659_v54 }
 0x297   : > { %v3245_v58 = vsub.f32 %v8618_v45, %v10539_v55  ;;  %v6748_v56 = vadd.f32 %v2571_v18, %v8332_v6  ;;  %v8667_v9 = vsub.f32 %v2748_v19, %v2931_v12  ;;  %v6960_v32 = vpop.eup %6959  ;;  %v2749_v39 = vadd.f32 0.5, %v2717_v48 }
 0x298   : > { %v2662_v46 = vmul.f32 0.5, %v6747_v13  ;;  %v8669_v15 = vpack.c.bf16 %v2931_v12, %v2928_v4  ;;  %v8671_v52 = vsub.f32 %v2747_v25, %v2928_v4  ;;  %v6962_v55 = vpop.eup %6961  ;;  %v2720_v7 = vmul.f32 0.5, %v6960_v32  ;;  %v6330_v45 = vpop.f32.mrb[22].mxu0 }
 0x299   : > { %v2661_v24 = vmul.f32 0.5, %v6748_v56  ;;  %v2937_v61 = vand.u32 4294901760, %v2750_v11  ;;  %v3246_v30 = vand.u32 4294901760, %v3245_v58  ;;  %v2719_v14 = vmul.f32 0.5, %v6962_v55  ;;  %v2583_v6 = vpop.f32.mrb[23].mxu0 }
 0x29a   : > { %10540 = vst [vmem:[#allocation44_spill] sm:$0xff] %v8669_v15  ;;  %6971 = vtanh.f32 %v2662_v46  ;;  %v6749_v27 = vadd.f32 %v6330_v45, %v8341_v42  ;;  %v2934_v19 = vand.u32 4294901760, %v2749_v39  ;;  %v2752_v54 = vadd.f32 0.5, %v2720_v7 }
 0x29b   : > { %6973 = vtanh.f32 %v2661_v24  ;;  %v6750_v48 = vadd.f32 %v2583_v6, %v8343_v44  ;;  %v8675_v12 = vsub.f32 %v2750_v11, %v2937_v61  ;;  %v2751_v13 = vadd.f32 0.5, %v2719_v14 }
 0x29c   : > { %v6964_v25 = vpop.eup %6963  ;;  %v2664_v18 = vmul.f32 0.5, %v6749_v27  ;;  %v8677_v4 = vpack.c.bf16 %v2937_v61, %v2934_v19  ;;  %v8679_v56 = vsub.f32 %v2749_v39, %v2934_v19  ;;  %v6333_v55 = vpop.f32.mrb[24].mxu0  ;;  %v2943_v42 = vand.u32 4294901760, %v2752_v54 }
 0x29d   : > { %v6966_v58 = vpop.eup %6965  ;;  %v2722_v32 = vmul.f32 0.5, %v6964_v25  ;;  %v2663_v46 = vmul.f32 0.5, %v6750_v48  ;;  %v8681_v45 = vpack.c.bf16 %v3246_v30, %v3239_v28  ;;  %v6751_v44 = vadd.f32 %v6333_v55, %v8370_v21  ;;  %v2595_v11 = vpop.f32.mrb[25].mxu0 }
 0x29e   : > { %10541 = vst [vmem:[#allocation46_spill] sm:$0xff] %v8677_v4  ;;  %v2721_v7 = vmul.f32 0.5, %v6966_v58  ;;  %6975 = vtanh.f32 %v2664_v18  ;;  %v2940_v24 = vand.u32 4294901760, %v2751_v13  ;;  %v6752_v14 = vadd.f32 %v2595_v11, %v8374_v35 }
 0x29f   : > { %v2754_v6 = vadd.f32 0.5, %v2722_v32  ;;  %6977 = vtanh.f32 %v2663_v46  ;;  %v8685_v61 = vsub.f32 %v2752_v54, %v2943_v42  ;;  %v6968_v39 = vpop.eup %6967  ;;  %v2666_v19 = vmul.f32 0.5, %v6751_v44 }
 0x2a0   : > { %v2753_v27 = vadd.f32 0.5, %v2721_v7  ;;  %v8687_v48 = vpack.c.bf16 %v2943_v42, %v2940_v24  ;;  %v8689_v25 = vsub.f32 %v2751_v13, %v2940_v24  ;;  %v6970_v28 = vpop.eup %6969  ;;  %v2724_v30 = vmul.f32 0.5, %v6968_v39  ;;  %v6336_v58 = vpop.f32.mrb[26].mxu0 }
 0x2a1   : > { %v2665_v18 = vmul.f32 0.5, %v6752_v14  ;;  %v2949_v21 = vand.u32 4294901760, %v2754_v6  ;;  %v2723_v32 = vmul.f32 0.5, %v6970_v28  ;;  %6979 = vtanh.f32 %v2666_v19  ;;  %v2607_v54 = vpop.f32.mrb[27].mxu0 }
 0x2a2   : > { %10542 = vst [vmem:[#allocation8_spill] sm:$0xff] %v8687_v48  ;;  %v6753_v35 = vadd.f32 %v6336_v58, %v8435_v33  ;;  %v2946_v46 = vand.u32 4294901760, %v2753_v27  ;;  %v2756_v11 = vadd.f32 0.5, %v2724_v30  ;;  %v6754_v42 = vadd.f32 %v2607_v54, %v8444_v16 }
 0x2a3   : > { %6981 = vtanh.f32 %v2665_v18  ;;  %v8694_v7 = vsub.f32 %v2754_v6, %v2949_v21  ;;  %v2755_v44 = vadd.f32 0.5, %v2723_v32 }
 0x2a4   : > { %v6972_v13 = vpop.eup %6971  ;;  %v2668_v24 = vmul.f32 0.5, %v6753_v35  ;;  %v8696_v14 = vpack.c.bf16 %v2949_v21, %v2946_v46  ;;  %v8698_v39 = vsub.f32 %v2753_v27, %v2946_v46  ;;  %v2667_v19 = vmul.f32 0.5, %v6754_v42  ;;  %v6339_v8 = vpop.f32.mrb[28].mxu0 }
 0x2a5   : > { %v6974_v55 = vpop.eup %6973  ;;  %v2726_v28 = vmul.f32 0.5, %v6972_v13  ;;  %v2955_v33 = vand.u32 4294901760, %v2756_v11  ;;  %v6755_v16 = vadd.f32 %v6339_v8, %v8538_v5  ;;  %v2619_v6 = vpop.f32.mrb[29].mxu0  ;;  %v2952_v18 = vand.u32 4294901760, %v2755_v44 }
 0x2a6   : > { %10543 = vst [vmem:[#allocation47_spill] sm:$0xff] %v8696_v14  ;;  %v2725_v30 = vmul.f32 0.5, %v6974_v55  ;;  %6983 = vtanh.f32 %v2668_v24  ;;  %6536 = vmatprep.subr.bf16.mxu1 %v8696_v14  ;;  %v6756_v27 = vadd.f32 %v2619_v6, %v8547_v31  ;;  %v10154_v14 = vand.u32 4294901760, %v8627_v37 }
 0x2a7   : > { %v2758_v32 = vadd.f32 0.5, %v2726_v28  ;;  %6985 = vtanh.f32 %v2667_v19  ;;  %6538 = vmatpush3.bf16.msra.mxu1 %v8622_v62  ;;  %v8705_v21 = vsub.f32 %v2756_v11, %v2955_v33  ;;  %v2670_v46 = vmul.f32 0.5, %v6755_v16 }
 0x2a8   : > { %v6976_v35 = vpop.eup %6975  ;;  %v2757_v54 = vadd.f32 0.5, %v2725_v30  ;;  %v8707_v42 = vpack.c.bf16 %v2955_v33, %v2952_v18  ;;  %v8709_v55 = vsub.f32 %v2755_v44, %v2952_v18  ;;  %v2669_v13 = vmul.f32 0.5, %v6756_v27  ;;  %v6342_v24 = vpop.f32.mrb[30].mxu0 }
 0x2a9   : > { %v6978_v8 = vpop.eup %6977  ;;  %v2728_v5 = vmul.f32 0.5, %v6976_v35  ;;  %v2961_v58 = vand.u32 4294901760, %v2758_v32  ;;  %6987 = vtanh.f32 %v2670_v46  ;;  %v6757_v31 = vadd.f32 %v6342_v24, %v8615_v20  ;;  %v2631_v11 = vpop.f32.mrb[31].mxu0 }
 0x2aa   : > { %10544 = vst [vmem:[#allocation49_spill] sm:$0xff] %v8707_v42  ;;  %v2727_v19 = vmul.f32 0.5, %v6978_v8  ;;  %6540 = vmatprep.subr.bf16.mxu1 %v8707_v42  ;;  %v2958_v30 = vand.u32 4294901760, %v2757_v54  ;;  %6989 = vtanh.f32 %v2669_v13  ;;  %v6758_v44 = vadd.f32 %v2631_v11, %v8620_v51 }
 0x2ab   : > { %v2760_v16 = vadd.f32 0.5, %v2728_v5  ;;  %6542 = vmatpush3.bf16.msra.mxu1 %v8629_v63  ;;  %v8716_v33 = vsub.f32 %v2758_v32, %v2961_v58  ;;  %v6980_v6 = vpop.eup %6979  ;;  %v2672_v27 = vmul.f32 0.5, %v6757_v31  ;;  %v10547_v5 = vand.u32 4294901760, %v8698_v39 }
 0x2ac   : > { %v2759_v18 = vadd.f32 0.5, %v2727_v19  ;;  %v8718_v35 = vpack.c.bf16 %v2961_v58, %v2958_v30  ;;  %v8720_v46 = vsub.f32 %v2757_v54, %v2958_v30  ;;  %v2730_v8 = vmul.f32 0.5, %v6980_v6 }
 0x2ad   : > { %v6982_v20 = vpop.eup %6981  ;;  %v2671_v24 = vmul.f32 0.5, %v6758_v44  ;;  %v2967_v28 = vand.u32 4294901760, %v2760_v16  ;;  %v3350_v13 = vsub.f32 %v8698_v39, %v10547_v5  ;;  %6991 = vtanh.f32 %v2672_v27 }
 0x2ae   : > { %10545 = vst [vmem:[#allocation52_spill] sm:$0xff] %v8718_v35  ;;  %10546 = vst [vmem:[#allocation53_spill] sm:$0xff] %v8720_v46  ;;  %v2729_v51 = vmul.f32 0.5, %v6982_v20  ;;  %6544 = vmatprep.subr.bf16.mxu1 %v8718_v35  ;;  %v2964_v32 = vand.u32 4294901760, %v2759_v18  ;;  %v10548_v19 = vand.u32 4294901760, %v8694_v7  ;;  %v2762_v31 = vadd.f32 0.5, %v2730_v8 }
 0x2af   : > { %6993 = vtanh.f32 %v2671_v24  ;;  %6546 = vmatpush3.bf16.msra.mxu1 %v8636_v1  ;;  %v8730_v54 = vsub.f32 %v2760_v16, %v2967_v28  ;;  %v3351_v11 = vand.u32 4294901760, %v3350_v13  ;;  %v10146_v42 = vand.u32 4294901760, %v8709_v55 }
 0x2b0   : > { %v3357_v58 = vsub.f32 %v8694_v7, %v10548_v19  ;;  %v6984_v30 = vpop.eup %6983  ;;  %v2761_v44 = vadd.f32 0.5, %v2729_v51  ;;  %v8732_v6 = vpack.c.bf16 %v2967_v28, %v2964_v32  ;;  %v8734_v20 = vsub.f32 %v2759_v18, %v2964_v32 }
 0x2b1   : > { %v6986_v5 = vpop.eup %6985  ;;  %v2732_v35 = vmul.f32 0.5, %v6984_v30  ;;  %v2973_v63 = vand.u32 4294901760, %v2762_v31  ;;  %v10149_v8 = vand.u32 4294901760, %v8705_v21  ;;  %v10550_v13 = vand.u32 4294901760, %v8631_v22 }
 0x2b2   : > { %10549 = vst [vmem:[#allocation11_spill] sm:$0xff] %v8732_v6  ;;  %v3358_v27 = vand.u32 4294901760, %v3357_v58  ;;  %v2731_v24 = vmul.f32 0.5, %v6986_v5  ;;  %6548 = vmatprep.subr.bf16.mxu1 %v8732_v6  ;;  %v2970_v16 = vand.u32 4294901760, %v2761_v44  ;;  %v3364_v32 = vsub.f32 %v8709_v55, %v10146_v42 }
 0x2b3   : > { %v3252_v28 = vsub.f32 %v8631_v22, %v10550_v13  ;;  %v2764_v18 = vadd.f32 0.5, %v2732_v35  ;;  %6550 = vmatpush3.bf16.msra.mxu1 %v8649_v40  ;;  %v8745_v51 = vsub.f32 %v2762_v31, %v2973_v63  ;;  %v3371_v58 = vsub.f32 %v8705_v21, %v10149_v8  ;;  %v6988_v30 = vpop.eup %6987 }
 0x2b4   : > { %v8739_v19 = vpack.c.bf16 %v3358_v27, %v3351_v11  ;;  %v2763_v11 = vadd.f32 0.5, %v2731_v24  ;;  %v8753_v27 = vpack.c.bf16 %v2973_v63, %v2970_v16  ;;  %v8755_v5 = vsub.f32 %v2761_v44, %v2970_v16  ;;  %v6990_v35 = vpop.eup %6989 }
 0x2b5   : > { %v3253_v13 = vand.u32 4294901760, %v3252_v28  ;;  %v2734_v6 = vmul.f32 0.5, %v6988_v30  ;;  %v2979_v40 = vand.u32 4294901760, %v2764_v18  ;;  %v3365_v31 = vand.u32 4294901760, %v3364_v32 }
 0x2b6   : > { %10551 = vst [vmem:[#allocation57_spill] sm:$0xff] %v8753_v27  ;;  %v3372_v1 = vand.u32 4294901760, %v3371_v58  ;;  %v2733_v62 = vmul.f32 0.5, %v6990_v35  ;;  %6552 = vmatprep.subr.bf16.mxu1 %v8753_v27  ;;  %v2976_v42 = vand.u32 4294901760, %v2763_v11  ;;  %v10161_v24 = vand.u32 4294901760, %v8716_v33 }
 0x2b7   : > { %v2766_v22 = vadd.f32 0.5, %v2734_v6  ;;  %6554 = vmatpush3.bf16.msra.mxu1 %v8658_v57  ;;  %v8761_v63 = vsub.f32 %v2764_v18, %v2979_v40  ;;  %v6992_v16 = vpop.eup %6991  ;;  %v3259_v30 = vsub.f32 %v8627_v37, %v10154_v14  ;;  %v10553_v18 = vand.u32 4294901760, %v8720_v46 }
 0x2b8   : > { %v8763_v44 = vpack.c.bf16 %v3372_v1, %v3365_v31  ;;  %v2765_v28 = vadd.f32 0.5, %v2733_v62  ;;  %v8766_v32 = vpack.c.bf16 %v2979_v40, %v2976_v42  ;;  %v8768_v58 = vsub.f32 %v2763_v11, %v2976_v42 }
 0x2b9   : > { %v6994_v35 = vpop.eup %6993  ;;  %v2736_v6 = vmul.f32 0.5, %v6992_v16  ;;  %v2985_v8 = vand.u32 4294901760, %v2766_v22  ;;  %v3378_v1 = vsub.f32 %v8720_v46, %v10553_v18  ;;  %v3385_v31 = vsub.f32 %v8716_v33, %v10161_v24 }
 0x2ba   : > { %10552 = vst [vmem:[#allocation58_spill] sm:$0xff] %v8766_v32  ;;  %v2735_v62 = vmul.f32 0.5, %v6994_v35  ;;  %6556 = vmatprep.subr.bf16.mxu1 %v8766_v32  ;;  %v2982_v40 = vand.u32 4294901760, %v2765_v28  ;;  %v3260_v42 = vand.u32 4294901760, %v3259_v30  ;;  %v10164_v11 = vand.u32 4294901760, %v8638_v53 }
 0x2bb   : > { %v2768_v57 = vadd.f32 0.5, %v2736_v6  ;;  %6558 = vmatpush3.bf16.msra.mxu1 %v8669_v15  ;;  %v8782_v16 = vsub.f32 %v2766_v22, %v2985_v8  ;;  %v3379_v14 = vand.u32 4294901760, %v3378_v1  ;;  %v3386_v27 = vand.u32 4294901760, %v3385_v31 }
 0x2bc   : > { %v2767_v37 = vadd.f32 0.5, %v2735_v62  ;;  %v8784_v18 = vpack.c.bf16 %v2985_v8, %v2982_v40  ;;  %v8786_v46 = vsub.f32 %v2765_v28, %v2982_v40  ;;  %v8788_v24 = vpack.c.bf16 %v3260_v42, %v3253_v13 }
 0x2bd   : > { %v2991_v35 = vand.u32 4294901760, %v2768_v57  ;;  %v8790_v32 = vpack.c.bf16 %v3386_v27, %v3379_v14  ;;  %v3266_v30 = vsub.f32 %v8638_v53, %v10164_v11  ;;  %v10165_v6 = vand.u32 4294901760, %v8634_v34 }
 0x2be   : > { %10554 = vst [vmem:[#allocation61_spill] sm:$0xff] %v8784_v18  ;;  %6560 = vmatprep.subr.bf16.mxu1 %v8784_v18  ;;  %v2988_v22 = vand.u32 4294901760, %v2767_v37  ;;  %v10166_v1 = vand.u32 4294901760, %v8734_v20  ;;  %v10169_v8 = vand.u32 4294901760, %v8730_v54  ;;  %v10172_v28 = vand.u32 4294901760, %v8651_v0 }
 0x2bf   : > { %6562 = vmatpush3.bf16.msra.mxu1 %v8677_v4  ;;  %v8801_v13 = vsub.f32 %v2768_v57, %v2991_v35  ;;  %v3267_v14 = vand.u32 4294901760, %v3266_v30  ;;  %v3273_v27 = vsub.f32 %v8634_v34, %v10165_v6  ;;  %v10173_v31 = vand.u32 4294901760, %v8647_v41 }
 0x2c0   : > { %v8807_v62 = vpack.c.bf16 %v2991_v35, %v2988_v22  ;;  %v8809_v40 = vsub.f32 %v2767_v37, %v2988_v22  ;;  %v3392_v42 = vsub.f32 %v8734_v20, %v10166_v1  ;;  %v3399_v57 = vsub.f32 %v8730_v54, %v10169_v8 }
 0x2c1   : > { %v3274_v11 = vand.u32 4294901760, %v3273_v27  ;;  %v3280_v30 = vsub.f32 %v8651_v0, %v10172_v28  ;;  %v3287_v35 = vsub.f32 %v8647_v41, %v10173_v31  ;;  %v10191_v37 = vand.u32 4294901760, %v8755_v5 }
 0x2c2   : > { %10555 = vst [vmem:[#allocation62_spill] sm:$0xff] %v8807_v62  ;;  %6564 = vmatprep.subr.bf16.mxu1 %v8807_v62  ;;  %v3393_v22 = vand.u32 4294901760, %v3392_v42  ;;  %v3400_v6 = vand.u32 4294901760, %v3399_v57  ;;  %v10176_v1 = vand.u32 4294901760, %v8745_v51  ;;  %v10177_v4 = vand.u32 4294901760, %v8660_v47 }
 0x2c3   : > { %6566 = vmatpush3.bf16.msra.mxu1 %v8687_v48  ;;  %v6577_v27 = vpack.c.bf16 %v3274_v11, %v3267_v14  ;;  %v3281_v8 = vand.u32 4294901760, %v3280_v30  ;;  %v3288_v18 = vand.u32 4294901760, %v3287_v35  ;;  %v3406_v28 = vsub.f32 %v8755_v5, %v10191_v37 }
 0x2c4   : > { %6568 = vmatprep.subr.bf16.mxu1 %v8739_v19  ;;  %v6579_v31 = vpack.c.bf16 %v3400_v6, %v3393_v22  ;;  %v3413_v42 = vsub.f32 %v8745_v51, %v10176_v1  ;;  %v3294_v57 = vsub.f32 %v8660_v47, %v10177_v4  ;;  %v10180_v48 = vand.u32 4294901760, %v8656_v17 }
 0x2c5   : > { %v8839_v11 = vpack.c.bf16 %v3288_v18, %v3281_v8  ;;  %v3407_v14 = vand.u32 4294901760, %v3406_v28  ;;  %v10178_v30 = vand.u32 4294901760, %v8768_v58  ;;  %v10179_v35 = vand.u32 4294901760, %v8761_v63 }
 0x2c6   : > { %v10556_v19 = vand.u32 4294901760, %v8419_v50  ;;  %v3414_v6 = vand.u32 4294901760, %v3413_v42  ;;  %v3295_v22 = vand.u32 4294901760, %v3294_v57  ;;  %v3301_v1 = vsub.f32 %v8656_v17, %v10180_v48 }
 0x2c7   : > { %v10183_v4 = vand.u32 4294901760, %v8671_v52  ;;  %v10557_v18 = vand.u32 4294901760, %v8426_v60  ;;  %v3420_v8 = vsub.f32 %v8768_v58, %v10178_v30  ;;  %v3427_v50 = vsub.f32 %v8761_v63, %v10179_v35 }
 0x2c8   : > { %3004 = vmatmul.mubr.f32.vlgmr.msra.gmra.mrb[0].mxu1 %v10556_v19  ;;  %v10181_v28 = vand.u32 4294901760, %v8667_v9  ;;  %v10182_v42 = vand.u32 4294901760, %v8786_v46  ;;  %v6583_v57 = vpack.c.bf16 %v3414_v6, %v3407_v14  ;;  %v3302_v19 = vand.u32 4294901760, %v3301_v1 }
 0x2c9   : > { %6570 = vmatpush3.bf16.msra.mxu1 %v8681_v45  ;;  %3013 = vmatprep.mubr.f32.mxu1 %v10557_v18  ;;  %v3308_v60 = vsub.f32 %v8671_v52, %v10183_v4  ;;  %v10190_v45 = vand.u32 4294901760, %v8782_v16  ;;  %v3421_v18 = vand.u32 4294901760, %v3420_v8  ;;  %v3428_v30 = vand.u32 4294901760, %v3427_v50 }
 0x2ca   : > { %6572 = vmatprep.subr.bf16.mxu1 %v8763_v44  ;;  %v3315_v35 = vsub.f32 %v8667_v9, %v10181_v28  ;;  %v3434_v48 = vsub.f32 %v8786_v46, %v10182_v42  ;;  %v10558_v44 = vand.u32 4294901760, %v8431_v10  ;;  %v8873_v1 = vpack.c.bf16 %v3302_v19, %v3295_v22 }
 0x2cb   : > { %v3309_v14 = vand.u32 4294901760, %v3308_v60  ;;  %v3441_v6 = vsub.f32 %v8782_v16, %v10190_v45  ;;  %v10189_v8 = vand.u32 4294901760, %v8679_v56  ;;  %v10559_v50 = vand.u32 4294901760, %v8440_v3  ;;  %v10574_v45 = vld [vmem:[#allocation9_spill] sm:$0xff] }
 0x2cc   : > { %3019 = vmatmul.mubr.f32.gmra.mrb[2].mxu1 %v10558_v44  ;;  %v8882_v28 = vpack.c.bf16 %v3428_v30, %v3421_v18  ;;  %v3316_v42 = vand.u32 4294901760, %v3315_v35  ;;  %v3435_v4 = vand.u32 4294901760, %v3434_v48  ;;  %v10184_v10 = vand.u32 4294901760, %v8675_v12 }
 0x2cd   : > { %6574 = vmatpush3.bf16.msra.mxu1 %v8788_v24  ;;  %3028 = vmatprep.mubr.f32.mxu1 %v10559_v50  ;;  %v3442_v22 = vand.u32 4294901760, %v3441_v6  ;;  %v3322_v19 = vsub.f32 %v8679_v56, %v10189_v8  ;;  %v10187_v60 = vand.u32 4294901760, %v8809_v40  ;;  %v10185_v24 = vand.u32 4294901760, %v8801_v13  ;;  %v2787_v50 = vld [vmem:[%s9901_s3 + $0x90] sm:$0xff] }
 0x2ce   : > { %6576 = vmatprep.subr.bf16.mxu1 %v8790_v32  ;;  %v8891_v44 = vpack.c.bf16 %v3316_v42, %v3309_v14  ;;  %v3329_v3 = vsub.f32 %v8675_v12, %v10184_v10  ;;  %v10186_v48 = vand.u32 4294901760, %v8689_v25  ;;  %v10188_v30 = vand.u32 4294901760, %v8685_v61  ;;  %v2788_v32 = vld [vmem:[%s9901_s3 + $0x98] sm:$0xff] }
 0x2cf   : > { %v10560_v35 = vand.u32 4294901760, %v8449_v26  ;;  %v8903_v18 = vpack.c.bf16 %v3442_v22, %v3435_v4  ;;  %v3323_v6 = vand.u32 4294901760, %v3322_v19  ;;  %v3448_v42 = vsub.f32 %v8809_v40, %v10187_v60 }
 0x2d0   : > { %v3455_v14 = vsub.f32 %v8801_v13, %v10185_v24  ;;  %v10561_v10 = vand.u32 4294901760, %v8519_v2  ;;  %v3330_v26 = vand.u32 4294901760, %v3329_v3  ;;  %v3336_v4 = vsub.f32 %v8689_v25, %v10186_v48 }
 0x2d1   : > { %3034 = vmatmul.mubr.f32.gmra.mrb[4].mxu1 %v10560_v35  ;;  %v3343_v22 = vsub.f32 %v8685_v61, %v10188_v30  ;;  %v3449_v35 = vand.u32 4294901760, %v3448_v42  ;;  %v8928_v2 = vand.u32 4294901760, %v2788_v32  ;;  %v8932_v60 = vand.u32 4294901760, %v2787_v50 }
 0x2d2   : > { %6578 = vmatpush3.bf16.msra.mxu1 %v6577_v27  ;;  %3043 = vmatprep.mubr.f32.mxu1 %v10561_v10  ;;  %v3456_v24 = vand.u32 4294901760, %v3455_v14  ;;  %v8926_v27 = vsub.f32 %v8582_v29, %v8599_v49  ;;  %v8930_v10 = vpack.c.bf16 %v3330_v26, %v3323_v6  ;;  %v3337_v3 = vand.u32 4294901760, %v3336_v4  ;;  %v10567_v6 = vld [vmem:[#allocation20_spill] sm:$0xff]  ;;  %v10568_v4 = vld [vmem:[#allocation26_spill] sm:$0xff] }
 0x2d3   : > { %6580 = vmatprep.subr.bf16.mxu1 %v6579_v31  ;;  %10563 = vst [vmem:[#allocation63_spill] sm:$0xff] %v8928_v2  ;;  %v3344_v48 = vand.u32 4294901760, %v3343_v22  ;;  %10564 = vst [vmem:[#allocation64_spill] sm:$0xff] %v8932_v60  ;;  %v10565_v30 = vand.u32 4294901760, %v8524_v38  ;;  %v3072_v19 = vand.u32 4294901760, %v8570_v36  ;;  %v3078_v31 = vand.u32 4294901760, %v8575_v59 }
 0x2d4   : > { %10562 = vst [vmem:[#allocation18_spill] sm:$0xff] %v8926_v27  ;;  %v3087_v42 = vand.u32 4294901760, %v8587_v23  ;;  %v8939_v14 = vpack.c.bf16 %v3456_v24, %v3449_v35  ;;  %v10566_v29 = vand.u32 4294901760, %v8533_v43  ;;  %v3093_v26 = vand.u32 4294901760, %v10567_v6  ;;  %v10569_v38 = vld [vmem:[#allocation28_spill] sm:$0xff]  ;;  %v2790_v59 = vld [vmem:[%s9901_s3 + $0xa8] sm:$0xff] }
 0x2d5   : > { %3049 = vmatmul.mubr.f32.gmra.mrb[6].mxu1 %v10565_v30  ;;  %v3102_v22 = vand.u32 4294901760, %v10568_v4  ;;  %v8946_v8 = vpack.c.bf16 %v3344_v48, %v3337_v3  ;;  %v2789_v23 = vld [vmem:[%s9901_s3 + $0xa0] sm:$0xff]  ;;  %v10570_v36 = vld [vmem:[#allocation27_spill] sm:$0xff]  ;;  %v8958_v24 = vsub.f32 %v2788_v32, %v8928_v2  ;;  %v2792_v48 = vld [vmem:[%s9901_s3 + $0xb8] sm:$0xff]  ;;  %v8966_v3 = vsub.f32 %v2787_v50, %v8932_v60 }
 0x2d6   : > { %6582 = vmatpush3.bf16.msra.mxu1 %v8839_v11  ;;  %3058 = vmatprep.mubr.f32.mxu1 %v10566_v29  ;;  %v10571_v29 = vld [vmem:[#allocation38_spill] sm:$0xff]  ;;  %v10572_v6 = vld [vmem:[#allocation32_spill] sm:$0xff]  ;;  %v10573_v4 = vld [vmem:[#allocation53_spill] sm:$0xff]  ;;  %v10575_v37 = vand.u32 4294901760, %v10574_v45  ;;  %v8976_v11 = vand.u32 4294901760, %v2790_v59  ;;  %v8978_v30 = vand.u32 4294901760, %v2789_v23 }
 0x2d7   : > { %6584 = vmatprep.subr.bf16.mxu1 %v6583_v57  ;;  %v10578_v43 = vand.u32 4294901760, %v10569_v38  ;;  %v8988_v57 = vand.u32 4294901760, %v2792_v48  ;;  %v10580_v50 = vand.u32 4294901760, %v8926_v27  ;;  %v10583_v45 = vand.u32 4294901760, %v8698_v39 }
 0x2d8   : > { %10576 = vst [vmem:[#allocation65_spill] sm:$0xff] %v8976_v11  ;;  %10577 = vst [vmem:[#allocation66_spill] sm:$0xff] %v8978_v30  ;;  %v10592_v62 = vand.u32 4294901760, %v10572_v6 }
 0x2d9   : > { %3064 = vmatmul.mubr.f32.gmra.mrb[8].mxu1 %v10575_v37  ;;  %v3116_v32 = vsub.f32 %v10569_v38, %v10578_v43  ;;  %10579 = vst [vmem:[#allocation67_spill] sm:$0xff] %v8988_v57  ;;  %v3122_v35 = vsub.f32 %v8926_v27, %v10580_v50  ;;  %v9014_v27 = vsub.f32 %v2790_v59, %v8976_v11  ;;  %v10591_v37 = vand.u32 4294901760, %v10571_v29 }
 0x2da   : > { %6586 = vmatpush3.bf16.msra.mxu1 %v8873_v1  ;;  %3073 = vmatprep.mubr.f32.mxu1 %v3072_v19  ;;  %v2791_v19 = vld [vmem:[%s9901_s3 + $0xb0] sm:$0xff]  ;;  %v9017_v43 = vsub.f32 %v2789_v23, %v8978_v30  ;;  %v10588_v23 = vand.u32 4294901760, %v8709_v55  ;;  %v10589_v1 = vand.u32 4294901760, %v8705_v21 }
 0x2db   : > { %6588 = vmatprep.subr.bf16.mxu1 %v8882_v28  ;;  %10581 = vst [vmem:[#allocation20_spill] sm:$0xff] %v9014_v27  ;;  %v10584_v28 = vand.u32 4294901760, %v8694_v7  ;;  %v9031_v59 = vand.u32 4294901760, %v2791_v19 }
 0x2dc   : > { %10582 = vst [vmem:[#allocation26_spill] sm:$0xff] %v9017_v43  ;;  %v9037_v50 = vpack.c.bf16 %v10589_v1, %v10588_v23  ;;  %v10597_v1 = vand.u32 4294901760, %v8638_v53  ;;  %v10598_v23 = vand.u32 4294901760, %v8634_v34 }
 0x2dd   : > { %3079 = vmatmul.mubr.f32.gmra.mrb[10].mxu1 %v3078_v31  ;;  %v9025_v38 = vpack.c.bf16 %v10584_v28, %v10583_v45  ;;  %v9029_v31 = vsub.f32 %v2792_v48, %v8988_v57  ;;  %10587 = vst [vmem:[#allocation32_spill] sm:$0xff] %v9031_v59  ;;  %v9043_v45 = vpack.c.bf16 %v10592_v62, %v10591_v37  ;;  %v10595_v48 = vand.u32 4294901760, %v8716_v33 }
 0x2de   : > { %6590 = vmatpush3.bf16.msra.mxu1 %v8891_v44  ;;  %3088 = vmatprep.mubr.f32.mxu1 %v3087_v42  ;;  %10590 = vst [vmem:[#allocation53_spill] sm:$0xff] %v9037_v50  ;;  %v2794_v44 = vld [vmem:[%s9901_s3 + $0xc8] sm:$0xff]  ;;  %v10594_v42 = vand.u32 4294901760, %v10573_v4  ;;  %v9059_v50 = vpack.c.bf16 %v10598_v23, %v10597_v1  ;;  %v10600_v62 = vand.u32 4294901760, %v8734_v20  ;;  %v10609_v1 = vand.u32 4294901760, %v8660_v47 }
 0x2df   : > { %10585 = vst [vmem:[#allocation27_spill] sm:$0xff] %v9025_v38  ;;  %10586 = vst [vmem:[#allocation38_spill] sm:$0xff] %v9029_v31  ;;  %6592 = vmatprep.subr.bf16.mxu1 %v8903_v18  ;;  %v10601_v18 = vand.u32 4294901760, %v8730_v54  ;;  %v10604_v38 = vand.u32 4294901760, %v8647_v41  ;;  %v10610_v23 = vand.u32 4294901760, %v8656_v17 }
 0x2e0   : > { %10593 = vst [vmem:[#allocation9_spill] sm:$0xff] %v9043_v45  ;;  %v9053_v28 = vpack.c.bf16 %v10595_v48, %v10594_v42  ;;  %10599 = vst [vmem:[#allocation69_spill] sm:$0xff] %v9059_v50  ;;  %v10603_v45 = vand.u32 4294901760, %v8651_v0  ;;  %v10606_v42 = vand.u32 4294901760, %v8755_v5  ;;  %v10607_v48 = vand.u32 4294901760, %v8745_v51 }
 0x2e1   : > { %v9065_v37 = vpack.c.bf16 %v10601_v18, %v10600_v62  ;;  %v9083_v50 = vpack.c.bf16 %v10610_v23, %v10609_v1  ;;  %v10612_v62 = vand.u32 4294901760, %v8768_v58  ;;  %v10613_v18 = vand.u32 4294901760, %v8761_v63  ;;  %3094 = vmatmul.mubr.f32.gmra.mrb[12].mxu1 %v3093_v26 }
 0x2e2   : > { %10596 = vst [vmem:[#allocation68_spill] sm:$0xff] %v9053_v28  ;;  %v9071_v15 = vpack.c.bf16 %v10604_v38, %v10603_v45  ;;  %v9077_v28 = vpack.c.bf16 %v10607_v48, %v10606_v42  ;;  %v10615_v38 = vand.u32 4294901760, %v8671_v52  ;;  %v10616_v45 = vand.u32 4294901760, %v8667_v9  ;;  %6594 = vmatpush3.bf16.msra.mxu1 %v8930_v10  ;;  %3103 = vmatprep.mubr.f32.mxu1 %v3102_v22  ;;  %v2796_v10 = vld [vmem:[%s9901_s3 + $0xd8] sm:$0xff] }
 0x2e3   : > { %10602 = vst [vmem:[#allocation70_spill] sm:$0xff] %v9065_v37  ;;  %10611 = vst [vmem:[#allocation73_spill] sm:$0xff] %v9083_v50  ;;  %v9089_v37 = vpack.c.bf16 %v10613_v18, %v10612_v62  ;;  %v10618_v42 = vand.u32 4294901760, %v8786_v46  ;;  %v10619_v48 = vand.u32 4294901760, %v8782_v16  ;;  %v10621_v1 = vand.u32 4294901760, %v8679_v56  ;;  %6596 = vmatprep.subr.bf16.mxu1 %v8939_v14 }
 0x2e4   : > { %10605 = vst [vmem:[#allocation71_spill] sm:$0xff] %v9071_v15  ;;  %10608 = vst [vmem:[#allocation72_spill] sm:$0xff] %v9077_v28  ;;  %v9095_v15 = vpack.c.bf16 %v10616_v45, %v10615_v38  ;;  %v10622_v23 = vand.u32 4294901760, %v8675_v12  ;;  %v10624_v62 = vand.u32 4294901760, %v8809_v40  ;;  %v10625_v18 = vand.u32 4294901760, %v8801_v13 }
 0x2e5   : > { %10614 = vst [vmem:[#allocation74_spill] sm:$0xff] %v9089_v37  ;;  %v9101_v28 = vpack.c.bf16 %v10619_v48, %v10618_v42  ;;  %v10627_v26 = vand.u32 4294901760, %v8689_v25  ;;  %v10628_v38 = vand.u32 4294901760, %v8685_v61  ;;  %v3117_v42 = vand.u32 4294901760, %v3116_v32 }
 0x2e6   : > { %10617 = vst [vmem:[#allocation75_spill] sm:$0xff] %v9095_v15  ;;  %v9107_v50 = vpack.c.bf16 %v10622_v23, %v10621_v1  ;;  %v9113_v37 = vpack.c.bf16 %v10625_v18, %v10624_v62  ;;  %v10630_v48 = vand.u32 4294901760, %v8958_v24  ;;  %v2793_v62 = vld [vmem:[%s9901_s3 + $0xc0] sm:$0xff]  ;;  %v9137_v32 = vsub.f32 %v2791_v19, %v9031_v59  ;;  %6598 = vmatpush3.bf16.msra.mxu1 %v8946_v8  ;;  %v2798_v8 = vld [vmem:[%s9901_s3 + $0xe8] sm:$0xff] }
 0x2e7   : > { %10620 = vst [vmem:[#allocation76_spill] sm:$0xff] %v9101_v28  ;;  %v9119_v45 = vpack.c.bf16 %v10628_v38, %v10627_v26  ;;  %v10633_v18 = vand.u32 4294901760, %v10570_v36  ;;  %v3123_v26 = vand.u32 4294901760, %v3122_v35  ;;  %v10634_v38 = vand.u32 4294901760, %v8966_v3 }
 0x2e8   : > { %10623 = vst [vmem:[#allocation77_spill] sm:$0xff] %v9107_v50  ;;  %10626 = vst [vmem:[#allocation78_spill] sm:$0xff] %v9113_v37  ;;  %v3131_v1 = vsub.f32 %v8958_v24, %v10630_v48  ;;  %v9126_v50 = vand.u32 4294901760, %v2794_v44  ;;  %v10199_v23 = vand.u32 4294901760, %v9029_v31  ;;  %v9145_v14 = vand.u32 4294901760, %v2793_v62 }
 0x2e9   : > { %10629 = vst [vmem:[#allocation79_spill] sm:$0xff] %v9119_v45  ;;  %10632 = vst [vmem:[#allocation81_spill] sm:$0xff] %v9137_v32  ;;  %3109 = vmatmul.mubr.f32.gmra.mrb[14].mxu1 %v10633_v18  ;;  %v3137_v48 = vsub.f32 %v8966_v3, %v10634_v38  ;;  %v10636_v22 = vand.u32 4294901760, %v9014_v27  ;;  %v9154_v35 = vand.u32 4294901760, %v2796_v10  ;;  %v2795_v18 = vld [vmem:[%s9901_s3 + $0xd0] sm:$0xff]  ;;  %v10639_v38 = vpack.c.bf16 %v8694_v7, %v8698_v39 }
 0x2ea   : > { %10631 = vst [vmem:[#allocation80_spill] sm:$0xff] %v9126_v50  ;;  %10635 = vst [vmem:[#allocation82_spill] sm:$0xff] %v9145_v14  ;;  %3118 = vmatprep.mubr.f32.mxu1 %v3117_v42  ;;  %v3132_v45 = vand.u32 4294901760, %v3131_v1  ;;  %v9152_v36 = vsub.f32 %v2794_v44, %v9126_v50  ;;  %v10640_v42 = vand.u32 4294901760, %v9017_v43  ;;  %v10206_v44 = vand.u32 4294901760, %v9137_v32 }
 0x2eb   : > { %v3146_v19 = vsub.f32 %v9014_v27, %v10636_v22  ;;  %10638 = vst [vmem:[#allocation84_spill] sm:$0xff] %v9154_v35  ;;  %6600 = vmatprep.subr.bf16.mxu1 %v10639_v38  ;;  %v3138_v22 = vand.u32 4294901760, %v3137_v48  ;;  %v3161_v37 = vsub.f32 %v9029_v31, %v10199_v23  ;;  %v9173_v28 = vsub.f32 %v2793_v62, %v9145_v14  ;;  %v2800_v62 = vld [vmem:[%s9901_s3 + $0xf8] sm:$0xff] }
 0x2ec   : > { %10637 = vst [vmem:[#allocation83_spill] sm:$0xff] %v9152_v36  ;;  %v3152_v1 = vsub.f32 %v9017_v43, %v10640_v42  ;;  %v9175_v7 = vand.u32 4294901760, %v2795_v18  ;;  %v9179_v15 = vsub.f32 %v2796_v10, %v9154_v35  ;;  %v9181_v42 = vand.u32 4294901760, %v2798_v8 }
 0x2ed   : > { %3124 = vmatmul.mubr.f32.gmra.mrb[16].mxu1 %v3123_v26  ;;  %10641 = vst [vmem:[#allocation85_spill] sm:$0xff] %v9173_v28  ;;  %v3147_v39 = vand.u32 4294901760, %v3146_v19  ;;  %v2797_v26 = vld [vmem:[%s9901_s3 + $0xe0] sm:$0xff]  ;;  %v3162_v19 = vand.u32 4294901760, %v3161_v37  ;;  %v10211_v10 = vand.u32 4294901760, %v9173_v28  ;;  %v10646_v31 = vand.u32 4294901760, %v9152_v36 }
 0x2ee   : > { %10642 = vst [vmem:[#allocation86_spill] sm:$0xff] %v9175_v7  ;;  %3133 = vmatprep.mubr.f32.mxu1 %v3132_v45  ;;  %10643 = vst [vmem:[#allocation87_spill] sm:$0xff] %v9181_v42  ;;  %v3153_v48 = vand.u32 4294901760, %v3152_v1  ;;  %v3167_v45 = vsub.f32 %v9137_v32, %v10206_v44  ;;  %v9194_v23 = vsub.f32 %v2795_v18, %v9175_v7  ;;  %v9196_v38 = vand.u32 4294901760, %v2797_v26  ;;  %v2799_v37 = vld [vmem:[%s9901_s3 + $0xf0] sm:$0xff] }
 0x2ef   : > { %v3176_v43 = vsub.f32 %v9152_v36, %v10646_v31  ;;  %v9203_v27 = vsub.f32 %v2798_v8, %v9181_v42  ;;  %v9205_v44 = vand.u32 4294901760, %v2800_v62  ;;  %v9217_v1 = vand.u32 4294901760, %v2799_v37 }
 0x2f0   : > { %10644 = vst [vmem:[#allocation88_spill] sm:$0xff] %v9194_v23  ;;  %10645 = vst [vmem:[#allocation89_spill] sm:$0xff] %v9196_v38  ;;  %v3168_v18 = vand.u32 4294901760, %v3167_v45  ;;  %v9215_v31 = vsub.f32 %v2797_v26, %v9196_v38  ;;  %v10650_v36 = vand.u32 4294901760, %v9179_v15 }
 0x2f1   : > { %3139 = vmatmul.mubr.f32.gmra.mrb[18].mxu1 %v3138_v22  ;;  %10647 = vst [vmem:[#allocation90_spill] sm:$0xff] %v9205_v44  ;;  %v3182_v22 = vsub.f32 %v9173_v28, %v10211_v10  ;;  %10649 = vst [vmem:[#allocation92_spill] sm:$0xff] %v9217_v1  ;;  %v3177_v8 = vand.u32 4294901760, %v3176_v43  ;;  %v10218_v45 = vand.u32 4294901760, %v9203_v27 }
 0x2f2   : > { %3148 = vmatprep.mubr.f32.mxu1 %v3147_v39  ;;  %v10214_v39 = vand.u32 4294901760, %v9194_v23  ;;  %10648 = vst [vmem:[#allocation91_spill] sm:$0xff] %v9215_v31  ;;  %v3191_v32 = vsub.f32 %v9179_v15, %v10650_v36  ;;  %v10217_v28 = vand.u32 4294901760, %v9215_v31 }
 0x2f3   : > { %v3183_v10 = vand.u32 4294901760, %v3182_v22  ;;  %v3206_v36 = vsub.f32 %v9203_v27, %v10218_v45 }
 0x2f4   : > { %v3197_v26 = vsub.f32 %v9194_v23, %v10214_v39  ;;  %v3192_v43 = vand.u32 4294901760, %v3191_v32  ;;  %v3212_v22 = vsub.f32 %v9215_v31, %v10217_v28  ;;  %v10651_v28 = vld [vmem:[#allocation35_spill] sm:$0xff]  ;;  %v10654_v31 = vld [vmem:[#allocation2_spill] sm:$0xff] }
 0x2f5   : > { %3154 = vmatmul.mubr.f32.gmra.mrb[20].mxu1 %v3153_v48  ;;  %v9224_v48 = vsub.f32 %v2800_v62, %v9205_v44  ;;  %v3207_v23 = vand.u32 4294901760, %v3206_v36  ;;  %v10653_v36 = vld [vmem:[#allocation29_spill] sm:$0xff] }
 0x2f6   : > { %3163 = vmatprep.mubr.f32.mxu1 %v3162_v19  ;;  %v9231_v19 = vsub.f32 %v2799_v37, %v9217_v1  ;;  %v3213_v37 = vand.u32 4294901760, %v3212_v22  ;;  %v10656_v22 = vpack.c.bf16 %v8705_v21, %v8709_v55  ;;  %v10663_v21 = vld [vmem:[#allocation24_spill] sm:$0xff]  ;;  %v10664_v55 = vpack.c.bf16 %v8730_v54, %v8734_v20  ;;  %v10671_v54 = vld [vmem:[#allocation43_spill] sm:$0xff] }
 0x2f7   : > { %v10222_v62 = vand.u32 4294901760, %v9224_v48  ;;  %v10672_v20 = vpack.c.bf16 %v8761_v63, %v8768_v58  ;;  %v10679_v63 = vld [vmem:[#allocation55_spill] sm:$0xff]  ;;  %v10680_v58 = vpack.c.bf16 %v8801_v13, %v8809_v40  ;;  %v10689_v13 = vld [vmem:[#allocation49_spill] sm:$0xff]  ;;  %v10690_v40 = vld [vmem:[#allocation22_spill] sm:$0xff] }
 0x2f8   : > { %v10221_v39 = vand.u32 4294901760, %v9231_v19 }
 0x2f9   : > { %3169 = vmatmul.mubr.f32.gmra.mrb[22].mxu1 %v3168_v18  ;;  %v3198_v18 = vand.u32 4294901760, %v3197_v26  ;;  %v3221_v32 = vsub.f32 %v9224_v48, %v10222_v62  ;;  %v10707_v62 = vld [vmem:[#allocation44_spill] sm:$0xff] }
 0x2fa   : > { %3178 = vmatprep.mubr.f32.mxu1 %v3177_v8  ;;  %v3227_v8 = vsub.f32 %v9231_v19, %v10221_v39  ;;  %v10706_v39 = vld [vmem:[#allocation54_spill] sm:$0xff] }
 0x2fc   : > { %v3228_v26 = vand.u32 4294901760, %v3227_v8  ;;  %v10660_v8 = vpack.c.bf16 %v8716_v33, %v10573_v4  ;;  %v10667_v33 = vld [vmem:[#allocation34_spill] sm:$0xff]  ;;  %v10668_v4 = vpack.c.bf16 %v8745_v51, %v8755_v5  ;;  %v10675_v51 = vld [vmem:[#allocation48_spill] sm:$0xff]  ;;  %v10676_v5 = vpack.c.bf16 %v8782_v16, %v8786_v46  ;;  %v10683_v46 = vld [vmem:[#allocation13_spill] sm:$0xff] }
 0x2fd   : > { %3184 = vmatmul.mubr.f32.gmra.mrb[24].mxu1 %v3183_v10  ;;  %v3222_v10 = vand.u32 4294901760, %v3221_v32  ;;  %v10658_v32 = vpack.c.bf16 %v10572_v6, %v10571_v29  ;;  %v10665_v29 = vld [vmem:[#allocation25_spill] sm:$0xff]  ;;  %v10666_v6 = vpack.c.bf16 %v8647_v41, %v8651_v0  ;;  %v10674_v0 = vpack.c.bf16 %v8667_v9, %v8671_v52  ;;  %v10681_v52 = vld [vmem:[#allocation56_spill] sm:$0xff]  ;;  %v10684_v16 = vld [vmem:[#allocation47_spill] sm:$0xff] }
 0x2fe   : > { %3193 = vmatprep.mubr.f32.mxu1 %v3192_v43  ;;  %v10652_v43 = vld [vmem:[#allocation31_spill] sm:$0xff]  ;;  %v10673_v41 = vld [vmem:[#allocation45_spill] sm:$0xff]  ;;  %v10682_v9 = vpack.c.bf16 %v8685_v61, %v8689_v25  ;;  %v10687_v61 = vld [vmem:[#allocation30_spill] sm:$0xff] }
 0x2ff   : > { %v6601_v45 = vpack.c.bf16 %v10653_v36, %v10652_v43  ;;  %v10688_v25 = vld [vmem:[#allocation19_spill] sm:$0xff] }
 0x301   : > { %3199 = vmatmul.mubr.f32.gmra.mrb[26].mxu1 %v3198_v18  ;;  %v10655_v18 = vld [vmem:[#allocation14_spill] sm:$0xff] }
 0x302   : > { %3208 = vmatprep.mubr.f32.mxu1 %v3207_v23  ;;  %v10657_v23 = vld [vmem:[#allocation15_spill] sm:$0xff] }
 0x305   : > { %3214 = vmatmul.mubr.f32.gmra.mrb[28].mxu1 %v3213_v37  ;;  %v10659_v37 = vld [vmem:[#allocation4_spill] sm:$0xff] }
 0x306   : > { %3223 = vmatprep.mubr.f32.mxu1 %v3222_v10  ;;  %v10661_v10 = vld [vmem:[#allocation16_spill] sm:$0xff] }
 0x309   : > { %3229 = vmatmul.mubr.f32.gmra.mrb[30].mxu1 %v3228_v26  ;;  %v10691_v26 = vld [vmem:[#allocation33_spill] sm:$0xff] }
 0x30a   : > { %3459 = vmatprep.mubr.f32.mxu1 %v10651_v28 }
 0x30d   : > { %3461 = vmatmul.mubr.f32.vlgmr.msra.gmra.mrb[32].mxu1 %v10654_v31 }
 0x30e   : > { %6602 = vmatpush3.bf16.msra.mxu1 %v6601_v45  ;;  %3466 = vmatprep.mubr.f32.mxu1 %v10655_v18  ;;  %v10662_v45 = vpack.c.bf16 %v8634_v34, %v8638_v53  ;;  %v10669_v34 = vld [vmem:[#allocation6_spill] sm:$0xff]  ;;  %v10670_v53 = vpack.c.bf16 %v8656_v17, %v8660_v47  ;;  %v10678_v47 = vpack.c.bf16 %v8675_v12, %v8679_v56  ;;  %v10685_v12 = vld [vmem:[#allocation3_spill] sm:$0xff]  ;;  %v10686_v56 = vld [vmem:[#allocation17_spill] sm:$0xff] }
 0x30f   : > { %6604 = vmatprep.subr.bf16.mxu1 %v10656_v22  ;;  %v10677_v17 = vld [vmem:[#allocation50_spill] sm:$0xff]  ;;  %v10692_v22 = vld [vmem:[#allocation5_spill] sm:$0xff] }
 0x311   : > { %3468 = vmatmul.mubr.f32.gmra.mrb[34].mxu1 %v10657_v23 }
 0x312   : > { %6606 = vmatpush3.bf16.msra.mxu1 %v10658_v32  ;;  %3473 = vmatprep.mubr.f32.mxu1 %v10659_v37  ;;  %v10693_v32 = vld [vmem:[#allocation52_spill] sm:$0xff] }
 0x313   : > { %6608 = vmatprep.subr.bf16.mxu1 %v10660_v8  ;;  %v10694_v8 = vld [vmem:[#allocation23_spill] sm:$0xff] }
 0x315   : > { %3475 = vmatmul.mubr.f32.gmra.mrb[36].mxu1 %v10661_v10 }
 0x316   : > { %6610 = vmatpush3.bf16.msra.mxu1 %v10662_v45  ;;  %3480 = vmatprep.mubr.f32.mxu1 %v10663_v21  ;;  %v10695_v45 = vld [vmem:[#allocation7_spill] sm:$0xff] }
 0x317   : > { %6612 = vmatprep.subr.bf16.mxu1 %v10664_v55  ;;  %v10696_v55 = vld [vmem:[#allocation36_spill] sm:$0xff] }
 0x319   : > { %3482 = vmatmul.mubr.f32.gmra.mrb[38].mxu1 %v10665_v29 }
 0x31a   : > { %6614 = vmatpush3.bf16.msra.mxu1 %v10666_v6  ;;  %3487 = vmatprep.mubr.f32.mxu1 %v10667_v33  ;;  %v10697_v6 = vld [vmem:[#allocation11_spill] sm:$0xff] }
 0x31b   : > { %6616 = vmatprep.subr.bf16.mxu1 %v10668_v4  ;;  %v10698_v4 = vld [vmem:[#allocation37_spill] sm:$0xff] }
 0x31d   : > { %3489 = vmatmul.mubr.f32.gmra.mrb[40].mxu1 %v10669_v34 }
 0x31e   : > { %6618 = vmatpush3.bf16.msra.mxu1 %v10670_v53  ;;  %3494 = vmatprep.mubr.f32.mxu1 %v10671_v54  ;;  %v10699_v53 = vld [vmem:[#allocation40_spill] sm:$0xff] }
 0x31f   : > { %6620 = vmatprep.subr.bf16.mxu1 %v10672_v20  ;;  %v10700_v20 = vld [vmem:[#allocation39_spill] sm:$0xff] }
 0x321   : > { %3496 = vmatmul.mubr.f32.gmra.mrb[42].mxu1 %v10673_v41  ;;  %v10733_v41 = vand.u32 4294901760, %v10690_v40 }
 0x322   : > { %6622 = vmatpush3.bf16.msra.mxu1 %v10674_v0  ;;  %3501 = vmatprep.mubr.f32.mxu1 %v10675_v51  ;;  %v10701_v0 = vld [vmem:[#allocation57_spill] sm:$0xff]  ;;  %v10731_v51 = vand.u32 4294901760, %v10688_v25 }
 0x323   : > { %6624 = vmatprep.subr.bf16.mxu1 %v10676_v5  ;;  %v10702_v5 = vld [vmem:[#allocation41_spill] sm:$0xff] }
 0x325   : > { %3503 = vmatmul.mubr.f32.gmra.mrb[44].mxu1 %v10677_v17 }
 0x326   : > { %6626 = vmatpush3.bf16.msra.mxu1 %v10678_v47  ;;  %3508 = vmatprep.mubr.f32.mxu1 %v10679_v63  ;;  %v10703_v47 = vld [vmem:[#allocation42_spill] sm:$0xff]  ;;  %v10728_v63 = vand.u32 4294901760, %v10652_v43  ;;  %v10736_v43 = vld [vmem:[#allocation68_spill] sm:$0xff] }
 0x327   : > { %6628 = vmatprep.subr.bf16.mxu1 %v10680_v58  ;;  %v10704_v58 = vld [vmem:[#allocation51_spill] sm:$0xff] }
 0x329   : > { %3510 = vmatmul.mubr.f32.gmra.mrb[46].mxu1 %v10681_v52  ;;  %v10726_v52 = vld [vmem:[#allocation91_spill] sm:$0xff] }
 0x32a   : > { %6630 = vmatpush3.bf16.msra.mxu1 %v10682_v9  ;;  %3515 = vmatprep.mubr.f32.mxu1 %v10683_v46  ;;  %v10705_v9 = vld [vmem:[#allocation58_spill] sm:$0xff]  ;;  %v10723_v46 = vld [vmem:[#allocation83_spill] sm:$0xff] }
 0x32b   : > { %6632 = vmatprep.subr.bf16.mxu1 %v10684_v16 }
 0x32d   : > { %3517 = vmatmul.mubr.f32.gmra.mrb[48].mxu1 %v8599_v49  ;;  %v10722_v49 = vld [vmem:[#allocation81_spill] sm:$0xff] }
 0x32e   : > { %3522 = vmatprep.mubr.f32.mxu1 %v8928_v2  ;;  %v10721_v2 = vld [vmem:[#allocation38_spill] sm:$0xff] }
 0x331   : > { %3524 = vmatmul.mubr.f32.gmra.mrb[50].mxu1 %v8932_v60  ;;  %v10720_v60 = vld [vmem:[#allocation26_spill] sm:$0xff] }
 0x332   : > { %3529 = vmatprep.mubr.f32.mxu1 %v8976_v11  ;;  %v10719_v11 = vld [vmem:[#allocation20_spill] sm:$0xff] }
 0x335   : > { %3531 = vmatmul.mubr.f32.gmra.mrb[52].mxu1 %v8978_v30  ;;  %v10718_v30 = vld [vmem:[#allocation18_spill] sm:$0xff] }
 0x336   : > { %3536 = vmatprep.mubr.f32.mxu1 %v8988_v57  ;;  %v10717_v57 = vld [vmem:[#allocation27_spill] sm:$0xff] }
 0x339   : > { %3538 = vmatmul.mubr.f32.gmra.mrb[54].mxu1 %v9031_v59  ;;  %v10716_v59 = vld [vmem:[#allocation28_spill] sm:$0xff] }
 0x33a   : > { %3543 = vmatprep.mubr.f32.mxu1 %v9126_v50  ;;  %v10715_v50 = vld [vmem:[#allocation8_spill] sm:$0xff] }
 0x33d   : > { %3545 = vmatmul.mubr.f32.gmra.mrb[56].mxu1 %v9145_v14  ;;  %v10714_v14 = vld [vmem:[#allocation12_spill] sm:$0xff] }
 0x33e   : > { %3550 = vmatprep.mubr.f32.mxu1 %v9154_v35  ;;  %v10713_v35 = vld [vmem:[#allocation62_spill] sm:$0xff] }
 0x341   : > { %3552 = vmatmul.mubr.f32.gmra.mrb[58].mxu1 %v9175_v7  ;;  %v10712_v7 = vld [vmem:[#allocation10_spill] sm:$0xff] }
 0x342   : > { %3557 = vmatprep.mubr.f32.mxu1 %v9181_v42  ;;  %v10711_v42 = vld [vmem:[#allocation46_spill] sm:$0xff] }
 0x345   : > { %3559 = vmatmul.mubr.f32.gmra.mrb[60].mxu1 %v9196_v38  ;;  %v10710_v38 = vld [vmem:[#allocation60_spill] sm:$0xff] }
 0x346   : > { %3564 = vmatprep.mubr.f32.mxu1 %v9205_v44  ;;  %v10709_v44 = vld [vmem:[#allocation61_spill] sm:$0xff] }
 0x349   : > { %3566 = vmatmul.mubr.f32.gmra.mrb[62].mxu1 %v9217_v1  ;;  %v10708_v1 = vld [vmem:[#allocation59_spill] sm:$0xff] }
 0x34a   : > { %3701 = vmatprep.mubr.f32.mxu1 %v10685_v12 }
 0x34d   : > { %3704 = vmatmul.mubr.f32.vlgmr.msra.gmra.mrb[64].mxu1 %v10686_v56 }
 0x34e   : > { %6634 = vmatpush3.bf16.msra.mxu1 %v10687_v61  ;;  %3710 = vmatprep.mubr.f32.mxu1 %v10688_v25  ;;  %v10747_v25 = vand.u32 4294901760, %v10704_v58 }
 0x34f   : > { %6636 = vmatprep.subr.bf16.mxu1 %v10689_v13 }
 0x351   : > { %3713 = vmatmul.mubr.f32.gmra.mrb[66].mxu1 %v10690_v40  ;;  %v10748_v40 = vld [vmem:[#allocation74_spill] sm:$0xff] }
 0x352   : > { %6638 = vmatpush3.bf16.msra.mxu1 %v10691_v26  ;;  %3719 = vmatprep.mubr.f32.mxu1 %v10692_v22 }
 0x353   : > { %6640 = vmatprep.subr.bf16.mxu1 %v10693_v32 }
 0x355   : > { %3722 = vmatmul.mubr.f32.gmra.mrb[68].mxu1 %v10694_v8 }
 0x356   : > { %6642 = vmatpush3.bf16.msra.mxu1 %v10695_v45  ;;  %3728 = vmatprep.mubr.f32.mxu1 %v10696_v55 }
 0x357   : > { %6644 = vmatprep.subr.bf16.mxu1 %v10697_v6 }
 0x359   : > { %3731 = vmatmul.mubr.f32.gmra.mrb[70].mxu1 %v10698_v4 }
 0x35a   : > { %6646 = vmatpush3.bf16.msra.mxu1 %v10699_v53  ;;  %3737 = vmatprep.mubr.f32.mxu1 %v10700_v20 }
 0x35b   : > { %6648 = vmatprep.subr.bf16.mxu1 %v10701_v0 }
 0x35d   : > { %3740 = vmatmul.mubr.f32.gmra.mrb[72].mxu1 %v10702_v5 }
 0x35e   : > { %6650 = vmatpush3.bf16.msra.mxu1 %v10703_v47  ;;  %3746 = vmatprep.mubr.f32.mxu1 %v10704_v58  ;;  %v10753_v58 = vand.u32 4294901760, %v10710_v38 }
 0x35f   : > { %6652 = vmatprep.subr.bf16.mxu1 %v10705_v9  ;;  %v10734_v9 = vld [vmem:[#allocation9_spill] sm:$0xff] }
 0x361   : > { %3749 = vmatmul.mubr.f32.gmra.mrb[74].mxu1 %v10706_v39 }
 0x362   : > { %6654 = vmatpush3.bf16.msra.mxu1 %v10707_v62  ;;  %3755 = vmatprep.mubr.f32.mxu1 %v10708_v1  ;;  %v10732_v62 = vld [vmem:[#allocation53_spill] sm:$0xff] }
 0x363   : > { %6656 = vmatprep.subr.bf16.mxu1 %v10709_v44  ;;  %v10730_v44 = vand.u32 4294901760, %v10686_v56  ;;  %v10746_v56 = vld [vmem:[#allocation73_spill] sm:$0xff] }
 0x365   : > { %3758 = vmatmul.mubr.f32.gmra.mrb[76].mxu1 %v10710_v38  ;;  %v10759_v38 = vand.u32 4294901760, %v10716_v59 }
 0x366   : > { %6658 = vmatpush3.bf16.msra.mxu1 %v10711_v42  ;;  %3764 = vmatprep.mubr.f32.mxu1 %v10712_v7  ;;  %v10729_v42 = vand.u32 4294901760, %v10653_v36  ;;  %v10739_v36 = vand.u32 4294901760, %v10696_v55  ;;  %v10749_v55 = vand.u32 4294901760, %v10706_v39  ;;  %v10755_v39 = vand.u32 4294901760, %v10712_v7 }
 0x367   : > { %6660 = vmatprep.subr.bf16.mxu1 %v10713_v35  ;;  %v10727_v35 = vand.u32 4294901760, %v10685_v12  ;;  %v10745_v12 = vand.u32 4294901760, %v10702_v5  ;;  %v10752_v5 = vld [vmem:[#allocation76_spill] sm:$0xff]  ;;  %v10760_v7 = vand.u32 4294901760, %v10718_v30 }
 0x368   : > { %v6665_v17 = vpack.c.bf16 %v10729_v42, %v10728_v63  ;;  %v10737_v42 = vand.u32 4294901760, %v10694_v8  ;;  %v10744_v63 = vld [vmem:[#allocation72_spill] sm:$0xff] }
 0x369   : > { %3767 = vmatmul.mubr.f32.gmra.mrb[78].mxu1 %v10714_v14 }
 0x36a   : > { %6662 = vmatpush3.bf16.msra.mxu1 %v10715_v50  ;;  %3773 = vmatprep.mubr.f32.mxu1 %v10716_v59  ;;  %v10724_v50 = vld [vmem:[#allocation85_spill] sm:$0xff]  ;;  %v10763_v59 = vand.u32 4294901760, %v10719_v11 }
 0x36b   : > { %6664 = vmatprep.subr.bf16.mxu1 %v10717_v57  ;;  %v10725_v57 = vld [vmem:[#allocation88_spill] sm:$0xff] }
 0x36d   : > { %3776 = vmatmul.mubr.f32.gmra.mrb[80].mxu1 %v10718_v30  ;;  %v10764_v30 = vand.u32 4294901760, %v10720_v60 }
 0x36e   : > { %3782 = vmatprep.mubr.f32.mxu1 %v8958_v24 }
 0x371   : > { %3785 = vmatmul.mubr.f32.gmra.mrb[82].mxu1 %v8966_v3 }
 0x372   : > { %3791 = vmatprep.mubr.f32.mxu1 %v10719_v11  ;;  %v10767_v11 = vand.u32 4294901760, %v10723_v46 }
 0x375   : > { %3794 = vmatmul.mubr.f32.gmra.mrb[84].mxu1 %v10720_v60  ;;  %v10768_v60 = vand.u32 4294901760, %v10724_v50 }
 0x376   : > { %3800 = vmatprep.mubr.f32.mxu1 %v10721_v2 }
 0x379   : > { %3803 = vmatmul.mubr.f32.gmra.mrb[86].mxu1 %v10722_v49 }
 0x37a   : > { %3809 = vmatprep.mubr.f32.mxu1 %v10723_v46  ;;  %v10771_v46 = vand.u32 4294901760, %v9203_v27 }
 0x37d   : > { %3812 = vmatmul.mubr.f32.gmra.mrb[88].mxu1 %v10724_v50  ;;  %v10772_v50 = vand.u32 4294901760, %v10726_v52 }
 0x37e   : > { %3818 = vmatprep.mubr.f32.mxu1 %v9179_v15 }
 0x381   : > { %3821 = vmatmul.mubr.f32.gmra.mrb[90].mxu1 %v10725_v57 }
 0x382   : > { %3827 = vmatprep.mubr.f32.mxu1 %v9203_v27 }
 0x385   : > { %3830 = vmatmul.mubr.f32.gmra.mrb[92].mxu1 %v10726_v52 }
 0x386   : > { %3836 = vmatprep.mubr.f32.mxu1 %v9224_v48 }
 0x389   : > { %3839 = vmatmul.mubr.f32.gmra.mrb[94].mxu1 %v9231_v19 }
 0x38a   : > { %3943 = vmatprep.mubr.f32.mxu1 %v10727_v35  ;;  %v10735_v35 = vand.u32 4294901760, %v10692_v22 }
 0x38d   : > { %3947 = vmatmul.mubr.f32.vlgmr.msra.gmra.mrb[96].mxu1 %v10730_v44  ;;  %v10738_v44 = vld [vmem:[#allocation69_spill] sm:$0xff] }
 0x38e   : > { %6666 = vmatpush3.bf16.msra.mxu1 %v6665_v17  ;;  %3954 = vmatprep.mubr.f32.mxu1 %v10731_v51  ;;  %v10740_v51 = vld [vmem:[#allocation70_spill] sm:$0xff]  ;;  %v10743_v17 = vand.u32 4294901760, %v10700_v20  ;;  %v10750_v20 = vld [vmem:[#allocation75_spill] sm:$0xff] }
 0x38f   : > { %6668 = vmatprep.subr.bf16.mxu1 %v10732_v62  ;;  %v10741_v62 = vand.u32 4294901760, %v10698_v4 }
 0x391   : > { %3958 = vmatmul.mubr.f32.gmra.mrb[98].mxu1 %v10733_v41  ;;  %v10742_v41 = vld [vmem:[#allocation71_spill] sm:$0xff] }
 0x392   : > { %6670 = vmatpush3.bf16.msra.mxu1 %v10734_v9  ;;  %3965 = vmatprep.mubr.f32.mxu1 %v10735_v35  ;;  %v10751_v9 = vand.u32 4294901760, %v10708_v1  ;;  %v10757_v1 = vand.u32 4294901760, %v10714_v14 }
 0x393   : > { %6672 = vmatprep.subr.bf16.mxu1 %v10736_v43 }
 0x395   : > { %3969 = vmatmul.mubr.f32.gmra.mrb[100].mxu1 %v10737_v42 }
 0x396   : > { %6674 = vmatpush3.bf16.msra.mxu1 %v10738_v44  ;;  %3976 = vmatprep.mubr.f32.mxu1 %v10739_v36  ;;  %v10754_v44 = vld [vmem:[#allocation77_spill] sm:$0xff]  ;;  %v10756_v36 = vld [vmem:[#allocation78_spill] sm:$0xff] }
 0x397   : > { %6676 = vmatprep.subr.bf16.mxu1 %v10740_v51 }
 0x399   : > { %3980 = vmatmul.mubr.f32.gmra.mrb[102].mxu1 %v10741_v62 }
 0x39a   : > { %6678 = vmatpush3.bf16.msra.mxu1 %v10742_v41  ;;  %3987 = vmatprep.mubr.f32.mxu1 %v10743_v17  ;;  %v10758_v17 = vld [vmem:[#allocation79_spill] sm:$0xff] }
 0x39b   : > { %6680 = vmatprep.subr.bf16.mxu1 %v10744_v63  ;;  %v5415_v22 = vpop.f32.mrb[0].mxu1 }
 0x39c   : > { %v5416_v8 = vpop.f32.mrb[1].mxu1 }
 0x39d   : > { %3991 = vmatmul.mubr.f32.gmra.mrb[104].mxu1 %v10745_v12  ;;  %v9409_v4 = vadd.f32 %v5416_v8, %v5415_v22  ;;  %v10762_v22 = vand.u32 4294901760, %v8966_v3  ;;  %v10766_v3 = vand.u32 4294901760, %v10722_v49  ;;  %v10770_v49 = vand.u32 4294901760, %v10725_v57 }
 0x39e   : > { %6682 = vmatpush3.bf16.msra.mxu1 %v10746_v56  ;;  %3998 = vmatprep.mubr.f32.mxu1 %v10747_v25  ;;  %v10761_v25 = vand.u32 4294901760, %v8958_v24  ;;  %v10765_v24 = vand.u32 4294901760, %v10721_v2  ;;  %v10769_v2 = vand.u32 4294901760, %v9179_v15  ;;  %v10773_v15 = vand.u32 4294901760, %v9224_v48 }
 0x39f   : > { %6684 = vmatprep.subr.bf16.mxu1 %v10748_v40  ;;  %v5418_v35 = vpop.f32.mrb[2].mxu1  ;;  %v10774_v57 = vand.u32 4294901760, %v9231_v19 }
 0x3a0   : > { %v5419_v43 = vpop.f32.mrb[3].mxu1 }
 0x3a1   : > { %4002 = vmatmul.mubr.f32.gmra.mrb[106].mxu1 %v10749_v55  ;;  %v9417_v42 = vadd.f32 %v5419_v43, %v5418_v35 }
 0x3a2   : > { %6686 = vmatpush3.bf16.msra.mxu1 %v10750_v20  ;;  %4009 = vmatprep.mubr.f32.mxu1 %v10751_v9 }
 0x3a3   : > { %6688 = vmatprep.subr.bf16.mxu1 %v10752_v5 }
 0x3a4   : > { %v5421_v51 = vpop.f32.mrb[4].mxu1 }
 0x3a5   : > { %4013 = vmatmul.mubr.f32.gmra.mrb[108].mxu1 %v10753_v58  ;;  %v5422_v62 = vpop.f32.mrb[5].mxu1 }
 0x3a6   : > { %6690 = vmatpush3.bf16.msra.mxu1 %v10754_v44  ;;  %4020 = vmatprep.mubr.f32.mxu1 %v10755_v39  ;;  %v9425_v41 = vadd.f32 %v5422_v62, %v5421_v51 }
 0x3a7   : > { %6692 = vmatprep.subr.bf16.mxu1 %v10756_v36 }
 0x3a8   : > { %v5424_v63 = vpop.f32.mrb[6].mxu1 }
 0x3a9   : > { %4024 = vmatmul.mubr.f32.gmra.mrb[110].mxu1 %v10757_v1  ;;  %v5425_v12 = vpop.f32.mrb[7].mxu1 }
 0x3aa   : > { %6694 = vmatpush3.bf16.msra.mxu1 %v10758_v17  ;;  %4031 = vmatprep.mubr.f32.mxu1 %v10759_v38  ;;  %v9433_v56 = vadd.f32 %v5425_v12, %v5424_v63 }
 0x3ab   : > { %6696 = vmatprep.subr.bf16.mxu1 %v10684_v16 }
 0x3ac   : > { %v5427_v14 = vpop.f32.mrb[8].mxu1 }
 0x3ad   : > { %4035 = vmatmul.mubr.f32.gmra.mrb[112].mxu1 %v10760_v7  ;;  %v5428_v40 = vpop.f32.mrb[9].mxu1 }
 0x3ae   : > { %4042 = vmatprep.mubr.f32.mxu1 %v10761_v25  ;;  %v9439_v8 = vadd.f32 %v5428_v40, %v5427_v14 }
 0x3b0   : > { %v5430_v16 = vpop.f32.mrb[10].mxu1 }
 0x3b1   : > { %4046 = vmatmul.mubr.f32.gmra.mrb[114].mxu1 %v10762_v22  ;;  %v5431_v55 = vpop.f32.mrb[11].mxu1  ;;  %v2825_v22 = vpop.permute.xlu0 %2824 }
 0x3b2   : > { %4053 = vmatprep.mubr.f32.mxu1 %v10763_v59  ;;  %v9445_v20 = vadd.f32 %v5431_v55, %v5430_v16  ;;  %v10775_v55 = vld [vmem:[#allocation58_spill] sm:$0xff] }
 0x3b4   : > { %v5433_v9 = vpop.f32.mrb[12].mxu1 }
 0x3b5   : > { %4057 = vmatmul.mubr.f32.gmra.mrb[116].mxu1 %v10764_v30  ;;  %v5434_v5 = vpop.f32.mrb[13].mxu1 }
 0x3b6   : > { %4064 = vmatprep.mubr.f32.mxu1 %v10765_v24  ;;  %v9451_v35 = vadd.f32 %v5434_v5, %v5433_v9  ;;  %v10777_v5 = vld [vmem:[#allocation44_spill] sm:$0xff] }
 0x3b9   : > { %4068 = vmatmul.mubr.f32.gmra.mrb[118].mxu1 %v10766_v3  ;;  %v10778_v3 = vld [vmem:[#allocation48_spill] sm:$0xff] }
 0x3ba   : > { %4075 = vmatprep.mubr.f32.mxu1 %v10767_v11  ;;  %v2830_v11 = vpop.permute.xlu1 %2829 }
 0x3bc   : > { %v5436_v43 = vpop.f32.mrb[14].mxu1 }
 0x3bd   : > { %v5437_v58 = vpop.f32.mrb[15].mxu1  ;;  %4079 = vmatmul.mubr.f32.gmra.mrb[120].mxu1 %v10768_v60 }
 0x3be   : > { %v9457_v44 = vadd.f32 %v5437_v58, %v5436_v43  ;;  %4086 = vmatprep.mubr.f32.mxu1 %v10769_v2  ;;  %v10779_v43 = vld [vmem:[#allocation61_spill] sm:$0xff] }
 0x3c0   : > { %v5439_v39 = vpop.f32.mrb[16].mxu1 }
 0x3c1   : > { %v5440_v36 = vpop.f32.mrb[17].mxu1  ;;  %4090 = vmatmul.mubr.f32.gmra.mrb[122].mxu1 %v10770_v49 }
 0x3c2   : > { %v9463_v51 = vadd.f32 %v5440_v36, %v5439_v39  ;;  %4097 = vmatprep.mubr.f32.mxu1 %v10771_v46  ;;  %v10780_v39 = vld [vmem:[#allocation50_spill] sm:$0xff]  ;;  %v3021_v36 = vadd.f32 %v9417_v42, %v2825_v22  ;;  %v10782_v46 = vld [vmem:[#allocation55_spill] sm:$0xff]  ;;  %v10786_v42 = vld [vmem:[#allocation13_spill] sm:$0xff] }
 0x3c4   : > { %v5442_v62 = vpop.f32.mrb[18].mxu1 }
 0x3c5   : > { %v5443_v1 = vpop.f32.mrb[19].mxu1  ;;  %4101 = vmatmul.mubr.f32.gmra.mrb[124].mxu1 %v10772_v50 }
 0x3c6   : > { %v9469_v17 = vadd.f32 %v5443_v1, %v5442_v62  ;;  %4108 = vmatprep.mubr.f32.mxu1 %v10773_v15  ;;  %v10783_v62 = vld [vmem:[#allocation62_spill] sm:$0xff]  ;;  %v2835_v15 = vpop.permute.xlu1 %2834 }
 0x3c7   : > { %v3051_v22 = vadd.f32 %v9433_v56, %v2835_v15 }
 0x3c8   : > { %v5445_v38 = vpop.f32.mrb[20].mxu1 }
 0x3c9   : > { %v5446_v63 = vpop.f32.mrb[21].mxu1  ;;  %4112 = vmatmul.mubr.f32.gmra.mrb[126].mxu1 %v10774_v57  ;;  %v3036_v57 = vadd.f32 %v9425_v41, %v2830_v11 }
 0x3ca   : > { %v9475_v12 = vadd.f32 %v5446_v63, %v5445_v38  ;;  %4278 = vmatprep.mubr.f32.mxu1 %v10651_v28  ;;  %v10784_v63 = vld [vmem:[#allocation56_spill] sm:$0xff] }
 0x3cc   : > { %v5448_v27 = vpop.f32.mrb[22].mxu1 }
 0x3cd   : > { %v5449_v7 = vpop.f32.mrb[23].mxu1  ;;  %4280 = vmatmul.mubr.f32.vlgmr.msra.gmra.mrb[128].mxu1 %v10654_v31 }
 0x3ce   : > { %v9479_v52 = vadd.f32 %v5449_v7, %v5448_v27  ;;  %6698 = vmatpush3.bf16.msra.mxu1 %v10687_v61  ;;  %4285 = vmatprep.mubr.f32.mxu1 %v10655_v18  ;;  %v10785_v7 = vld [vmem:[#allocation8_spill] sm:$0xff] }
 0x3cf   : > { %6700 = vmatprep.subr.bf16.mxu1 %v10689_v13 }
 0x3d0   : > { %v5451_v48 = vpop.f32.mrb[24].mxu1 }
 0x3d1   : > { %v5452_v25 = vpop.f32.mrb[25].mxu1  ;;  %4287 = vmatmul.mubr.f32.gmra.mrb[130].mxu1 %v10657_v23 }
 0x3d2   : > { %v9485_v19 = vadd.f32 %v5452_v25, %v5451_v48  ;;  %6702 = vmatpush3.bf16.msra.mxu1 %v10691_v26  ;;  %4292 = vmatprep.mubr.f32.mxu1 %v10659_v37 }
 0x3d3   : > { %6704 = vmatprep.subr.bf16.mxu1 %v10693_v32 }
 0x3d4   : > { %v5454_v14 = vpop.f32.mrb[26].mxu1 }
 0x3d5   : > { %v5455_v40 = vpop.f32.mrb[27].mxu1  ;;  %4294 = vmatmul.mubr.f32.gmra.mrb[132].mxu1 %v10661_v10 }
 0x3d6   : > { %v9491_v61 = vadd.f32 %v5455_v40, %v5454_v14  ;;  %6706 = vmatpush3.bf16.msra.mxu1 %v10695_v45  ;;  %4299 = vmatprep.mubr.f32.mxu1 %v10663_v21 }
 0x3d7   : > { %6708 = vmatprep.subr.bf16.mxu1 %v10697_v6  ;;  %v2820_v6 = vpop.permute.xlu0 %2819 }
 0x3d8   : > { %v5457_v13 = vpop.f32.mrb[28].mxu1  ;;  %v3006_v9 = vadd.f32 %v9409_v4, %v2820_v6  ;;  %v10781_v4 = vld [vmem:[#allocation46_spill] sm:$0xff] }
 0x3d9   : > { %v5458_v59 = vpop.f32.mrb[29].mxu1  ;;  %4301 = vmatmul.mubr.f32.gmra.mrb[134].mxu1 %v10665_v29 }
 0x3da   : > { %v9497_v26 = vadd.f32 %v5458_v59, %v5457_v13  ;;  %6710 = vmatpush3.bf16.msra.mxu1 %v10699_v53  ;;  %4306 = vmatprep.mubr.f32.mxu1 %v10667_v33  ;;  %v10776_v53 = vld [vmem:[#allocation45_spill] sm:$0xff] }
 0x3db   : > { %6712 = vmatprep.subr.bf16.mxu1 %v10701_v0  ;;  %v9515_v60 = vpop.permute.xlu0 %2864  ;;  %v10787_v13 = vld [vmem:[#allocation21_spill] sm:$0xff] }
 0x3dc   : > { %v5460_v32 = vpop.f32.mrb[30].mxu1 }
 0x3dd   : > { %v5461_v16 = vpop.f32.mrb[31].mxu1  ;;  %4308 = vmatmul.mubr.f32.gmra.mrb[136].mxu1 %v10669_v34 }
 0x3de   : > { %v9503_v45 = vadd.f32 %v5461_v16, %v5460_v32  ;;  %6714 = vmatpush3.bf16.msra.mxu1 %v10703_v47  ;;  %4313 = vmatprep.mubr.f32.mxu1 %v10671_v54  ;;  %v10788_v32 = vld [vmem:[#allocation63_spill] sm:$0xff]  ;;  %v2840_v16 = vpop.permute.xlu1 %2839 }
 0x3df   : > { %6716 = vmatprep.subr.bf16.mxu1 %v10775_v55  ;;  %v2870_v48 = vpop.permute.xlu0 %2869 }
 0x3e0   : > { %v5495_v30 = vpop.f32.mrb[32].mxu1 }
 0x3e1   : > { %v5496_v24 = vpop.f32.mrb[33].mxu1  ;;  %4315 = vmatmul.mubr.f32.gmra.mrb[138].mxu1 %v10776_v53 }
 0x3e2   : > { %v5497_v0 = vadd.f32 %v5496_v24, %v5495_v30  ;;  %6718 = vmatpush3.bf16.msra.mxu1 %v10777_v5  ;;  %4320 = vmatprep.mubr.f32.mxu1 %v10778_v3  ;;  %v10789_v24 = vld [vmem:[#allocation64_spill] sm:$0xff]  ;;  %v10790_v5 = vld [vmem:[#allocation65_spill] sm:$0xff]  ;;  %v2845_v56 = vpop.permute.xlu1 %2844 }
 0x3e3   : > { %6720 = vmatprep.subr.bf16.mxu1 %v10779_v43  ;;  %v2860_v55 = vpop.permute.xlu0 %2859 }
 0x3e4   : > { %v9513_v47 = vadd.f32 %v5497_v0, %v3006_v9  ;;  %v5498_v58 = vpop.f32.mrb[34].mxu1  ;;  %v3066_v9 = vadd.f32 %v9439_v8, %v2840_v16 }
 0x3e5   : > { %v5499_v2 = vpop.f32.mrb[35].mxu1  ;;  %4322 = vmatmul.mubr.f32.gmra.mrb[140].mxu1 %v10780_v39 }
 0x3e6   : > { %v5500_v49 = vadd.f32 %v5499_v2, %v5498_v58  ;;  %6722 = vmatpush3.bf16.msra.mxu1 %v10781_v4  ;;  %4327 = vmatprep.mubr.f32.mxu1 %v10782_v46  ;;  %v10791_v2 = vld [vmem:[#allocation66_spill] sm:$0xff]  ;;  %v10792_v4 = vld [vmem:[#allocation67_spill] sm:$0xff] }
 0x3e7   : > { %6724 = vmatprep.subr.bf16.mxu1 %v10783_v62  ;;  %v2850_v62 = vpop.permute.xlu0 %2849 }
 0x3e8   : > { %v9522_v1 = vadd.f32 %v5500_v49, %v3021_v36  ;;  %v5501_v50 = vpop.f32.mrb[36].mxu1  ;;  %v3081_v36 = vadd.f32 %v9445_v20, %v2845_v56  ;;  %v3126_v56 = vadd.f32 %v9463_v51, %v2860_v55  ;;  %v10801_v55 = vld [vmem:[#allocation92_spill] sm:$0xff] }
 0x3e9   : > { %v5502_v38 = vpop.f32.mrb[37].mxu1  ;;  %4329 = vmatmul.mubr.f32.gmra.mrb[142].mxu1 %v10784_v63 }
 0x3ea   : > { %v5503_v27 = vadd.f32 %v5502_v38, %v5501_v50  ;;  %6726 = vmatpush3.bf16.msra.mxu1 %v10785_v7  ;;  %4334 = vmatprep.mubr.f32.mxu1 %v10786_v42  ;;  %v10793_v38 = vld [vmem:[#allocation32_spill] sm:$0xff] }
 0x3eb   : > { %v10794_v7 = vld [vmem:[#allocation80_spill] sm:$0xff] }
 0x3ec   : > { %v9528_v25 = vadd.f32 %v5503_v27, %v3036_v57  ;;  %v5504_v14 = vpop.f32.mrb[38].mxu1  ;;  %v3096_v57 = vadd.f32 %v9451_v35, %v2850_v62  ;;  %v10797_v35 = vld [vmem:[#allocation86_spill] sm:$0xff] }
 0x3ed   : > { %v5505_v40 = vpop.f32.mrb[39].mxu1  ;;  %4336 = vmatmul.mubr.f32.gmra.mrb[144].mxu1 %v10787_v13 }
 0x3ee   : > { %v5506_v59 = vadd.f32 %v5505_v40, %v5504_v14  ;;  %4341 = vmatprep.mubr.f32.mxu1 %v10788_v32 }
 0x3f0   : > { %v9533_v6 = vadd.f32 %v5506_v59, %v3051_v22  ;;  %v5507_v41 = vpop.f32.mrb[40].mxu1  ;;  %v2855_v22 = vpop.permute.xlu0 %2854  ;;  %v10795_v59 = vld [vmem:[#allocation82_spill] sm:$0xff] }
 0x3f1   : > { %v5508_v30 = vpop.f32.mrb[41].mxu1  ;;  %4343 = vmatmul.mubr.f32.gmra.mrb[146].mxu1 %v10789_v24  ;;  %v3111_v16 = vadd.f32 %v9457_v44, %v2855_v22  ;;  %v3141_v44 = vadd.f32 %v9469_v17, %v9515_v60 }
 0x3f2   : > { %v5509_v0 = vadd.f32 %v5508_v30, %v5507_v41  ;;  %4348 = vmatprep.mubr.f32.mxu1 %v10790_v5  ;;  %v10796_v30 = vld [vmem:[#allocation84_spill] sm:$0xff] }
 0x3f4   : > { %v9538_v11 = vadd.f32 %v5509_v0, %v3066_v9  ;;  %v5510_v43 = vpop.f32.mrb[42].mxu1 }
 0x3f5   : > { %v5511_v58 = vpop.f32.mrb[43].mxu1  ;;  %4350 = vmatmul.mubr.f32.gmra.mrb[148].mxu1 %v10791_v2 }
 0x3f6   : > { %v5512_v49 = vadd.f32 %v5511_v58, %v5510_v43  ;;  %4355 = vmatprep.mubr.f32.mxu1 %v10792_v4 }
 0x3f8   : > { %v9543_v50 = vadd.f32 %v5512_v49, %v3081_v36  ;;  %v5513_v15 = vpop.f32.mrb[44].mxu1  ;;  %v10798_v36 = vld [vmem:[#allocation87_spill] sm:$0xff] }
 0x3f9   : > { %v5514_v8 = vpop.f32.mrb[45].mxu1  ;;  %4357 = vmatmul.mubr.f32.gmra.mrb[150].mxu1 %v10793_v38 }
 0x3fa   : > { %v5515_v27 = vadd.f32 %v5514_v8, %v5513_v15  ;;  %4362 = vmatprep.mubr.f32.mxu1 %v10794_v7  ;;  %v10799_v8 = vld [vmem:[#allocation89_spill] sm:$0xff] }
 0x3fc   : > { %v9548_v14 = vadd.f32 %v5515_v27, %v3096_v57  ;;  %v5516_v40 = vpop.f32.mrb[46].mxu1  ;;  %v10800_v27 = vld [vmem:[#allocation90_spill] sm:$0xff] }
 0x3fd   : > { %v5517_v20 = vpop.f32.mrb[47].mxu1  ;;  %4364 = vmatmul.mubr.f32.gmra.mrb[152].mxu1 %v10795_v59 }
 0x3fe   : > { %v5518_v41 = vadd.f32 %v5517_v20, %v5516_v40  ;;  %4369 = vmatprep.mubr.f32.mxu1 %v10796_v30  ;;  %v2875_v20 = vpop.permute.xlu1 %2874 }
 0x3ff   : > { %v3171_v17 = vadd.f32 %v9479_v52, %v2875_v20 }
 0x400   : > { %v9553_v9 = vadd.f32 %v5518_v41, %v3111_v16  ;;  %v5519_v0 = vpop.f32.mrb[48].mxu1  ;;  %v3156_v16 = vadd.f32 %v9475_v12, %v2870_v48 }
 0x401   : > { %v5520_v43 = vpop.f32.mrb[49].mxu1  ;;  %4371 = vmatmul.mubr.f32.gmra.mrb[154].mxu1 %v10797_v35 }
 0x402   : > { %v5521_v58 = vadd.f32 %v5520_v43, %v5519_v0  ;;  %4376 = vmatprep.mubr.f32.mxu1 %v10798_v36 }
 0x404   : > { %v9558_v49 = vadd.f32 %v5521_v58, %v3126_v56  ;;  %v5522_v62 = vpop.f32.mrb[50].mxu1  ;;  %v2880_v58 = vpop.permute.xlu1 %2879 }
 0x405   : > { %v5523_v15 = vpop.f32.mrb[51].mxu1  ;;  %4378 = vmatmul.mubr.f32.gmra.mrb[156].mxu1 %v10799_v8 }
 0x406   : > { %v5524_v57 = vadd.f32 %v5523_v15, %v5522_v62  ;;  %4383 = vmatprep.mubr.f32.mxu1 %v10800_v27 }
 0x408   : > { %v9564_v40 = vadd.f32 %v5524_v57, %v3141_v44  ;;  %v5525_v22 = vpop.f32.mrb[52].mxu1  ;;  %v2885_v57 = vpop.permute.xlu1 %2884 }
 0x409   : > { %v5526_v51 = vpop.f32.mrb[53].mxu1  ;;  %4385 = vmatmul.mubr.f32.gmra.mrb[158].mxu1 %v10801_v55 }
 0x40a   : > { %v5527_v41 = vadd.f32 %v5526_v51, %v5525_v22  ;;  %4487 = vmatprep.mubr.f32.mxu1 %v10651_v28  ;;  %v3186_v28 = vadd.f32 %v9485_v19, %v2880_v58  ;;  %v2890_v51 = vpop.permute.xlu0 %2889 }
 0x40c   : > { %v9569_v0 = vadd.f32 %v5527_v41, %v3156_v16  ;;  %v5528_v43 = vpop.f32.mrb[54].mxu1 }
 0x40d   : > { %v5529_v56 = vpop.f32.mrb[55].mxu1  ;;  %4489 = vmatmul.mubr.f32.vlgmr.msra.gmra.mrb[160].mxu1 %v10654_v31 }
 0x40e   : > { %v5530_v60 = vadd.f32 %v5529_v56, %v5528_v43  ;;  %4494 = vmatprep.mubr.f32.mxu1 %v10655_v18  ;;  %v3201_v18 = vadd.f32 %v9491_v61, %v2885_v57  ;;  %v2895_v43 = vpop.permute.xlu1 %2894 }
 0x410   : > { %v9574_v62 = vadd.f32 %v5530_v60, %v3171_v17  ;;  %v5531_v15 = vpop.f32.mrb[56].mxu1 }
 0x411   : > { %v5532_v44 = vpop.f32.mrb[57].mxu1  ;;  %4496 = vmatmul.mubr.f32.gmra.mrb[162].mxu1 %v10657_v23 }
 0x412   : > { %v5533_v12 = vadd.f32 %v5532_v44, %v5531_v15  ;;  %4501 = vmatprep.mubr.f32.mxu1 %v10659_v37  ;;  %v3216_v37 = vadd.f32 %v9497_v26, %v2890_v51 }
 0x414   : > { %v9579_v48 = vadd.f32 %v5533_v12, %v3186_v28  ;;  %v5534_v31 = vpop.f32.mrb[58].mxu1 }
 0x415   : > { %v5535_v52 = vpop.f32.mrb[59].mxu1  ;;  %4503 = vmatmul.mubr.f32.gmra.mrb[164].mxu1 %v10661_v10 }
 0x416   : > { %v5536_v22 = vadd.f32 %v5535_v52, %v5534_v31  ;;  %4508 = vmatprep.mubr.f32.mxu1 %v10663_v21  ;;  %v3231_v21 = vadd.f32 %v9503_v45, %v2895_v43 }
 0x418   : > { %v9584_v20 = vadd.f32 %v5536_v22, %v3201_v18  ;;  %v5537_v23 = vpop.f32.mrb[60].mxu1 }
 0x419   : > { %v5538_v19 = vpop.f32.mrb[61].mxu1  ;;  %4510 = vmatmul.mubr.f32.gmra.mrb[166].mxu1 %v10665_v29 }
 0x41a   : > { %v5539_v16 = vadd.f32 %v5538_v19, %v5537_v23  ;;  %4515 = vmatprep.mubr.f32.mxu1 %v10667_v33 }
 0x41c   : > { %v9589_v41 = vadd.f32 %v5539_v16, %v3216_v37  ;;  %v5540_v10 = vpop.f32.mrb[62].mxu1 }
 0x41d   : > { %v5541_v61 = vpop.f32.mrb[63].mxu1  ;;  %4517 = vmatmul.mubr.f32.gmra.mrb[168].mxu1 %v10669_v34 }
 0x41e   : > { %v5542_v56 = vadd.f32 %v5541_v61, %v5540_v10  ;;  %4522 = vmatprep.mubr.f32.mxu1 %v10671_v54 }
 0x420   : > { %v9594_v17 = vadd.f32 %v5542_v56, %v3231_v21  ;;  %v5575_v29 = vpop.f32.mrb[64].mxu1 }
 0x421   : > { %v5576_v60 = vpop.f32.mrb[65].mxu1  ;;  %4524 = vmatmul.mubr.f32.gmra.mrb[170].mxu1 %v10776_v53 }
 0x422   : > { %v5577_v26 = vadd.f32 %v5576_v60, %v5575_v29  ;;  %4529 = vmatprep.mubr.f32.mxu1 %v10778_v3 }
 0x424   : > { %v9599_v33 = vadd.f32 %v5577_v26, %v9513_v47  ;;  %v5578_v58 = vpop.f32.mrb[66].mxu1 }
 0x425   : > { %v5579_v15 = vpop.f32.mrb[67].mxu1  ;;  %4531 = vmatmul.mubr.f32.gmra.mrb[172].mxu1 %v10780_v39 }
 0x426   : > { %v5580_v34 = vadd.f32 %v5579_v15, %v5578_v58  ;;  %4536 = vmatprep.mubr.f32.mxu1 %v10782_v46 }
 0x428   : > { %v9604_v54 = vadd.f32 %v5580_v34, %v9522_v1  ;;  %v5581_v45 = vpop.f32.mrb[68].mxu1 }
 0x429   : > { %v5582_v44 = vpop.f32.mrb[69].mxu1  ;;  %4538 = vmatmul.mubr.f32.gmra.mrb[174].mxu1 %v10784_v63 }
 0x42a   : > { %v5583_v53 = vadd.f32 %v5582_v44, %v5581_v45  ;;  %4543 = vmatprep.mubr.f32.mxu1 %v10786_v42 }
 0x42c   : > { %v9609_v3 = vadd.f32 %v5583_v53, %v9528_v25  ;;  %v5584_v47 = vpop.f32.mrb[70].mxu1 }
 0x42d   : > { %v5585_v28 = vpop.f32.mrb[71].mxu1  ;;  %4545 = vmatmul.mubr.f32.gmra.mrb[176].mxu1 %v10787_v13 }
 0x42e   : > { %v5586_v39 = vadd.f32 %v5585_v28, %v5584_v47  ;;  %4550 = vmatprep.mubr.f32.mxu1 %v10788_v32 }
 0x430   : > { %v9614_v46 = vadd.f32 %v5586_v39, %v9533_v6  ;;  %v5587_v1 = vpop.f32.mrb[72].mxu1 }
 0x431   : > { %v5588_v12 = vpop.f32.mrb[73].mxu1  ;;  %4552 = vmatmul.mubr.f32.gmra.mrb[178].mxu1 %v10789_v24 }
 0x432   : > { %v5589_v63 = vadd.f32 %v5588_v12, %v5587_v1  ;;  %4557 = vmatprep.mubr.f32.mxu1 %v10790_v5 }
 0x434   : > { %v9619_v42 = vadd.f32 %v5589_v63, %v9538_v11  ;;  %v5590_v25 = vpop.f32.mrb[74].mxu1 }
 0x435   : > { %v5591_v31 = vpop.f32.mrb[75].mxu1  ;;  %4559 = vmatmul.mubr.f32.gmra.mrb[180].mxu1 %v10791_v2 }
 0x436   : > { %v5592_v13 = vadd.f32 %v5591_v31, %v5590_v25  ;;  %4564 = vmatprep.mubr.f32.mxu1 %v10792_v4 }
 0x438   : > { %v9624_v32 = vadd.f32 %v5592_v13, %v9543_v50  ;;  %v5593_v6 = vpop.f32.mrb[76].mxu1 }
 0x439   : > { %v5594_v57 = vpop.f32.mrb[77].mxu1  ;;  %4566 = vmatmul.mubr.f32.gmra.mrb[182].mxu1 %v10793_v38 }
 0x43a   : > { %v5595_v24 = vadd.f32 %v5594_v57, %v5593_v6  ;;  %4571 = vmatprep.mubr.f32.mxu1 %v10794_v7 }
 0x43c   : > { %v9629_v5 = vadd.f32 %v5595_v24, %v9548_v14  ;;  %v5596_v11 = vpop.f32.mrb[78].mxu1 }
 0x43d   : > { %v5597_v52 = vpop.f32.mrb[79].mxu1  ;;  %4573 = vmatmul.mubr.f32.gmra.mrb[184].mxu1 %v10795_v59 }
 0x43e   : > { %v5598_v2 = vadd.f32 %v5597_v52, %v5596_v11  ;;  %4578 = vmatprep.mubr.f32.mxu1 %v10796_v30 }
 0x440   : > { %v9634_v4 = vadd.f32 %v5598_v2, %v9553_v9  ;;  %v5599_v50 = vpop.f32.mrb[80].mxu1 }
 0x441   : > { %v5600_v18 = vpop.f32.mrb[81].mxu1  ;;  %4580 = vmatmul.mubr.f32.gmra.mrb[186].mxu1 %v10797_v35 }
 0x442   : > { %v5601_v38 = vadd.f32 %v5600_v18, %v5599_v50  ;;  %4585 = vmatprep.mubr.f32.mxu1 %v10798_v36 }
 0x444   : > { %v9639_v7 = vadd.f32 %v5601_v38, %v9558_v49  ;;  %v5602_v14 = vpop.f32.mrb[82].mxu1 }
 0x445   : > { %v5603_v22 = vpop.f32.mrb[83].mxu1  ;;  %4587 = vmatmul.mubr.f32.gmra.mrb[188].mxu1 %v10799_v8 }
 0x446   : > { %v5604_v59 = vadd.f32 %v5603_v22, %v5602_v14  ;;  %4592 = vmatprep.mubr.f32.mxu1 %v10800_v27 }
 0x448   : > { %v9644_v30 = vadd.f32 %v5604_v59, %v9564_v40  ;;  %v5605_v9 = vpop.f32.mrb[84].mxu1 }
 0x449   : > { %v5606_v23 = vpop.f32.mrb[85].mxu1  ;;  %4594 = vmatmul.mubr.f32.gmra.mrb[190].mxu1 %v10801_v55 }
 0x44a   : > { %v5607_v35 = vadd.f32 %v5606_v23, %v5605_v9 }
 0x44c   : > { %v9648_v36 = vadd.f32 %v5607_v35, %v9569_v0  ;;  %v5608_v49 = vpop.f32.mrb[86].mxu1 }
 0x44d   : > { %v5609_v51 = vpop.f32.mrb[87].mxu1 }
 0x44e   : > { %v5610_v19 = vadd.f32 %v5609_v51, %v5608_v49 }
 0x450   : > { %v9651_v37 = vadd.f32 %v5610_v19, %v9574_v62  ;;  %v5611_v8 = vpop.f32.mrb[88].mxu1 }
 0x451   : > { %v5612_v16 = vpop.f32.mrb[89].mxu1 }
 0x452   : > { %v5613_v27 = vadd.f32 %v5612_v16, %v5611_v8 }
 0x454   : > { %v9654_v40 = vadd.f32 %v5613_v27, %v9579_v48  ;;  %v5614_v10 = vpop.f32.mrb[90].mxu1 }
 0x455   : > { %v5615_v43 = vpop.f32.mrb[91].mxu1 }
 0x456   : > { %v5616_v61 = vadd.f32 %v5615_v43, %v5614_v10 }
 0x458   : > { %v9657_v55 = vadd.f32 %v5616_v61, %v9584_v20  ;;  %v5617_v0 = vpop.f32.mrb[92].mxu1 }
 0x459   : > { %v5618_v21 = vpop.f32.mrb[93].mxu1 }
 0x45a   : > { %v5619_v56 = vadd.f32 %v5618_v21, %v5617_v0 }
 0x45c   : > { %v9660_v29 = vadd.f32 %v5619_v56, %v9589_v41  ;;  %v5620_v62 = vpop.f32.mrb[94].mxu1 }
 0x45d   : > { %v5621_v60 = vpop.f32.mrb[95].mxu1 }
 0x45e   : > { %v5622_v26 = vadd.f32 %v5621_v60, %v5620_v62 }
 0x460   : > { %v9663_v58 = vadd.f32 %v5622_v26, %v9594_v17  ;;  %v5655_v48 = vpop.f32.mrb[96].mxu1 }
 0x461   : > { %v5656_v15 = vpop.f32.mrb[97].mxu1 }
 0x462   : > { %v5657_v34 = vadd.f32 %v5656_v15, %v5655_v48 }
 0x464   : > { %v9666_v45 = vadd.f32 %v5657_v34, %v9599_v33  ;;  %v5658_v20 = vpop.f32.mrb[98].mxu1 }
 0x465   : > { %v5659_v44 = vpop.f32.mrb[99].mxu1 }
 0x466   : > { %v5660_v53 = vadd.f32 %v5659_v44, %v5658_v20 }
 0x468   : > { %v9669_v47 = vadd.f32 %v5660_v53, %v9604_v54  ;;  %v5661_v41 = vpop.f32.mrb[100].mxu1 }
 0x469   : > { %v5662_v28 = vpop.f32.mrb[101].mxu1 }
 0x46a   : > { %v5663_v39 = vadd.f32 %v5662_v28, %v5661_v41 }
 0x46c   : > { %v9672_v1 = vadd.f32 %v5663_v39, %v9609_v3  ;;  %v5664_v17 = vpop.f32.mrb[102].mxu1 }
 0x46d   : > { %v5665_v12 = vpop.f32.mrb[103].mxu1 }
 0x46e   : > { %v5666_v63 = vadd.f32 %v5665_v12, %v5664_v17 }
 0x470   : > { %v9675_v25 = vadd.f32 %v5666_v63, %v9614_v46  ;;  %v5667_v33 = vpop.f32.mrb[104].mxu1 }
 0x471   : > { %v5668_v31 = vpop.f32.mrb[105].mxu1 }
 0x472   : > { %v5669_v13 = vadd.f32 %v5668_v31, %v5667_v33 }
 0x474   : > { %v9678_v6 = vadd.f32 %v5669_v13, %v9619_v42  ;;  %v5670_v54 = vpop.f32.mrb[106].mxu1 }
 0x475   : > { %v5671_v57 = vpop.f32.mrb[107].mxu1 }
 0x476   : > { %v5672_v24 = vadd.f32 %v5671_v57, %v5670_v54 }
 0x478   : > { %v9681_v11 = vadd.f32 %v5672_v24, %v9624_v32  ;;  %v5673_v3 = vpop.f32.mrb[108].mxu1 }
 0x479   : > { %v5674_v52 = vpop.f32.mrb[109].mxu1 }
 0x47a   : > { %v5675_v2 = vadd.f32 %v5674_v52, %v5673_v3 }
 0x47c   : > { %v9684_v50 = vadd.f32 %v5675_v2, %v9629_v5  ;;  %v5676_v46 = vpop.f32.mrb[110].mxu1 }
 0x47d   : > { %v5677_v18 = vpop.f32.mrb[111].mxu1 }
 0x47e   : > { %v5678_v38 = vadd.f32 %v5677_v18, %v5676_v46 }
 0x480   : > { %v9687_v14 = vadd.f32 %v5678_v38, %v9634_v4  ;;  %v5679_v42 = vpop.f32.mrb[112].mxu1 }
 0x481   : > { %v5680_v22 = vpop.f32.mrb[113].mxu1 }
 0x482   : > { %v5681_v59 = vadd.f32 %v5680_v22, %v5679_v42 }
 0x484   : > { %v9690_v9 = vadd.f32 %v5681_v59, %v9639_v7  ;;  %v5682_v32 = vpop.f32.mrb[114].mxu1 }
 0x485   : > { %v5683_v23 = vpop.f32.mrb[115].mxu1 }
 0x486   : > { %v5684_v35 = vadd.f32 %v5683_v23, %v5682_v32 }
 0x488   : > { %v9693_v49 = vadd.f32 %v5684_v35, %v9644_v30  ;;  %v5685_v5 = vpop.f32.mrb[116].mxu1 }
 0x489   : > { %v5686_v51 = vpop.f32.mrb[117].mxu1 }
 0x48a   : > { %v5687_v19 = vadd.f32 %v5686_v51, %v5685_v5 }
 0x48c   : > { %v9696_v8 = vadd.f32 %v5687_v19, %v9648_v36  ;;  %v5688_v4 = vpop.f32.mrb[118].mxu1 }
 0x48d   : > { %v5689_v16 = vpop.f32.mrb[119].mxu1 }
 0x48e   : > { %v5690_v27 = vadd.f32 %v5689_v16, %v5688_v4 }
 0x490   : > { %v9699_v10 = vadd.f32 %v5690_v27, %v9651_v37  ;;  %v5691_v7 = vpop.f32.mrb[120].mxu1 }
 0x491   : > { %v5692_v43 = vpop.f32.mrb[121].mxu1 }
 0x492   : > { %v5693_v61 = vadd.f32 %v5692_v43, %v5691_v7  ;;  %v9743_v7 = vpop.permute.xlu0 %4686 }
 0x494   : > { %v9702_v0 = vadd.f32 %v5693_v61, %v9654_v40  ;;  %v5694_v30 = vpop.f32.mrb[122].mxu1 }
 0x495   : > { %v5695_v21 = vpop.f32.mrb[123].mxu1 }
 0x496   : > { %v5696_v56 = vadd.f32 %v5695_v21, %v5694_v30 }
 0x498   : > { %v9705_v62 = vadd.f32 %v5696_v56, %v9657_v55  ;;  %v5697_v36 = vpop.f32.mrb[124].mxu1  ;;  %v4682_v56 = vpop.permute.xlu0 %4681 }
 0x499   : > { %v5698_v60 = vpop.f32.mrb[125].mxu1 }
 0x49a   : > { %v5699_v26 = vadd.f32 %v5698_v60, %v5697_v36 }
 0x49c   : > { %v9708_v48 = vadd.f32 %v5699_v26, %v9660_v29  ;;  %v5700_v37 = vpop.f32.mrb[126].mxu1 }
 0x49d   : > { %v5701_v15 = vpop.f32.mrb[127].mxu1 }
 0x49e   : > { %v5702_v34 = vadd.f32 %v5701_v15, %v5700_v37 }
 0x4a0   : > { %v9711_v20 = vadd.f32 %v5702_v34, %v9663_v58  ;;  %v5735_v40 = vpop.f32.mrb[128].mxu1  ;;  %v9754_v34 = vpop.permute.xlu0 %4726 }
 0x4a1   : > { %v5736_v44 = vpop.f32.mrb[129].mxu1 }
 0x4a2   : > { %v5737_v53 = vadd.f32 %v5736_v44, %v5735_v40 }
 0x4a4   : > { %v9714_v41 = vadd.f32 %v5737_v53, %v9666_v45  ;;  %v5738_v55 = vpop.f32.mrb[130].mxu1 }
 0x4a5   : > { %v5739_v28 = vpop.f32.mrb[131].mxu1 }
 0x4a6   : > { %v5740_v39 = vadd.f32 %v5739_v28, %v5738_v55  ;;  %v9762_v28 = vpop.permute.xlu0 %4731 }
 0x4a8   : > { %v9717_v17 = vadd.f32 %v5740_v39, %v9669_v47  ;;  %v5741_v29 = vpop.f32.mrb[132].mxu1 }
 0x4a9   : > { %v5742_v12 = vpop.f32.mrb[133].mxu1 }
 0x4aa   : > { %v5743_v63 = vadd.f32 %v5742_v12, %v5741_v29 }
 0x4ac   : > { %v9720_v33 = vadd.f32 %v5743_v63, %v9672_v1  ;;  %v5744_v58 = vpop.f32.mrb[134].mxu1 }
 0x4ad   : > { %v5745_v31 = vpop.f32.mrb[135].mxu1 }
 0x4ae   : > { %v5746_v13 = vadd.f32 %v5745_v31, %v5744_v58  ;;  %v9767_v31 = vpop.permute.xlu0 %4721 }
 0x4b0   : > { %v9723_v54 = vadd.f32 %v5746_v13, %v9675_v25  ;;  %v5747_v45 = vpop.f32.mrb[136].mxu1 }
 0x4b1   : > { %v5748_v57 = vpop.f32.mrb[137].mxu1 }
 0x4b2   : > { %v5749_v24 = vadd.f32 %v5748_v57, %v5747_v45 }
 0x4b4   : > { %v9726_v3 = vadd.f32 %v5749_v24, %v9678_v6  ;;  %v5750_v47 = vpop.f32.mrb[138].mxu1 }
 0x4b5   : > { %v5751_v52 = vpop.f32.mrb[139].mxu1 }
 0x4b6   : > { %v5752_v2 = vadd.f32 %v5751_v52, %v5750_v47  ;;  %v9771_v52 = vpop.permute.xlu0 %4711 }
 0x4b8   : > { %v9729_v46 = vadd.f32 %v5752_v2, %v9681_v11  ;;  %v5753_v1 = vpop.f32.mrb[140].mxu1 }
 0x4b9   : > { %v5754_v18 = vpop.f32.mrb[141].mxu1 }
 0x4ba   : > { %v5755_v38 = vadd.f32 %v5754_v18, %v5753_v1 }
 0x4bc   : > { %v9732_v42 = vadd.f32 %v5755_v38, %v9684_v50  ;;  %v5756_v25 = vpop.f32.mrb[142].mxu1 }
 0x4bd   : > { %v5757_v22 = vpop.f32.mrb[143].mxu1 }
 0x4be   : > { %v5758_v59 = vadd.f32 %v5757_v22, %v5756_v25 }
 0x4c0   : > { %v9735_v32 = vadd.f32 %v5758_v59, %v9687_v14  ;;  %v5759_v6 = vpop.f32.mrb[144].mxu1  ;;  %v9774_v59 = vpop.permute.xlu0 %4716 }
 0x4c1   : > { %v5760_v23 = vpop.f32.mrb[145].mxu1 }
 0x4c2   : > { %v5761_v35 = vadd.f32 %v5760_v23, %v5759_v6 }
 0x4c4   : > { %v9738_v5 = vadd.f32 %v5761_v35, %v9690_v9  ;;  %v5762_v11 = vpop.f32.mrb[146].mxu1 }
 0x4c5   : > { %v5763_v51 = vpop.f32.mrb[147].mxu1 }
 0x4c6   : > { %v5764_v19 = vadd.f32 %v5763_v51, %v5762_v11 }
 0x4c8   : > { %v9741_v4 = vadd.f32 %v5764_v19, %v9693_v49  ;;  %v5765_v50 = vpop.f32.mrb[148].mxu1  ;;  %v4692_v19 = vpop.permute.xlu1 %4691 }
 0x4c9   : > { %v5766_v16 = vpop.f32.mrb[149].mxu1 }
 0x4ca   : > { %v5767_v27 = vadd.f32 %v5766_v16, %v5765_v50 }
 0x4cc   : > { %v9746_v14 = vadd.f32 %v5767_v27, %v9696_v8  ;;  %v5768_v43 = vpop.f32.mrb[150].mxu1  ;;  %v9778_v27 = vpop.permute.xlu0 %4751 }
 0x4cd   : > { %v5769_v61 = vpop.f32.mrb[151].mxu1 }
 0x4ce   : > { %v5770_v30 = vadd.f32 %v5769_v61, %v5768_v43 }
 0x4d0   : > { %v9749_v9 = vadd.f32 %v5770_v30, %v9699_v10  ;;  %v5771_v21 = vpop.f32.mrb[152].mxu1 }
 0x4d1   : > { %v5772_v36 = vpop.f32.mrb[153].mxu1 }
 0x4d2   : > { %v5773_v60 = vadd.f32 %v5772_v36, %v5771_v21 }
 0x4d4   : > { %v9752_v49 = vadd.f32 %v5773_v60, %v9702_v0  ;;  %v5774_v26 = vpop.f32.mrb[154].mxu1 }
 0x4d5   : > { %v5775_v37 = vpop.f32.mrb[155].mxu1 }
 0x4d6   : > { %v5776_v15 = vadd.f32 %v5775_v37, %v5774_v26 }
 0x4d8   : > { %v9757_v8 = vadd.f32 %v5776_v15, %v9705_v62  ;;  %v5777_v40 = vpop.f32.mrb[156].mxu1  ;;  %v4697_v15 = vpop.permute.xlu1 %4696 }
 0x4d9   : > { %v5778_v44 = vpop.f32.mrb[157].mxu1 }
 0x4da   : > { %v5779_v53 = vadd.f32 %v5778_v44, %v5777_v40 }
 0x4dc   : > { %v9760_v10 = vadd.f32 %v5779_v53, %v9708_v48  ;;  %v5780_v55 = vpop.f32.mrb[158].mxu1 }
 0x4dd   : > { %v5781_v39 = vpop.f32.mrb[159].mxu1 }
 0x4de   : > { %v5782_v0 = vadd.f32 %v5781_v39, %v5780_v55 }
 0x4e0   : > { %v9765_v29 = vadd.f32 %v5782_v0, %v9711_v20  ;;  %v5815_v12 = vpop.f32.mrb[160].mxu1  ;;  %v9781_v0 = vpop.permute.xlu0 %4875 }
 0x4e1   : > { %v5816_v63 = vpop.f32.mrb[161].mxu1 }
 0x4e2   : > { %v5817_v58 = vadd.f32 %v5816_v63, %v5815_v12 }
 0x4e4   : > { %v4491_v62 = vadd.f32 %v5817_v58, %v9714_v41  ;;  %v5818_v13 = vpop.f32.mrb[162].mxu1 }
 0x4e5   : > { %v5819_v45 = vpop.f32.mrb[163].mxu1 }
 0x4e6   : > { %v4599_v57 = vmul.f32 0.5, %v4491_v62  ;;  %v5820_v48 = vadd.f32 %v5819_v45, %v5818_v13 }
 0x4e8   : > { %6995 = vtanh.f32 %v4599_v57  ;;  %v4498_v24 = vadd.f32 %v5820_v48, %v9717_v17  ;;  %v5821_v47 = vpop.f32.mrb[164].mxu1 }
 0x4e9   : > { %v5822_v2 = vpop.f32.mrb[165].mxu1 }
 0x4ea   : > { %v4600_v20 = vmul.f32 0.5, %v4498_v24  ;;  %v5823_v1 = vadd.f32 %v5822_v2, %v5821_v47  ;;  %v4881_v24 = vrot.slane %v9781_v0, 1 }
 0x4ec   : > { %6997 = vtanh.f32 %v4600_v20  ;;  %v4505_v18 = vadd.f32 %v5823_v1, %v9720_v33  ;;  %v5824_v38 = vpop.f32.mrb[166].mxu1  ;;  %v4702_v20 = vpop.permute.xlu1 %4701 }
 0x4ed   : > { %v5825_v25 = vpop.f32.mrb[167].mxu1 }
 0x4ee   : > { %v4601_v22 = vmul.f32 0.5, %v4505_v18  ;;  %v5826_v41 = vadd.f32 %v5825_v25, %v5824_v38 }
 0x4f0   : > { %6999 = vtanh.f32 %v4601_v22  ;;  %v4512_v6 = vadd.f32 %v5826_v41, %v9723_v54  ;;  %v5827_v23 = vpop.f32.mrb[168].mxu1  ;;  %v4883_v41 = vrot.slane %v9781_v0, 3 }
 0x4f1   : > { %v5828_v17 = vpop.f32.mrb[169].mxu1 }
 0x4f2   : > { %v6996_v35 = vpop.eup %6995  ;;  %v4602_v11 = vmul.f32 0.5, %v4512_v6  ;;  %v5829_v51 = vadd.f32 %v5828_v17, %v5827_v23 }
 0x4f3   : > { %v4631_v50 = vmul.f32 0.5, %v6996_v35 }
 0x4f4   : > { %7001 = vtanh.f32 %v4602_v11  ;;  %v4519_v16 = vadd.f32 %v5829_v51, %v9726_v3  ;;  %v5830_v33 = vpop.f32.mrb[170].mxu1  ;;  %v4884_v11 = vrot.slane %v9781_v0, 4 }
 0x4f5   : > { %v4647_v43 = vadd.f32 0.5, %v4631_v50  ;;  %v5831_v61 = vpop.f32.mrb[171].mxu1 }
 0x4f6   : > { %v6998_v30 = vpop.eup %6997  ;;  %v4603_v21 = vmul.f32 0.5, %v4519_v16  ;;  %v5832_v36 = vadd.f32 %v5831_v61, %v5830_v33 }
 0x4f7   : > { %v4759_v60 = vmul.f32 %v4682_v56, %v4647_v43  ;;  %v4632_v54 = vmul.f32 0.5, %v6998_v30 }
 0x4f8   : > { %7003 = vtanh.f32 %v4603_v21  ;;  %v4526_v26 = vadd.f32 %v5832_v36, %v9729_v46  ;;  %v5833_v37 = vpop.f32.mrb[172].mxu1 }
 0x4f9   : > { %v4775_v40 = vrot.slane %v4759_v60, 4  ;;  %v4648_v44 = vadd.f32 0.5, %v4632_v54  ;;  %v5834_v53 = vpop.f32.mrb[173].mxu1  ;;  %v4887_v54 = vrot.slane %v9781_v0, 7 }
 0x4fa   : > { %v7000_v55 = vpop.eup %6999  ;;  %v4604_v3 = vmul.f32 0.5, %v4526_v26  ;;  %v5835_v39 = vadd.f32 %v5834_v53, %v5833_v37  ;;  %v4707_v26 = vpop.permute.xlu1 %4706 }
 0x4fb   : > { %v4776_v12 = vadd.f32 %v4775_v40, %v4759_v60  ;;  %v4760_v63 = vmul.f32 %v9743_v7, %v4648_v44  ;;  %v4633_v58 = vmul.f32 0.5, %v7000_v55  ;;  %v4882_v7 = vrot.slane %v9781_v0, 2 }
 0x4fc   : > { %7005 = vtanh.f32 %v4604_v3  ;;  %v4533_v56 = vadd.f32 %v5835_v39, %v9732_v42  ;;  %v5836_v62 = vpop.f32.mrb[174].mxu1 }
 0x4fd   : > { %v4777_v13 = vrot.slane %v4776_v12, 2  ;;  %v4781_v46 = vrot.slane %v4760_v63, 4  ;;  %v4649_v45 = vadd.f32 0.5, %v4633_v58  ;;  %v5837_v57 = vpop.f32.mrb[175].mxu1 }
 0x4fe   : > { %v7002_v48 = vpop.eup %7001  ;;  %v4605_v47 = vmul.f32 0.5, %v4533_v56  ;;  %v5838_v2 = vadd.f32 %v5837_v57, %v5836_v62 }
 0x4ff   : > { %v4778_v1 = vadd.f32 %v4777_v13, %v4776_v12  ;;  %v4782_v18 = vadd.f32 %v4781_v46, %v4760_v63  ;;  %v4761_v38 = vmul.f32 %v4692_v19, %v4649_v45  ;;  %v4634_v25 = vmul.f32 0.5, %v7002_v48 }
 0x500   : > { %7007 = vtanh.f32 %v4605_v47  ;;  %v4540_v42 = vadd.f32 %v5838_v2, %v9735_v32  ;;  %v5839_v22 = vpop.f32.mrb[176].mxu1  ;;  %v4885_v19 = vrot.slane %v9781_v0, 5  ;;  %v4886_v32 = vrot.slane %v9781_v0, 6 }
 0x501   : > { %v4783_v6 = vrot.slane %v4782_v18, 2  ;;  %v4787_v23 = vrot.slane %v4761_v38, 4  ;;  %v4650_v17 = vadd.f32 0.5, %v4634_v25  ;;  %v5840_v35 = vpop.f32.mrb[177].mxu1  ;;  %v4779_v50 = vrot.slane %v4778_v1, 1 }
 0x502   : > { %v7004_v51 = vpop.eup %7003  ;;  %v4606_v16 = vmul.f32 0.5, %v4540_v42  ;;  %v5841_v33 = vadd.f32 %v5840_v35, %v5839_v22  ;;  %v9796_v22 = vpop.permute.xlu1 %4736 }
 0x503   : > { %v4784_v43 = vadd.f32 %v4783_v6, %v4782_v18  ;;  %v4788_v61 = vadd.f32 %v4787_v23, %v4761_v38  ;;  %v4762_v30 = vmul.f32 %v4697_v15, %v4650_v17  ;;  %v4635_v21 = vmul.f32 0.5, %v7004_v51 }
 0x504   : > { %7009 = vtanh.f32 %v4606_v16  ;;  %v4547_v36 = vadd.f32 %v5841_v33, %v9738_v5  ;;  %v5842_v60 = vpop.f32.mrb[178].mxu1  ;;  %v4780_v3 = vadd.f32 %v4779_v50, %v4778_v1 }
 0x505   : > { %v4785_v37 = vrot.slane %v4784_v43, 1  ;;  %v4789_v40 = vrot.slane %v4788_v61, 2  ;;  %v4793_v44 = vrot.slane %v4762_v30, 4  ;;  %v5843_v53 = vpop.f32.mrb[179].mxu1  ;;  %v4651_v39 = vadd.f32 0.5, %v4635_v21 }
 0x506   : > { %v7006_v55 = vpop.eup %7005  ;;  %v4607_v12 = vmul.f32 0.5, %v4547_v36  ;;  %v5844_v15 = vadd.f32 %v5843_v53, %v5842_v60  ;;  %v4911_v1 = vadd.f32 %v9781_v0, %v4780_v3 }
 0x507   : > { %v4786_v63 = vadd.f32 %v4785_v37, %v4784_v43  ;;  %v4790_v58 = vadd.f32 %v4789_v40, %v4788_v61  ;;  %v4794_v56 = vadd.f32 %v4793_v44, %v4762_v30  ;;  %v4636_v62 = vmul.f32 0.5, %v7006_v55 }
 0x508   : > { %v4763_v13 = vmul.f32 %v4702_v20, %v4651_v39  ;;  %7011 = vtanh.f32 %v4607_v12  ;;  %v4554_v5 = vadd.f32 %v5844_v15, %v9741_v4  ;;  %v5845_v46 = vpop.f32.mrb[180].mxu1  ;;  %v9804_v39 = vpop.permute.xlu1 %4741 }
 0x509   : > { %v4912_v45 = vadd.f32 %v4881_v24, %v4786_v63  ;;  %v4791_v57 = vrot.slane %v4790_v58, 1  ;;  %v4795_v48 = vrot.slane %v4794_v56, 2  ;;  %v4652_v47 = vadd.f32 0.5, %v4636_v62  ;;  %v5846_v2 = vpop.f32.mrb[181].mxu1 }
 0x50a   : > { %v7008_v18 = vpop.eup %7007  ;;  %v4799_v38 = vrot.slane %v4763_v13, 4  ;;  %v4608_v25 = vmul.f32 0.5, %v4554_v5  ;;  %v5847_v42 = vadd.f32 %v5846_v2, %v5845_v46 }
 0x50b   : > { %v4943_v20 = vrot.slane %v4912_v45, 7  ;;  %v4792_v6 = vadd.f32 %v4791_v57, %v4790_v58  ;;  %v4796_v23 = vadd.f32 %v4795_v48, %v4794_v56  ;;  %v4764_v4 = vmul.f32 %v4707_v26, %v4652_v47 }
 0x50c   : > { %v4800_v17 = vadd.f32 %v4799_v38, %v4763_v13  ;;  %v4637_v35 = vmul.f32 0.5, %v7008_v18  ;;  %7013 = vtanh.f32 %v4608_v25  ;;  %v4561_v24 = vadd.f32 %v5847_v42, %v9746_v14  ;;  %v5848_v51 = vpop.f32.mrb[182].mxu1 }
 0x50d   : > { %v4913_v50 = vadd.f32 %v4882_v7, %v4792_v6  ;;  %v4797_v16 = vrot.slane %v4796_v23, 1  ;;  %v4805_v33 = vrot.slane %v4764_v4, 4  ;;  %v5849_v43 = vpop.f32.mrb[183].mxu1  ;;  %v4945_v61 = vsel %vm4944_vm1, %v4943_v20, %v4911_v1 }
 0x50e   : > { %v7010_v30 = vpop.eup %7009  ;;  %v4801_v21 = vrot.slane %v4800_v17, 2  ;;  %v4653_v36 = vadd.f32 0.5, %v4637_v35  ;;  %v4609_v60 = vmul.f32 0.5, %v4561_v24  ;;  %v5850_v37 = vadd.f32 %v5849_v43, %v5848_v51  ;;  %v9814_v35 = vpop.permute.xlu1 %4746 }
 0x50f   : > { %v4946_v26 = vrot.slane %v4913_v50, 6  ;;  %v4798_v40 = vadd.f32 %v4797_v16, %v4796_v23  ;;  %v4806_v44 = vadd.f32 %v4805_v33, %v4764_v4  ;;  %v4638_v53 = vmul.f32 0.5, %v7010_v30 }
 0x510   : > { %v4802_v14 = vadd.f32 %v4801_v21, %v4800_v17  ;;  %v4765_v55 = vmul.f32 %v9771_v52, %v4653_v36  ;;  %7015 = vtanh.f32 %v4609_v60  ;;  %v4568_v7 = vadd.f32 %v5850_v37, %v9749_v9  ;;  %v5851_v3 = vpop.f32.mrb[184].mxu1 }
 0x511   : > { %v4807_v12 = vrot.slane %v4806_v44, 2  ;;  %v4654_v15 = vadd.f32 0.5, %v4638_v53  ;;  %v5852_v63 = vpop.f32.mrb[185].mxu1  ;;  %v4914_v58 = vadd.f32 %v4883_v41, %v4798_v40  ;;  %v4948_v56 = vsel %vm4947_vm2, %v4946_v26, %v4945_v61 }
 0x512   : > { %v7012_v62 = vpop.eup %7011  ;;  %v4803_v13 = vrot.slane %v4802_v14, 1  ;;  %v4811_v5 = vrot.slane %v4765_v55, 4  ;;  %v4610_v46 = vmul.f32 0.5, %v4568_v7  ;;  %v5853_v45 = vadd.f32 %v5852_v63, %v5851_v3  ;;  %v9823_v63 = vpop.permute.xlu1 %4756 }
 0x513   : > { %v4808_v52 = vadd.f32 %v4807_v12, %v4806_v44  ;;  %v4766_v57 = vmul.f32 %v9774_v59, %v4654_v15  ;;  %v4639_v9 = vmul.f32 0.5, %v7012_v62  ;;  %v4949_v48 = vrot.slane %v4914_v58, 5 }
 0x514   : > { %v4804_v47 = vadd.f32 %v4803_v13, %v4802_v14  ;;  %v4812_v2 = vadd.f32 %v4811_v5, %v4765_v55  ;;  %7017 = vtanh.f32 %v4610_v46  ;;  %v4575_v18 = vadd.f32 %v5853_v45, %v9752_v49  ;;  %v5854_v1 = vpop.f32.mrb[186].mxu1 }
 0x515   : > { %v4809_v41 = vrot.slane %v4808_v52, 1  ;;  %v4817_v38 = vrot.slane %v4766_v57, 4  ;;  %v4655_v25 = vadd.f32 0.5, %v4639_v9  ;;  %v5855_v42 = vpop.f32.mrb[187].mxu1  ;;  %v4951_v20 = vsel %vm4950_vm3, %v4949_v48, %v4948_v56 }
 0x516   : > { %v7014_v6 = vpop.eup %7013  ;;  %v4813_v23 = vrot.slane %v4812_v2, 2  ;;  %v4611_v4 = vmul.f32 0.5, %v4575_v18  ;;  %v5856_v17 = vadd.f32 %v5855_v42, %v5854_v1  ;;  %v4915_v59 = vadd.f32 %v4884_v11, %v4804_v47 }
 0x517   : > { %v4818_v24 = vadd.f32 %v4817_v38, %v4766_v57  ;;  %v4767_v51 = vmul.f32 %v9767_v31, %v4655_v25  ;;  %v4640_v49 = vmul.f32 0.5, %v7014_v6  ;;  %v4810_v50 = vadd.f32 %v4809_v41, %v4808_v52 }
 0x518   : > { %v4814_v16 = vadd.f32 %v4813_v23, %v4812_v2  ;;  %7019 = vtanh.f32 %v4611_v4  ;;  %v4582_v33 = vadd.f32 %v5856_v17, %v9757_v8  ;;  %v5857_v43 = vpop.f32.mrb[188].mxu1  ;;  %v4952_v61 = vrot.slane %v4915_v59, 4  ;;  %v9833_v23 = vpop.permute.xlu1 %4879 }
 0x519   : > { %v4823_v30 = vrot.slane %v4767_v51, 4  ;;  %v4656_v21 = vadd.f32 0.5, %v4640_v49  ;;  %v5858_v36 = vpop.f32.mrb[189].mxu1  ;;  %v4819_v60 = vrot.slane %v4818_v24, 2  ;;  %v4916_v11 = vadd.f32 %v4885_v19, %v4810_v50 }
 0x51a   : > { %v7016_v37 = vpop.eup %7015  ;;  %v4612_v26 = vmul.f32 0.5, %v4582_v33  ;;  %v5859_v40 = vadd.f32 %v5858_v36, %v5857_v43  ;;  %v4815_v31 = vrot.slane %v4814_v16, 1  ;;  %v4954_v44 = vsel %vm4953_vm4, %v4952_v61, %v4951_v20 }
 0x51b   : > { %v4824_v53 = vadd.f32 %v4823_v30, %v4767_v51  ;;  %v4768_v14 = vmul.f32 %v9754_v34, %v4656_v21  ;;  %v4641_v55 = vmul.f32 0.5, %v7016_v37  ;;  %v4820_v8 = vadd.f32 %v4819_v60, %v4818_v24 }
 0x51c   : > { %7021 = vtanh.f32 %v4612_v26  ;;  %v4589_v7 = vadd.f32 %v5859_v40, %v9760_v10  ;;  %v5860_v3 = vpop.f32.mrb[190].mxu1  ;;  %v4816_v12 = vadd.f32 %v4815_v31, %v4814_v16  ;;  %v4955_v15 = vrot.slane %v4916_v11, 3 }
 0x51d   : > { %v4825_v19 = vrot.slane %v4824_v53, 2  ;;  %v4829_v58 = vrot.slane %v4768_v14, 4  ;;  %v4657_v56 = vadd.f32 0.5, %v4641_v55  ;;  %v5861_v62 = vpop.f32.mrb[191].mxu1  ;;  %v4821_v13 = vrot.slane %v4820_v8, 1 }
 0x51e   : > { %v7018_v5 = vpop.eup %7017  ;;  %v4613_v46 = vmul.f32 0.5, %v4589_v7  ;;  %v5862_v45 = vadd.f32 %v5861_v62, %v5860_v3  ;;  %v4917_v34 = vadd.f32 %v4886_v32, %v4816_v12  ;;  %v4957_v52 = vsel %vm4956_vm5, %v4955_v15, %v4954_v44 }
 0x51f   : > { %v4826_v57 = vadd.f32 %v4825_v19, %v4824_v53  ;;  %v4830_v10 = vadd.f32 %v4829_v58, %v4768_v14  ;;  %v4769_v9 = vmul.f32 %v9762_v28, %v4657_v56  ;;  %v4642_v48 = vmul.f32 0.5, %v7018_v5 }
 0x520   : > { %7023 = vtanh.f32 %v4613_v46  ;;  %v4596_v47 = vadd.f32 %v5862_v45, %v9765_v29  ;;  %v4822_v2 = vadd.f32 %v4821_v13, %v4820_v8  ;;  %v4958_v18 = vrot.slane %v4917_v34, 2 }
 0x521   : > { %v4831_v1 = vrot.slane %v4830_v10, 2  ;;  %v4835_v41 = vrot.slane %v4769_v9, 4  ;;  %v4658_v38 = vadd.f32 0.5, %v4642_v48  ;;  %v4827_v42 = vrot.slane %v4826_v57, 1 }
 0x522   : > { %v7020_v25 = vpop.eup %7019  ;;  %v4614_v20 = vmul.f32 0.5, %v4596_v47  ;;  %v4918_v32 = vadd.f32 %v4887_v54, %v4822_v2  ;;  %v4960_v6 = vsel %vm4959_vm6, %v4958_v18, %v4957_v52  ;;  %v4888_v16 = vrot.slane %v9833_v23, 1 }
 0x523   : > { %v4832_v28 = vadd.f32 %v4831_v1, %v4830_v10  ;;  %v4836_v4 = vadd.f32 %v4835_v41, %v4769_v9  ;;  %v4770_v17 = vmul.f32 %v9796_v22, %v4658_v38  ;;  %v4643_v29 = vmul.f32 0.5, %v7020_v25 }
 0x524   : > { %7025 = vtanh.f32 %v4614_v20  ;;  %v4961_v59 = vrot.slane %v4918_v32, 1  ;;  %v4828_v0 = vadd.f32 %v4827_v42, %v4826_v57  ;;  %v4889_v40 = vrot.slane %v9833_v23, 2 }
 0x525   : > { %v4833_v24 = vrot.slane %v4832_v28, 1  ;;  %v4837_v51 = vrot.slane %v4836_v4, 2  ;;  %v4841_v49 = vrot.slane %v4770_v17, 4  ;;  %v4659_v54 = vadd.f32 0.5, %v4643_v29 }
 0x526   : > { %v7022_v50 = vpop.eup %7021  ;;  %v4963_v33 = vsel %vm4962_vm7, %v4961_v59, %v4960_v6  ;;  %v4919_v31 = vadd.f32 %v9833_v23, %v4828_v0  ;;  %v4890_v56 = vrot.slane %v9833_v23, 3  ;;  %v4891_v38 = vrot.slane %v9833_v23, 4 }
 0x527   : > { %v4834_v43 = vadd.f32 %v4833_v24, %v4832_v28  ;;  %v4838_v61 = vadd.f32 %v4837_v51, %v4836_v4  ;;  %v4842_v30 = vadd.f32 %v4841_v49, %v4770_v17  ;;  %v4644_v21 = vmul.f32 0.5, %v7022_v50  ;;  %4980 = vxpose.xlu0.b32.start [1/2] (short) %v4963_v33, 128 }
 0x528   : > { %v4771_v22 = vmul.f32 %v9804_v39, %v4659_v54  ;;  %v4892_v29 = vrot.slane %v9833_v23, 5  ;;  %v4893_v33 = vrot.slane %v9833_v23, 6 }
 0x529   : > { %v4920_v36 = vadd.f32 %v4888_v16, %v4834_v43  ;;  %v4839_v60 = vrot.slane %v4838_v61, 1  ;;  %v4843_v11 = vrot.slane %v4842_v30, 2  ;;  %v4660_v37 = vadd.f32 0.5, %v4644_v21 }
 0x52a   : > { %v7024_v26 = vpop.eup %7023  ;;  %v4847_v44 = vrot.slane %v4771_v22, 4 }
 0x52b   : > { %v4964_v53 = vrot.slane %v4920_v36, 7  ;;  %v4840_v14 = vadd.f32 %v4839_v60, %v4838_v61  ;;  %v4844_v55 = vadd.f32 %v4843_v11, %v4842_v30  ;;  %v4772_v8 = vmul.f32 %v9814_v35, %v4660_v37 }
 0x52c   : > { %v4848_v7 = vadd.f32 %v4847_v44, %v4771_v22  ;;  %v4645_v3 = vmul.f32 0.5, %v7024_v26  ;;  %v4894_v22 = vrot.slane %v9833_v23, 7 }
 0x52d   : > { %v4921_v12 = vadd.f32 %v4889_v40, %v4840_v14  ;;  %v4845_v15 = vrot.slane %v4844_v55, 1  ;;  %v4853_v39 = vrot.slane %v4772_v8, 4  ;;  %v4965_v19 = vsel %vm4944_vm1, %v4964_v53, %v4919_v31 }
 0x52e   : > { %v7026_v58 = vpop.eup %7025  ;;  %v4849_v62 = vrot.slane %v4848_v7, 2  ;;  %v4661_v13 = vadd.f32 0.5, %v4645_v3 }
 0x52f   : > { %v4966_v5 = vrot.slane %v4921_v12, 6  ;;  %v4846_v46 = vadd.f32 %v4845_v15, %v4844_v55  ;;  %v4854_v45 = vadd.f32 %v4853_v39, %v4772_v8  ;;  %v4646_v34 = vmul.f32 0.5, %v7026_v58 }
 0x530   : > { %v4850_v52 = vadd.f32 %v4849_v62, %v4848_v7  ;;  %v4773_v57 = vmul.f32 %v9778_v27, %v4661_v13 }
 0x531   : > { %v4922_v35 = vadd.f32 %v4890_v56, %v4846_v46  ;;  %v4855_v10 = vrot.slane %v4854_v45, 2  ;;  %v4662_v9 = vadd.f32 0.5, %v4646_v34  ;;  %v4967_v48 = vsel %vm4947_vm2, %v4966_v5, %v4965_v19 }
 0x532   : > { %v4851_v47 = vrot.slane %v4850_v52, 1  ;;  %v4859_v2 = vrot.slane %v4773_v57, 4 }
 0x533   : > { %v4856_v18 = vadd.f32 %v4855_v10, %v4854_v45  ;;  %v4774_v1 = vmul.f32 %v9823_v63, %v4662_v9  ;;  %v4968_v41 = vrot.slane %v4922_v35, 5 }
 0x534   : > { %v4852_v25 = vadd.f32 %v4851_v47, %v4850_v52  ;;  %v4860_v42 = vadd.f32 %v4859_v2, %v4773_v57 }
 0x535   : > { %v4857_v20 = vrot.slane %v4856_v18, 1  ;;  %v4865_v32 = vrot.slane %v4774_v1, 4  ;;  %v4969_v6 = vsel %vm4950_vm3, %v4968_v41, %v4967_v48 }
 0x536   : > { %v4861_v27 = vrot.slane %v4860_v42, 2  ;;  %v4923_v28 = vadd.f32 %v4891_v38, %v4852_v25 }
 0x537   : > { %v4858_v4 = vadd.f32 %v4857_v20, %v4856_v18  ;;  %v4866_v17 = vadd.f32 %v4865_v32, %v4774_v1 }
 0x538   : > { %v4862_v59 = vadd.f32 %v4861_v27, %v4860_v42  ;;  %v4970_v24 = vrot.slane %v4923_v28, 4 }
 0x539   : > { %v4867_v51 = vrot.slane %v4866_v17, 2  ;;  %v4924_v49 = vadd.f32 %v4892_v29, %v4858_v4 }
 0x53a   : > { %v4863_v63 = vrot.slane %v4862_v59, 1  ;;  %v4971_v50 = vsel %vm4953_vm4, %v4970_v24, %v4969_v6 }
 0x53b   : > { %v4868_v16 = vadd.f32 %v4867_v51, %v4866_v17  ;;  %v4972_v0 = vrot.slane %v4924_v49, 3 }
 0x53c   : > { %v4864_v54 = vadd.f32 %v4863_v63, %v4862_v59 }
 0x53d   : > { %v4869_v43 = vrot.slane %v4868_v16, 1  ;;  %v4973_v61 = vsel %vm4956_vm5, %v4972_v0, %v4971_v50 }
 0x53e   : > { %v4925_v30 = vadd.f32 %v4893_v33, %v4864_v54 }
 0x53f   : > { %v4870_v21 = vadd.f32 %v4869_v43, %v4868_v16 }
 0x540   : > { %v4974_v36 = vrot.slane %v4925_v30, 2 }
 0x541   : > { %v4926_v60 = vadd.f32 %v4894_v22, %v4870_v21 }
 0x542   : > { %v4975_v11 = vsel %vm4959_vm6, %v4974_v36, %v4973_v61 }
 0x543   : > { %v4976_v37 = vrot.slane %v4926_v60, 1 }
 0x545   : > { %v4977_v26 = vsel %vm4962_vm7, %v4976_v37, %v4975_v11 }
 0x546   : > { %4981 = vxpose.xlu0.b32.end [2/2] (short) %v4977_v26, 128 }
 0x5c2   : > { %v4996_v23 = vpop.trf.xlu0 }
 0x5c3   : > { %5012 = vst.msk [vmem:[%s9861_s10] sm:$0xff] %vm522_vm0, %v4996_v23 }
 0x5c6   : > { %v4997_v40 = vpop.trf.xlu0 }
 0x5c7   : > { %5013 = vst.msk [vmem:[%s9861_s10 + $0x8] sm:$0xff] %vm522_vm0, %v4997_v40 }
 0x5ca   : > { %v4998_v31 = vpop.trf.xlu0 }
 0x5cb   : > { %5014 = vst.msk [vmem:[%s9861_s10 + $0x10] sm:$0xff] %vm522_vm0, %v4998_v31 }
 0x5ce   : > { %v4999_v44 = vpop.trf.xlu0 }
 0x5cf   : > { %5015 = vst.msk [vmem:[%s9861_s10 + $0x18] sm:$0xff] %vm522_vm0, %v4999_v44 }
 0x5d2   : > { %v5000_v53 = vpop.trf.xlu0 }
 0x5d3   : > { %5016 = vst.msk [vmem:[%s9861_s10 + $0x20] sm:$0xff] %vm522_vm0, %v5000_v53 }
 0x5d6   : > { %v5001_v14 = vpop.trf.xlu0 }
 0x5d7   : > { %5017 = vst.msk [vmem:[%s9861_s10 + $0x28] sm:$0xff] %vm522_vm0, %v5001_v14 }
 0x5da   : > { %v5002_v55 = vpop.trf.xlu0 }
 0x5db   : > { %5018 = vst.msk [vmem:[%s9861_s10 + $0x30] sm:$0xff] %vm522_vm0, %v5002_v55 }
 0x5de   : > { %v5003_v8 = vpop.trf.xlu0 }
 0x5df   : > { %5019 = vst.msk [vmem:[%s9861_s10 + $0x38] sm:$0xff] %vm522_vm0, %v5003_v8 }
 0x5e2   : > { %v5004_v7 = vpop.trf.xlu0 }
 0x5e3   : > { %5020 = vst.msk [vmem:[%s9861_s10 + $0x40] sm:$0xff] %vm522_vm0, %v5004_v7 }
 0x5e6   : > { %v5005_v3 = vpop.trf.xlu0 }
 0x5e7   : > { %5021 = vst.msk [vmem:[%s9861_s10 + $0x48] sm:$0xff] %vm522_vm0, %v5005_v3 }
 0x5ea   : > { %v5006_v12 = vpop.trf.xlu0 }
 0x5eb   : > { %5022 = vst.msk [vmem:[%s9861_s10 + $0x50] sm:$0xff] %vm522_vm0, %v5006_v12 }
 0x5ee   : > { %v5007_v15 = vpop.trf.xlu0 }
 0x5ef   : > { %5023 = vst.msk [vmem:[%s9861_s10 + $0x58] sm:$0xff] %vm522_vm0, %v5007_v15 }
 0x5f2   : > { %v5008_v39 = vpop.trf.xlu0 }
 0x5f3   : > { %5024 = vst.msk [vmem:[%s9861_s10 + $0x60] sm:$0xff] %vm522_vm0, %v5008_v39 }
 0x5f6   : > { %v5009_v19 = vpop.trf.xlu0 }
 0x5f7   : > { %5025 = vst.msk [vmem:[%s9861_s10 + $0x68] sm:$0xff] %vm522_vm0, %v5009_v19 }
 0x5fa   : > { %v5010_v58 = vpop.trf.xlu0 }
 0x5fb   : > { %5026 = vst.msk [vmem:[%s9861_s10 + $0x70] sm:$0xff] %vm522_vm0, %v5010_v58 }
 0x5fe   : > { %v5011_v56 = vpop.trf.xlu0 }
 0x5ff   : > { %5027 = vst.msk [vmem:[%s9861_s10 + $0x78] sm:$0xff] %vm522_vm0, %v5011_v56 }
 0x600 PF: > { %s17_s24 = sadd.s32 1, %s7033_s24  }
 0x601   : > { %p14_p4 = scmp.ge.s32.totalorder %s17_s24, 4  }
 0x603   :  { %16 = sbr.rel (!%p14_p4) target bundleno = 1 (0x1), region = 78 }

</bundles_post_ra>
